<compile_context>
chip_gen: v5e
topology: v5e:2x2
jax: 0.10.0
libtpu: 0.0.40
codegen_flags: <defaults>
</compile_context>

<pallas_src>
import math

import jax
import jax.numpy as jnp
from jax.experimental import pallas as pl
from jax.experimental.pallas import tpu as pltpu

D_MODEL = 64
N_HEAD = 4
HEAD_DIM = D_MODEL // N_HEAD
FF_DIM = 128
N_LAYERS = 2
LN_EPS = 1e-5
BN_EPS = 1e-5
MAX_POS = 50

MM_DT = jnp.bfloat16  # MXU operand dtype (f32 accumulation everywhere)

# Per-layer parameter ordering shared by the wrapper and the kernel.
KERNEL_LAYER_KEYS = (
    "w_q", "b_q", "w_k", "b_k", "w_v", "b_v",
    "w_out", "b_out", "ln1_g", "ln1_b",
    "w_ff1", "b_ff1", "w_ff2", "b_ff2", "ln2_g", "ln2_b",
)

# Original (PyTorch-style) per-layer parameter names used by init_params.
LAYER_KEYS = ("w_in", "b_in", "w_out", "b_out", "ln1_g", "ln1_b",
              "w_ff1", "b_ff1", "w_ff2", "b_ff2", "ln2_g", "ln2_b")


def _layer_norm(x, gamma, beta):
    mu = jnp.mean(x, axis=-1, keepdims=True)
    var = jnp.mean((x - mu) ** 2, axis=-1, keepdims=True)
    return (x - mu) * jax.lax.rsqrt(var + LN_EPS) * gamma + beta


def _encoder_layer(x2, B, S, r):
    """One nn.TransformerEncoderLayer (post-norm, relu FFN). x2: (B*S, D) f32.

    `r` is a dict of *refs*; weights are loaded lazily at their point of use.
    """
    M = B * S
    xb = x2.astype(MM_DT)                       # single bf16 operand reused for Q/K/V
    scale = 1.0 / math.sqrt(HEAD_DIM)

    # Per-head projections with head-stacked weights (H, D, hd): leading-axis ref
    # indexing is layout-clean, every MXU push has a full K=64 contraction, and the
    # per-head regroup happens "for free" inside the matmul (no lane slicing).
    def proj(w_ref, b_ref, h):
        y = jnp.dot(xb, w_ref[h], preferred_element_type=jnp.float32) + b_ref[h]
        return y.reshape(B, S, HEAD_DIM).astype(MM_DT)

    # Fold heads into the batch axis: (H*B, S, hd).
    q = jnp.concatenate([proj(r["w_q"], r["b_q"], h) for h in range(N_HEAD)], axis=0)
    k = jnp.concatenate([proj(r["w_k"], r["b_k"], h) for h in range(N_HEAD)], axis=0)
    v = jnp.concatenate([proj(r["w_v"], r["b_v"], h) for h in range(N_HEAD)], axis=0)

    # All heads + batch in two batched dot_generals.
    s = jnp.einsum("nqd,nkd->nqk", q, k, preferred_element_type=jnp.float32) * scale
    s = s - jnp.max(s, axis=-1, keepdims=True)
    e = jnp.exp(s)
    p = e * pl.reciprocal(jnp.sum(e, axis=-1, keepdims=True), approx=True)
    o = jnp.einsum("nqk,nkd->nqd", p.astype(MM_DT), v,
                   preferred_element_type=jnp.float32)        # (H*B, S, hd)

    # Reassemble heads -> (M, D) and apply ONE full (64, 64) output projection.
    attn = jnp.concatenate([o[h * B:(h + 1) * B] for h in range(N_HEAD)], axis=-1)
    attn = jnp.dot(attn.reshape(M, D_MODEL).astype(MM_DT), r["w_out"][...],
                   preferred_element_type=jnp.float32) + r["b_out"][...]

    x2 = _layer_norm(x2 + attn, r["ln1_g"][...], r["ln1_b"][...])

    ff = jnp.maximum(
        jnp.dot(x2.astype(MM_DT), r["w_ff1"][...],
                preferred_element_type=jnp.float32) + r["b_ff1"][...], 0.0)
    ff = jnp.dot(ff.astype(MM_DT), r["w_ff2"][...],
                 preferred_element_type=jnp.float32) + r["b_ff2"][...]
    x2 = _layer_norm(x2 + ff, r["ln2_g"][...], r["ln2_b"][...])
    return x2


def m3t_kernel(*refs):
    out_ref = refs[-1]
    it = iter(refs[:-1])
    emb_ref = next(it)       # (TB, S, D)  f32, batch-tiled over the grid
    pos_ref = next(it)       # (S, D)      f32, grid-invariant
    desc_ref = next(it)      # (TB, desc_dim) f32, batch-tiled
    layers = [{k: next(it) for k in KERNEL_LAYER_KEYS} for _ in range(N_LAYERS)]
    wd1, bd1, bn_g, bn_b, bn_mean, bn_var, wd2, bd2 = (next(it) for _ in range(8))
    wf1_seq, wf1_desc, bf1, wf2, bf2 = (next(it) for _ in range(5))
    wc, bc = next(it), next(it)

    B, S, D = emb_ref.shape

    # --- MolecularTransformer ---
    x = emb_ref[...] * math.sqrt(D_MODEL) + pos_ref[...]      # pos broadcasts over batch
    x2 = x.reshape(B * S, D)
    for r in layers:
        x2 = _encoder_layer(x2, B, S, r)
    seq_feat = jnp.mean(x2.reshape(B, S, D), axis=1)          # (B, D)

    # --- descriptor encoder: Linear -> BatchNorm1d(eval) -> ReLU -> [Dropout] -> Linear ---
    h = jnp.dot(desc_ref[...].astype(MM_DT), wd1[...],
                preferred_element_type=jnp.float32) + bd1[...]
    h = (h - bn_mean[...]) * jax.lax.rsqrt(bn_var[...] + BN_EPS) * bn_g[...] + bn_b[...]
    h = jnp.maximum(h, 0.0)
    desc_feat = jnp.dot(h.astype(MM_DT), wd2[...],
                        preferred_element_type=jnp.float32) + bd2[...]          # (B, 32)

    # --- fusion (wf1 split row-wise in the wrapper -> no 96-lane concat) + classifier ---
    f = jnp.maximum(
        jnp.dot(seq_feat.astype(MM_DT), wf1_seq[...], preferred_element_type=jnp.float32)
        + jnp.dot(desc_feat.astype(MM_DT), wf1_desc[...], preferred_element_type=jnp.float32)
        + bf1[...], 0.0)
    f = jnp.maximum(jnp.dot(f.astype(MM_DT), wf2[...],
                            preferred_element_type=jnp.float32) + bf2[...], 0.0)
    logits = jnp.dot(f.astype(MM_DT), wc[...],
                     preferred_element_type=jnp.float32) + bc[...]
    out_ref[...] = logits.astype(out_ref.dtype)


def _pick_batch_tile(B, S):
    """Batch tile: aim for TB*S ~ 256 rows (fills a 256-wide v6e/v7x MXU tile; a
    double-buffered f32 emb tile of that size is well under the v7x 64 MiB VMEM
    budget). Fall back to whole-B when B is small or has no multiple-of-8 divisor
    (second-to-last block dims must be %8 == 0 or equal the full extent)."""
    target = max(1, 256 // max(S, 1))
    if B <= target:
        return B
    for tb in range(min(target, B), 7, -1):
        if tb % 8 == 0 and B % tb == 0:
            return tb
    return B


def m3t_forward(tokens, descriptors, params, *, batch_tile=None):
    B, S = tokens.shape
    desc_dim = descriptors.shape[1]
    num_classes = params["classifier"][0].shape[1]

    # Embedding gather + positional slice stay as cheap trace-time glue.
    # TODO(synk): at large B, fold the gather into the kernel with
    # PrefetchScalarGridSpec (token ids as scalar prefetch, ~6 KB vocab table resident
    # in VMEM) to avoid writing + re-reading the gathered (B, S, D) activations in HBM.
    emb = jnp.take(params["embedding"], tokens, axis=0).astype(jnp.float32)
    pos = params["pos_encoding"][:S].astype(jnp.float32)

    tb = _pick_batch_tile(B, S) if batch_tile is None else batch_tile
    assert B % tb == 0, (B, tb)
    grid = (B // tb,)

    inputs, in_specs = [], []

    def add(arr, spec):
        inputs.append(arr)
        in_specs.append(spec)

    def add_resident(arr):
        # Grid-invariant weight: constant index_map keeps it resident in VMEM.
        nd = arr.ndim
        add(arr, pl.BlockSpec(arr.shape, lambda i, _n=nd: (0,) * _n))

    # Batch-tiled activations (double-buffered by the grid pipeline).
    add(emb, pl.BlockSpec((tb, S, D_MODEL), lambda i: (i, 0, 0)))
    add(pos, pl.BlockSpec((S, D_MODEL), lambda i: (0, 0)))
    add(descriptors.astype(jnp.float32), pl.BlockSpec((tb, desc_dim), lambda i: (i, 0)))

    def split_heads_w(w):   # (D, D) -> (H, D, hd); trace-time, free
        return jnp.transpose(w.reshape(D_MODEL, N_HEAD, HEAD_DIM), (1, 0, 2))

    def split_heads_b(b):   # (1, D) -> (H, 1, hd)
        return jnp.transpose(b.reshape(1, N_HEAD, HEAD_DIM), (1, 0, 2))

    for lp in params["layers"]:
        w_in, b_in = lp["w_in"], lp["b_in"]
        packed = {
            "w_q": split_heads_w(w_in[:, 0 * D_MODEL:1 * D_MODEL]).astype(MM_DT),
            "b_q": split_heads_b(b_in[:, 0 * D_MODEL:1 * D_MODEL]),
            "w_k": split_heads_w(w_in[:, 1 * D_MODEL:2 * D_MODEL]).astype(MM_DT),
            "b_k": split_heads_b(b_in[:, 1 * D_MODEL:2 * D_MODEL]),
            "w_v": split_heads_w(w_in[:, 2 * D_MODEL:3 * D_MODEL]).astype(MM_DT),
            "b_v": split_heads_b(b_in[:, 2 * D_MODEL:3 * D_MODEL]),
            "w_out": lp["w_out"].astype(MM_DT), "b_out": lp["b_out"],
            "ln1_g": lp["ln1_g"], "ln1_b": lp["ln1_b"],
            "w_ff1": lp["w_ff1"].astype(MM_DT), "b_ff1": lp["b_ff1"],
            "w_ff2": lp["w_ff2"].astype(MM_DT), "b_ff2": lp["b_ff2"],
            "ln2_g": lp["ln2_g"], "ln2_b": lp["ln2_b"],
        }
        for key in KERNEL_LAYER_KEYS:
            add_resident(packed[key])

    wd1, bd1, bn_g, bn_b, bn_mean, bn_var, wd2, bd2 = params["desc"]
    for arr in (wd1.astype(MM_DT), bd1, bn_g, bn_b, bn_mean, bn_var,
                wd2.astype(MM_DT), bd2):
        add_resident(arr)

    wf1, bf1, wf2, bf2 = params["fusion"]
    for arr in (wf1[:D_MODEL].astype(MM_DT),      # seq_feat rows
                wf1[D_MODEL:].astype(MM_DT),      # desc_feat rows
                bf1, wf2.astype(MM_DT), bf2):
        add_resident(arr)

    wc, bc = params["classifier"]
    add_resident(wc.astype(MM_DT))
    add_resident(bc)

    return pl.pallas_call(
        m3t_kernel,
        out_shape=jax.ShapeDtypeStruct((B, num_classes), jnp.float32),
        grid=grid,
        in_specs=in_specs,
        out_specs=pl.BlockSpec((tb, num_classes), lambda i: (i, 0)),
        compiler_params=pltpu.CompilerParams(
            dimension_semantics=("parallel",)),   # batch axis -> both v7x TCs
    )(*inputs)


def init_params(key, vocab_size, desc_dim, num_classes):
    keys = iter(jax.random.split(key, 64))

    def nrm(shape, scale=0.1):
        return scale * jax.random.normal(next(keys), shape, dtype=jnp.float32)

    params = {
        "embedding": nrm((vocab_size, D_MODEL)),
        "pos_encoding": nrm((MAX_POS, D_MODEL)),
        "layers": [],
    }
    for _ in range(N_LAYERS):
        params["layers"].append({
            "w_in":  nrm((D_MODEL, 3 * D_MODEL)),
            "b_in":  nrm((1, 3 * D_MODEL)),
            "w_out": nrm((D_MODEL, D_MODEL)),
            "b_out": nrm((1, D_MODEL)),
            "ln1_g": jnp.ones((1, D_MODEL), jnp.float32),
            "ln1_b": jnp.zeros((1, D_MODEL), jnp.float32),
            "w_ff1": nrm((D_MODEL, FF_DIM)),
            "b_ff1": nrm((1, FF_DIM)),
            "w_ff2": nrm((FF_DIM, D_MODEL)),
            "b_ff2": nrm((1, D_MODEL)),
            "ln2_g": jnp.ones((1, D_MODEL), jnp.float32),
            "ln2_b": jnp.zeros((1, D_MODEL), jnp.float32),
        })
    params["desc"] = [
        nrm((desc_dim, 32)), nrm((1, 32)),                                  # Linear(desc_dim, 32)
        jnp.ones((1, 32), jnp.float32), jnp.zeros((1, 32), jnp.float32),    # BN gamma/beta
        jnp.zeros((1, 32), jnp.float32), jnp.ones((1, 32), jnp.float32),    # BN running mean/var
        nrm((32, 32)), nrm((1, 32)),                                        # Linear(32, 32)
    ]
    params["fusion"] = [
        nrm((D_MODEL + 32, 64)), nrm((1, 64)),                              # Linear(96, 64)
        nrm((64, 32)), nrm((1, 32)),                                        # Linear(64, 32)
    ]
    params["classifier"] = [
        nrm((32, num_classes)), nrm((1, num_classes)),                      # Linear(32, C)
    ]
    return params


if __name__ == "__main__":
    key = jax.random.PRNGKey(0)
    k_tok, k_desc, k_par = jax.random.split(key, 3)

    B, S = 2, 8
    vocab_size, desc_dim, num_classes = 24, 16, 8

    tokens = jax.random.randint(k_tok, (B, S), 0, vocab_size, dtype=jnp.int32)
    descriptors = jax.random.normal(k_desc, (B, desc_dim), dtype=jnp.float32)
    params = init_params(k_par, vocab_size, desc_dim, num_classes)

    logits = m3t_forward(tokens, descriptors, params)
    logits = jax.block_until_ready(logits)

    assert logits.shape == (B, num_classes), logits.shape
    assert bool(jnp.all(jnp.isfinite(logits)))
    print("KERNEL_OK")
</pallas_src>

<mosaic_0001>
module attributes {stable_mosaic.version = 11 : i64} {
  func.func @m3t_kernel(%arg0: i32, %arg1: memref<2x8x64xf32, #tpu.memory_space<vmem>>, %arg2: memref<8x64xf32, #tpu.memory_space<vmem>>, %arg3: memref<2x16xf32, #tpu.memory_space<vmem>>, %arg4: memref<4x64x16xbf16, #tpu.memory_space<vmem>>, %arg5: memref<4x1x16xf32, #tpu.memory_space<vmem>>, %arg6: memref<4x64x16xbf16, #tpu.memory_space<vmem>>, %arg7: memref<4x1x16xf32, #tpu.memory_space<vmem>>, %arg8: memref<4x64x16xbf16, #tpu.memory_space<vmem>>, %arg9: memref<4x1x16xf32, #tpu.memory_space<vmem>>, %arg10: memref<64x64xbf16, #tpu.memory_space<vmem>>, %arg11: memref<1x64xf32, #tpu.memory_space<vmem>>, %arg12: memref<1x64xf32, #tpu.memory_space<vmem>>, %arg13: memref<1x64xf32, #tpu.memory_space<vmem>>, %arg14: memref<64x128xbf16, #tpu.memory_space<vmem>>, %arg15: memref<1x128xf32, #tpu.memory_space<vmem>>, %arg16: memref<128x64xbf16, #tpu.memory_space<vmem>>, %arg17: memref<1x64xf32, #tpu.memory_space<vmem>>, %arg18: memref<1x64xf32, #tpu.memory_space<vmem>>, %arg19: memref<1x64xf32, #tpu.memory_space<vmem>>, %arg20: memref<4x64x16xbf16, #tpu.memory_space<vmem>>, %arg21: memref<4x1x16xf32, #tpu.memory_space<vmem>>, %arg22: memref<4x64x16xbf16, #tpu.memory_space<vmem>>, %arg23: memref<4x1x16xf32, #tpu.memory_space<vmem>>, %arg24: memref<4x64x16xbf16, #tpu.memory_space<vmem>>, %arg25: memref<4x1x16xf32, #tpu.memory_space<vmem>>, %arg26: memref<64x64xbf16, #tpu.memory_space<vmem>>, %arg27: memref<1x64xf32, #tpu.memory_space<vmem>>, %arg28: memref<1x64xf32, #tpu.memory_space<vmem>>, %arg29: memref<1x64xf32, #tpu.memory_space<vmem>>, %arg30: memref<64x128xbf16, #tpu.memory_space<vmem>>, %arg31: memref<1x128xf32, #tpu.memory_space<vmem>>, %arg32: memref<128x64xbf16, #tpu.memory_space<vmem>>, %arg33: memref<1x64xf32, #tpu.memory_space<vmem>>, %arg34: memref<1x64xf32, #tpu.memory_space<vmem>>, %arg35: memref<1x64xf32, #tpu.memory_space<vmem>>, %arg36: memref<16x32xbf16, #tpu.memory_space<vmem>>, %arg37: memref<1x32xf32, #tpu.memory_space<vmem>>, %arg38: memref<1x32xf32, #tpu.memory_space<vmem>>, %arg39: memref<1x32xf32, #tpu.memory_space<vmem>>, %arg40: memref<1x32xf32, #tpu.memory_space<vmem>>, %arg41: memref<1x32xf32, #tpu.memory_space<vmem>>, %arg42: memref<32x32xbf16, #tpu.memory_space<vmem>>, %arg43: memref<1x32xf32, #tpu.memory_space<vmem>>, %arg44: memref<64x64xbf16, #tpu.memory_space<vmem>>, %arg45: memref<32x64xbf16, #tpu.memory_space<vmem>>, %arg46: memref<1x64xf32, #tpu.memory_space<vmem>>, %arg47: memref<64x32xbf16, #tpu.memory_space<vmem>>, %arg48: memref<1x32xf32, #tpu.memory_space<vmem>>, %arg49: memref<32x8xbf16, #tpu.memory_space<vmem>>, %arg50: memref<1x8xf32, #tpu.memory_space<vmem>>, %arg51: memref<2x8xf32, #tpu.memory_space<vmem>>) attributes {dimension_semantics = [#tpu.dimension_semantics<parallel>], iteration_bounds = array<i64: 1>, scalar_prefetch = 0 : i64, scratch_operands = 0 : i64, tpu.core_type = #tpu.core_type<tc>, window_params = [{transform_indices = @transform_0, window_bounds = array<i64: 2, 8, 64>}, {pipeline_mode = #tpu.pipeline_mode<synchronous>, transform_indices = @transform_1, window_bounds = array<i64: 8, 64>}, {transform_indices = @transform_2, window_bounds = array<i64: 2, 16>}, {pipeline_mode = #tpu.pipeline_mode<synchronous>, transform_indices = @transform_3, window_bounds = array<i64: 4, 64, 16>}, {pipeline_mode = #tpu.pipeline_mode<synchronous>, transform_indices = @transform_4, window_bounds = array<i64: 4, 1, 16>}, {pipeline_mode = #tpu.pipeline_mode<synchronous>, transform_indices = @transform_5, window_bounds = array<i64: 4, 64, 16>}, {pipeline_mode = #tpu.pipeline_mode<synchronous>, transform_indices = @transform_6, window_bounds = array<i64: 4, 1, 16>}, {pipeline_mode = #tpu.pipeline_mode<synchronous>, transform_indices = @transform_7, window_bounds = array<i64: 4, 64, 16>}, {pipeline_mode = #tpu.pipeline_mode<synchronous>, transform_indices = @transform_8, window_bounds = array<i64: 4, 1, 16>}, {pipeline_mode = #tpu.pipeline_mode<synchronous>, transform_indices = @transform_9, window_bounds = array<i64: 64, 64>}, {pipeline_mode = #tpu.pipeline_mode<synchronous>, transform_indices = @transform_10, window_bounds = array<i64: 1, 64>}, {pipeline_mode = #tpu.pipeline_mode<synchronous>, transform_indices = @transform_11, window_bounds = array<i64: 1, 64>}, {pipeline_mode = #tpu.pipeline_mode<synchronous>, transform_indices = @transform_12, window_bounds = array<i64: 1, 64>}, {pipeline_mode = #tpu.pipeline_mode<synchronous>, transform_indices = @transform_13, window_bounds = array<i64: 64, 128>}, {pipeline_mode = #tpu.pipeline_mode<synchronous>, transform_indices = @transform_14, window_bounds = array<i64: 1, 128>}, {pipeline_mode = #tpu.pipeline_mode<synchronous>, transform_indices = @transform_15, window_bounds = array<i64: 128, 64>}, {pipeline_mode = #tpu.pipeline_mode<synchronous>, transform_indices = @transform_16, window_bounds = array<i64: 1, 64>}, {pipeline_mode = #tpu.pipeline_mode<synchronous>, transform_indices = @transform_17, window_bounds = array<i64: 1, 64>}, {pipeline_mode = #tpu.pipeline_mode<synchronous>, transform_indices = @transform_18, window_bounds = array<i64: 1, 64>}, {pipeline_mode = #tpu.pipeline_mode<synchronous>, transform_indices = @transform_19, window_bounds = array<i64: 4, 64, 16>}, {pipeline_mode = #tpu.pipeline_mode<synchronous>, transform_indices = @transform_20, window_bounds = array<i64: 4, 1, 16>}, {pipeline_mode = #tpu.pipeline_mode<synchronous>, transform_indices = @transform_21, window_bounds = array<i64: 4, 64, 16>}, {pipeline_mode = #tpu.pipeline_mode<synchronous>, transform_indices = @transform_22, window_bounds = array<i64: 4, 1, 16>}, {pipeline_mode = #tpu.pipeline_mode<synchronous>, transform_indices = @transform_23, window_bounds = array<i64: 4, 64, 16>}, {pipeline_mode = #tpu.pipeline_mode<synchronous>, transform_indices = @transform_24, window_bounds = array<i64: 4, 1, 16>}, {pipeline_mode = #tpu.pipeline_mode<synchronous>, transform_indices = @transform_25, window_bounds = array<i64: 64, 64>}, {pipeline_mode = #tpu.pipeline_mode<synchronous>, transform_indices = @transform_26, window_bounds = array<i64: 1, 64>}, {pipeline_mode = #tpu.pipeline_mode<synchronous>, transform_indices = @transform_27, window_bounds = array<i64: 1, 64>}, {pipeline_mode = #tpu.pipeline_mode<synchronous>, transform_indices = @transform_28, window_bounds = array<i64: 1, 64>}, {pipeline_mode = #tpu.pipeline_mode<synchronous>, transform_indices = @transform_29, window_bounds = array<i64: 64, 128>}, {pipeline_mode = #tpu.pipeline_mode<synchronous>, transform_indices = @transform_30, window_bounds = array<i64: 1, 128>}, {pipeline_mode = #tpu.pipeline_mode<synchronous>, transform_indices = @transform_31, window_bounds = array<i64: 128, 64>}, {pipeline_mode = #tpu.pipeline_mode<synchronous>, transform_indices = @transform_32, window_bounds = array<i64: 1, 64>}, {pipeline_mode = #tpu.pipeline_mode<synchronous>, transform_indices = @transform_33, window_bounds = array<i64: 1, 64>}, {pipeline_mode = #tpu.pipeline_mode<synchronous>, transform_indices = @transform_34, window_bounds = array<i64: 1, 64>}, {pipeline_mode = #tpu.pipeline_mode<synchronous>, transform_indices = @transform_35, window_bounds = array<i64: 16, 32>}, {pipeline_mode = #tpu.pipeline_mode<synchronous>, transform_indices = @transform_36, window_bounds = array<i64: 1, 32>}, {pipeline_mode = #tpu.pipeline_mode<synchronous>, transform_indices = @transform_37, window_bounds = array<i64: 1, 32>}, {pipeline_mode = #tpu.pipeline_mode<synchronous>, transform_indices = @transform_38, window_bounds = array<i64: 1, 32>}, {pipeline_mode = #tpu.pipeline_mode<synchronous>, transform_indices = @transform_39, window_bounds = array<i64: 1, 32>}, {pipeline_mode = #tpu.pipeline_mode<synchronous>, transform_indices = @transform_40, window_bounds = array<i64: 1, 32>}, {pipeline_mode = #tpu.pipeline_mode<synchronous>, transform_indices = @transform_41, window_bounds = array<i64: 32, 32>}, {pipeline_mode = #tpu.pipeline_mode<synchronous>, transform_indices = @transform_42, window_bounds = array<i64: 1, 32>}, {pipeline_mode = #tpu.pipeline_mode<synchronous>, transform_indices = @transform_43, window_bounds = array<i64: 64, 64>}, {pipeline_mode = #tpu.pipeline_mode<synchronous>, transform_indices = @transform_44, window_bounds = array<i64: 32, 64>}, {pipeline_mode = #tpu.pipeline_mode<synchronous>, transform_indices = @transform_45, window_bounds = array<i64: 1, 64>}, {pipeline_mode = #tpu.pipeline_mode<synchronous>, transform_indices = @transform_46, window_bounds = array<i64: 64, 32>}, {pipeline_mode = #tpu.pipeline_mode<synchronous>, transform_indices = @transform_47, window_bounds = array<i64: 1, 32>}, {pipeline_mode = #tpu.pipeline_mode<synchronous>, transform_indices = @transform_48, window_bounds = array<i64: 32, 8>}, {pipeline_mode = #tpu.pipeline_mode<synchronous>, transform_indices = @transform_49, window_bounds = array<i64: 1, 8>}, {transform_indices = @transform_50, window_bounds = array<i64: 2, 8>}]} {
    %c0 = arith.constant 0 : index
    %c0_0 = arith.constant 0 : index
    %c0_1 = arith.constant 0 : index
    %0 = vector.load %arg1[%c0, %c0_0, %c0_1] : memref<2x8x64xf32, #tpu.memory_space<vmem>>, vector<2x8x64xf32>
    %cst = arith.constant 8.000000e+00 : f32
    %1 = vector.broadcast %cst : f32 to vector<2x8x64xf32>
    %2 = arith.mulf %0, %1 : vector<2x8x64xf32>
    %c0_2 = arith.constant 0 : index
    %c0_3 = arith.constant 0 : index
    %3 = vector.load %arg2[%c0_2, %c0_3] : memref<8x64xf32, #tpu.memory_space<vmem>>, vector<8x64xf32>
    %4 = vector.shape_cast %3 : vector<8x64xf32> to vector<1x8x64xf32>
    %5 = vector.broadcast %4 : vector<1x8x64xf32> to vector<2x8x64xf32>
    %6 = arith.addf %2, %5 : vector<2x8x64xf32>
    %7 = vector.shape_cast %6 : vector<2x8x64xf32> to vector<16x64xf32>
    %8 = arith.truncf %7 : vector<16x64xf32> to vector<16x64xbf16>
    %c0_4 = arith.constant 0 : index
    %c0_5 = arith.constant 0 : index
    %c0_6 = arith.constant 0 : index
    %9 = vector.load %arg4[%c0_4, %c0_5, %c0_6] : memref<4x64x16xbf16, #tpu.memory_space<vmem>>, vector<1x64x16xbf16>
    %10 = vector.shape_cast %9 : vector<1x64x16xbf16> to vector<64x16xbf16>
    %cst_7 = arith.constant dense<0.000000e+00> : vector<16x16xf32>
    %11 = tpu.matmul %8, %10, %cst_7 {dimension_numbers = #tpu.dot_dimension_numbers<[1], [0], [0], [1], [0, 0, 1, 1], [], []>} : vector<16x64xbf16>, vector<64x16xbf16>, vector<16x16xf32> -> vector<16x16xf32>
    %c0_8 = arith.constant 0 : index
    %c0_9 = arith.constant 0 : index
    %c0_10 = arith.constant 0 : index
    %12 = vector.load %arg5[%c0_8, %c0_9, %c0_10] : memref<4x1x16xf32, #tpu.memory_space<vmem>>, vector<1x1x16xf32>
    %13 = vector.shape_cast %12 : vector<1x1x16xf32> to vector<1x16xf32>
    %14 = vector.broadcast %13 : vector<1x16xf32> to vector<16x16xf32>
    %15 = arith.addf %11, %14 : vector<16x16xf32>
    %16 = vector.shape_cast %15 : vector<16x16xf32> to vector<2x8x16xf32>
    %17 = arith.truncf %16 : vector<2x8x16xf32> to vector<2x8x16xbf16>
    %c1 = arith.constant 1 : index
    %c0_11 = arith.constant 0 : index
    %c0_12 = arith.constant 0 : index
    %18 = vector.load %arg4[%c1, %c0_11, %c0_12] : memref<4x64x16xbf16, #tpu.memory_space<vmem>>, vector<1x64x16xbf16>
    %19 = vector.shape_cast %18 : vector<1x64x16xbf16> to vector<64x16xbf16>
    %cst_13 = arith.constant dense<0.000000e+00> : vector<16x16xf32>
    %20 = tpu.matmul %8, %19, %cst_13 {dimension_numbers = #tpu.dot_dimension_numbers<[1], [0], [0], [1], [0, 0, 1, 1], [], []>} : vector<16x64xbf16>, vector<64x16xbf16>, vector<16x16xf32> -> vector<16x16xf32>
    %c1_14 = arith.constant 1 : index
    %c0_15 = arith.constant 0 : index
    %c0_16 = arith.constant 0 : index
    %21 = vector.load %arg5[%c1_14, %c0_15, %c0_16] : memref<4x1x16xf32, #tpu.memory_space<vmem>>, vector<1x1x16xf32>
    %22 = vector.shape_cast %21 : vector<1x1x16xf32> to vector<1x16xf32>
    %23 = vector.broadcast %22 : vector<1x16xf32> to vector<16x16xf32>
    %24 = arith.addf %20, %23 : vector<16x16xf32>
    %25 = vector.shape_cast %24 : vector<16x16xf32> to vector<2x8x16xf32>
    %26 = arith.truncf %25 : vector<2x8x16xf32> to vector<2x8x16xbf16>
    %c2 = arith.constant 2 : index
    %c0_17 = arith.constant 0 : index
    %c0_18 = arith.constant 0 : index
    %27 = vector.load %arg4[%c2, %c0_17, %c0_18] : memref<4x64x16xbf16, #tpu.memory_space<vmem>>, vector<1x64x16xbf16>
    %28 = vector.shape_cast %27 : vector<1x64x16xbf16> to vector<64x16xbf16>
    %cst_19 = arith.constant dense<0.000000e+00> : vector<16x16xf32>
    %29 = tpu.matmul %8, %28, %cst_19 {dimension_numbers = #tpu.dot_dimension_numbers<[1], [0], [0], [1], [0, 0, 1, 1], [], []>} : vector<16x64xbf16>, vector<64x16xbf16>, vector<16x16xf32> -> vector<16x16xf32>
    %c2_20 = arith.constant 2 : index
    %c0_21 = arith.constant 0 : index
    %c0_22 = arith.constant 0 : index
    %30 = vector.load %arg5[%c2_20, %c0_21, %c0_22] : memref<4x1x16xf32, #tpu.memory_space<vmem>>, vector<1x1x16xf32>
    %31 = vector.shape_cast %30 : vector<1x1x16xf32> to vector<1x16xf32>
    %32 = vector.broadcast %31 : vector<1x16xf32> to vector<16x16xf32>
    %33 = arith.addf %29, %32 : vector<16x16xf32>
    %34 = vector.shape_cast %33 : vector<16x16xf32> to vector<2x8x16xf32>
    %35 = arith.truncf %34 : vector<2x8x16xf32> to vector<2x8x16xbf16>
    %c3 = arith.constant 3 : index
    %c0_23 = arith.constant 0 : index
    %c0_24 = arith.constant 0 : index
    %36 = vector.load %arg4[%c3, %c0_23, %c0_24] : memref<4x64x16xbf16, #tpu.memory_space<vmem>>, vector<1x64x16xbf16>
    %37 = vector.shape_cast %36 : vector<1x64x16xbf16> to vector<64x16xbf16>
    %cst_25 = arith.constant dense<0.000000e+00> : vector<16x16xf32>
    %38 = tpu.matmul %8, %37, %cst_25 {dimension_numbers = #tpu.dot_dimension_numbers<[1], [0], [0], [1], [0, 0, 1, 1], [], []>} : vector<16x64xbf16>, vector<64x16xbf16>, vector<16x16xf32> -> vector<16x16xf32>
    %c3_26 = arith.constant 3 : index
    %c0_27 = arith.constant 0 : index
    %c0_28 = arith.constant 0 : index
    %39 = vector.load %arg5[%c3_26, %c0_27, %c0_28] : memref<4x1x16xf32, #tpu.memory_space<vmem>>, vector<1x1x16xf32>
    %40 = vector.shape_cast %39 : vector<1x1x16xf32> to vector<1x16xf32>
    %41 = vector.broadcast %40 : vector<1x16xf32> to vector<16x16xf32>
    %42 = arith.addf %38, %41 : vector<16x16xf32>
    %43 = vector.shape_cast %42 : vector<16x16xf32> to vector<2x8x16xf32>
    %44 = arith.truncf %43 : vector<2x8x16xf32> to vector<2x8x16xbf16>
    %45 = tpu.concatenate %17, %26, %35, %44 in 0 : vector<2x8x16xbf16>, vector<2x8x16xbf16>, vector<2x8x16xbf16>, vector<2x8x16xbf16> -> vector<8x8x16xbf16>
    %c0_29 = arith.constant 0 : index
    %c0_30 = arith.constant 0 : index
    %c0_31 = arith.constant 0 : index
    %46 = vector.load %arg6[%c0_29, %c0_30, %c0_31] : memref<4x64x16xbf16, #tpu.memory_space<vmem>>, vector<1x64x16xbf16>
    %47 = vector.shape_cast %46 : vector<1x64x16xbf16> to vector<64x16xbf16>
    %cst_32 = arith.constant dense<0.000000e+00> : vector<16x16xf32>
    %48 = tpu.matmul %8, %47, %cst_32 {dimension_numbers = #tpu.dot_dimension_numbers<[1], [0], [0], [1], [0, 0, 1, 1], [], []>} : vector<16x64xbf16>, vector<64x16xbf16>, vector<16x16xf32> -> vector<16x16xf32>
    %c0_33 = arith.constant 0 : index
    %c0_34 = arith.constant 0 : index
    %c0_35 = arith.constant 0 : index
    %49 = vector.load %arg7[%c0_33, %c0_34, %c0_35] : memref<4x1x16xf32, #tpu.memory_space<vmem>>, vector<1x1x16xf32>
    %50 = vector.shape_cast %49 : vector<1x1x16xf32> to vector<1x16xf32>
    %51 = vector.broadcast %50 : vector<1x16xf32> to vector<16x16xf32>
    %52 = arith.addf %48, %51 : vector<16x16xf32>
    %53 = vector.shape_cast %52 : vector<16x16xf32> to vector<2x8x16xf32>
    %54 = arith.truncf %53 : vector<2x8x16xf32> to vector<2x8x16xbf16>
    %c1_36 = arith.constant 1 : index
    %c0_37 = arith.constant 0 : index
    %c0_38 = arith.constant 0 : index
    %55 = vector.load %arg6[%c1_36, %c0_37, %c0_38] : memref<4x64x16xbf16, #tpu.memory_space<vmem>>, vector<1x64x16xbf16>
    %56 = vector.shape_cast %55 : vector<1x64x16xbf16> to vector<64x16xbf16>
    %cst_39 = arith.constant dense<0.000000e+00> : vector<16x16xf32>
    %57 = tpu.matmul %8, %56, %cst_39 {dimension_numbers = #tpu.dot_dimension_numbers<[1], [0], [0], [1], [0, 0, 1, 1], [], []>} : vector<16x64xbf16>, vector<64x16xbf16>, vector<16x16xf32> -> vector<16x16xf32>
    %c1_40 = arith.constant 1 : index
    %c0_41 = arith.constant 0 : index
    %c0_42 = arith.constant 0 : index
    %58 = vector.load %arg7[%c1_40, %c0_41, %c0_42] : memref<4x1x16xf32, #tpu.memory_space<vmem>>, vector<1x1x16xf32>
    %59 = vector.shape_cast %58 : vector<1x1x16xf32> to vector<1x16xf32>
    %60 = vector.broadcast %59 : vector<1x16xf32> to vector<16x16xf32>
    %61 = arith.addf %57, %60 : vector<16x16xf32>
    %62 = vector.shape_cast %61 : vector<16x16xf32> to vector<2x8x16xf32>
    %63 = arith.truncf %62 : vector<2x8x16xf32> to vector<2x8x16xbf16>
    %c2_43 = arith.constant 2 : index
    %c0_44 = arith.constant 0 : index
    %c0_45 = arith.constant 0 : index
    %64 = vector.load %arg6[%c2_43, %c0_44, %c0_45] : memref<4x64x16xbf16, #tpu.memory_space<vmem>>, vector<1x64x16xbf16>
    %65 = vector.shape_cast %64 : vector<1x64x16xbf16> to vector<64x16xbf16>
    %cst_46 = arith.constant dense<0.000000e+00> : vector<16x16xf32>
    %66 = tpu.matmul %8, %65, %cst_46 {dimension_numbers = #tpu.dot_dimension_numbers<[1], [0], [0], [1], [0, 0, 1, 1], [], []>} : vector<16x64xbf16>, vector<64x16xbf16>, vector<16x16xf32> -> vector<16x16xf32>
    %c2_47 = arith.constant 2 : index
    %c0_48 = arith.constant 0 : index
    %c0_49 = arith.constant 0 : index
    %67 = vector.load %arg7[%c2_47, %c0_48, %c0_49] : memref<4x1x16xf32, #tpu.memory_space<vmem>>, vector<1x1x16xf32>
    %68 = vector.shape_cast %67 : vector<1x1x16xf32> to vector<1x16xf32>
    %69 = vector.broadcast %68 : vector<1x16xf32> to vector<16x16xf32>
    %70 = arith.addf %66, %69 : vector<16x16xf32>
    %71 = vector.shape_cast %70 : vector<16x16xf32> to vector<2x8x16xf32>
    %72 = arith.truncf %71 : vector<2x8x16xf32> to vector<2x8x16xbf16>
    %c3_50 = arith.constant 3 : index
    %c0_51 = arith.constant 0 : index
    %c0_52 = arith.constant 0 : index
    %73 = vector.load %arg6[%c3_50, %c0_51, %c0_52] : memref<4x64x16xbf16, #tpu.memory_space<vmem>>, vector<1x64x16xbf16>
    %74 = vector.shape_cast %73 : vector<1x64x16xbf16> to vector<64x16xbf16>
    %cst_53 = arith.constant dense<0.000000e+00> : vector<16x16xf32>
    %75 = tpu.matmul %8, %74, %cst_53 {dimension_numbers = #tpu.dot_dimension_numbers<[1], [0], [0], [1], [0, 0, 1, 1], [], []>} : vector<16x64xbf16>, vector<64x16xbf16>, vector<16x16xf32> -> vector<16x16xf32>
    %c3_54 = arith.constant 3 : index
    %c0_55 = arith.constant 0 : index
    %c0_56 = arith.constant 0 : index
    %76 = vector.load %arg7[%c3_54, %c0_55, %c0_56] : memref<4x1x16xf32, #tpu.memory_space<vmem>>, vector<1x1x16xf32>
    %77 = vector.shape_cast %76 : vector<1x1x16xf32> to vector<1x16xf32>
    %78 = vector.broadcast %77 : vector<1x16xf32> to vector<16x16xf32>
    %79 = arith.addf %75, %78 : vector<16x16xf32>
    %80 = vector.shape_cast %79 : vector<16x16xf32> to vector<2x8x16xf32>
    %81 = arith.truncf %80 : vector<2x8x16xf32> to vector<2x8x16xbf16>
    %82 = tpu.concatenate %54, %63, %72, %81 in 0 : vector<2x8x16xbf16>, vector<2x8x16xbf16>, vector<2x8x16xbf16>, vector<2x8x16xbf16> -> vector<8x8x16xbf16>
    %c0_57 = arith.constant 0 : index
    %c0_58 = arith.constant 0 : index
    %c0_59 = arith.constant 0 : index
    %83 = vector.load %arg8[%c0_57, %c0_58, %c0_59] : memref<4x64x16xbf16, #tpu.memory_space<vmem>>, vector<1x64x16xbf16>
    %84 = vector.shape_cast %83 : vector<1x64x16xbf16> to vector<64x16xbf16>
    %cst_60 = arith.constant dense<0.000000e+00> : vector<16x16xf32>
    %85 = tpu.matmul %8, %84, %cst_60 {dimension_numbers = #tpu.dot_dimension_numbers<[1], [0], [0], [1], [0, 0, 1, 1], [], []>} : vector<16x64xbf16>, vector<64x16xbf16>, vector<16x16xf32> -> vector<16x16xf32>
    %c0_61 = arith.constant 0 : index
    %c0_62 = arith.constant 0 : index
    %c0_63 = arith.constant 0 : index
    %86 = vector.load %arg9[%c0_61, %c0_62, %c0_63] : memref<4x1x16xf32, #tpu.memory_space<vmem>>, vector<1x1x16xf32>
    %87 = vector.shape_cast %86 : vector<1x1x16xf32> to vector<1x16xf32>
    %88 = vector.broadcast %87 : vector<1x16xf32> to vector<16x16xf32>
    %89 = arith.addf %85, %88 : vector<16x16xf32>
    %90 = vector.shape_cast %89 : vector<16x16xf32> to vector<2x8x16xf32>
    %91 = arith.truncf %90 : vector<2x8x16xf32> to vector<2x8x16xbf16>
    %c1_64 = arith.constant 1 : index
    %c0_65 = arith.constant 0 : index
    %c0_66 = arith.constant 0 : index
    %92 = vector.load %arg8[%c1_64, %c0_65, %c0_66] : memref<4x64x16xbf16, #tpu.memory_space<vmem>>, vector<1x64x16xbf16>
    %93 = vector.shape_cast %92 : vector<1x64x16xbf16> to vector<64x16xbf16>
    %cst_67 = arith.constant dense<0.000000e+00> : vector<16x16xf32>
    %94 = tpu.matmul %8, %93, %cst_67 {dimension_numbers = #tpu.dot_dimension_numbers<[1], [0], [0], [1], [0, 0, 1, 1], [], []>} : vector<16x64xbf16>, vector<64x16xbf16>, vector<16x16xf32> -> vector<16x16xf32>
    %c1_68 = arith.constant 1 : index
    %c0_69 = arith.constant 0 : index
    %c0_70 = arith.constant 0 : index
    %95 = vector.load %arg9[%c1_68, %c0_69, %c0_70] : memref<4x1x16xf32, #tpu.memory_space<vmem>>, vector<1x1x16xf32>
    %96 = vector.shape_cast %95 : vector<1x1x16xf32> to vector<1x16xf32>
    %97 = vector.broadcast %96 : vector<1x16xf32> to vector<16x16xf32>
    %98 = arith.addf %94, %97 : vector<16x16xf32>
    %99 = vector.shape_cast %98 : vector<16x16xf32> to vector<2x8x16xf32>
    %100 = arith.truncf %99 : vector<2x8x16xf32> to vector<2x8x16xbf16>
    %c2_71 = arith.constant 2 : index
    %c0_72 = arith.constant 0 : index
    %c0_73 = arith.constant 0 : index
    %101 = vector.load %arg8[%c2_71, %c0_72, %c0_73] : memref<4x64x16xbf16, #tpu.memory_space<vmem>>, vector<1x64x16xbf16>
    %102 = vector.shape_cast %101 : vector<1x64x16xbf16> to vector<64x16xbf16>
    %cst_74 = arith.constant dense<0.000000e+00> : vector<16x16xf32>
    %103 = tpu.matmul %8, %102, %cst_74 {dimension_numbers = #tpu.dot_dimension_numbers<[1], [0], [0], [1], [0, 0, 1, 1], [], []>} : vector<16x64xbf16>, vector<64x16xbf16>, vector<16x16xf32> -> vector<16x16xf32>
    %c2_75 = arith.constant 2 : index
    %c0_76 = arith.constant 0 : index
    %c0_77 = arith.constant 0 : index
    %104 = vector.load %arg9[%c2_75, %c0_76, %c0_77] : memref<4x1x16xf32, #tpu.memory_space<vmem>>, vector<1x1x16xf32>
    %105 = vector.shape_cast %104 : vector<1x1x16xf32> to vector<1x16xf32>
    %106 = vector.broadcast %105 : vector<1x16xf32> to vector<16x16xf32>
    %107 = arith.addf %103, %106 : vector<16x16xf32>
    %108 = vector.shape_cast %107 : vector<16x16xf32> to vector<2x8x16xf32>
    %109 = arith.truncf %108 : vector<2x8x16xf32> to vector<2x8x16xbf16>
    %c3_78 = arith.constant 3 : index
    %c0_79 = arith.constant 0 : index
    %c0_80 = arith.constant 0 : index
    %110 = vector.load %arg8[%c3_78, %c0_79, %c0_80] : memref<4x64x16xbf16, #tpu.memory_space<vmem>>, vector<1x64x16xbf16>
    %111 = vector.shape_cast %110 : vector<1x64x16xbf16> to vector<64x16xbf16>
    %cst_81 = arith.constant dense<0.000000e+00> : vector<16x16xf32>
    %112 = tpu.matmul %8, %111, %cst_81 {dimension_numbers = #tpu.dot_dimension_numbers<[1], [0], [0], [1], [0, 0, 1, 1], [], []>} : vector<16x64xbf16>, vector<64x16xbf16>, vector<16x16xf32> -> vector<16x16xf32>
    %c3_82 = arith.constant 3 : index
    %c0_83 = arith.constant 0 : index
    %c0_84 = arith.constant 0 : index
    %113 = vector.load %arg9[%c3_82, %c0_83, %c0_84] : memref<4x1x16xf32, #tpu.memory_space<vmem>>, vector<1x1x16xf32>
    %114 = vector.shape_cast %113 : vector<1x1x16xf32> to vector<1x16xf32>
    %115 = vector.broadcast %114 : vector<1x16xf32> to vector<16x16xf32>
    %116 = arith.addf %112, %115 : vector<16x16xf32>
    %117 = vector.shape_cast %116 : vector<16x16xf32> to vector<2x8x16xf32>
    %118 = arith.truncf %117 : vector<2x8x16xf32> to vector<2x8x16xbf16>
    %119 = tpu.concatenate %91, %100, %109, %118 in 0 : vector<2x8x16xbf16>, vector<2x8x16xbf16>, vector<2x8x16xbf16>, vector<2x8x16xbf16> -> vector<8x8x16xbf16>
    "tpu.trace_start"() <{level = 10 : i32, message = "nqd,nkd->nqk"}> : () -> ()
    %cst_85 = arith.constant dense<0.000000e+00> : vector<8x8x8xf32>
    %120 = tpu.matmul %45, %82, %cst_85 {dimension_numbers = #tpu.dot_dimension_numbers<[2], [2], [1], [1], [0, 0, 0, 1, 1, 1], [0], [0]>} : vector<8x8x16xbf16>, vector<8x8x16xbf16>, vector<8x8x8xf32> -> vector<8x8x8xf32>
    "tpu.trace_stop"() : () -> ()
    %cst_86 = arith.constant 2.500000e-01 : f32
    %121 = vector.broadcast %cst_86 : f32 to vector<8x8x8xf32>
    %122 = arith.mulf %120, %121 : vector<8x8x8xf32>
    %cst_87 = arith.constant dense<0xFF800000> : vector<8x8xf32>
    %123 = vector.multi_reduction <maximumf>, %122, %cst_87 [2] : vector<8x8x8xf32> to vector<8x8xf32>
    %124 = vector.shape_cast %123 : vector<8x8xf32> to vector<8x8x1xf32>
    %125 = vector.broadcast %124 : vector<8x8x1xf32> to vector<8x8x8xf32>
    %126 = arith.subf %122, %125 : vector<8x8x8xf32>
    %127 = math.exp %126 : vector<8x8x8xf32>
    %cst_88 = arith.constant dense<0.000000e+00> : vector<8x8xf32>
    %128 = vector.multi_reduction <add>, %127, %cst_88 [2] : vector<8x8x8xf32> to vector<8x8xf32>
    %129 = vector.shape_cast %128 : vector<8x8xf32> to vector<8x8x1xf32>
    %130 = tpu.reciprocal %129 {approx = true} : vector<8x8x1xf32> -> vector<8x8x1xf32>
    %131 = vector.broadcast %130 : vector<8x8x1xf32> to vector<8x8x8xf32>
    %132 = arith.mulf %127, %131 : vector<8x8x8xf32>
    %133 = arith.truncf %132 : vector<8x8x8xf32> to vector<8x8x8xbf16>
    "tpu.trace_start"() <{level = 10 : i32, message = "nqk,nkd->nqd"}> : () -> ()
    %cst_89 = arith.constant dense<0.000000e+00> : vector<8x8x16xf32>
    %134 = tpu.matmul %133, %119, %cst_89 {dimension_numbers = #tpu.dot_dimension_numbers<[2], [1], [1], [2], [0, 0, 0, 1, 1, 2], [0], [0]>} : vector<8x8x8xbf16>, vector<8x8x16xbf16>, vector<8x8x16xf32> -> vector<8x8x16xf32>
    "tpu.trace_stop"() : () -> ()
    %135 = vector.extract_strided_slice %134 {offsets = [0, 0, 0], sizes = [2, 8, 16], strides = [1, 1, 1]} : vector<8x8x16xf32> to vector<2x8x16xf32>
    %136 = vector.extract_strided_slice %134 {offsets = [2, 0, 0], sizes = [2, 8, 16], strides = [1, 1, 1]} : vector<8x8x16xf32> to vector<2x8x16xf32>
    %137 = vector.extract_strided_slice %134 {offsets = [4, 0, 0], sizes = [2, 8, 16], strides = [1, 1, 1]} : vector<8x8x16xf32> to vector<2x8x16xf32>
    %138 = vector.extract_strided_slice %134 {offsets = [6, 0, 0], sizes = [2, 8, 16], strides = [1, 1, 1]} : vector<8x8x16xf32> to vector<2x8x16xf32>
    %139 = tpu.concatenate %135, %136, %137, %138 in 2 : vector<2x8x16xf32>, vector<2x8x16xf32>, vector<2x8x16xf32>, vector<2x8x16xf32> -> vector<2x8x64xf32>
    %140 = vector.shape_cast %139 : vector<2x8x64xf32> to vector<16x64xf32>
    %141 = arith.truncf %140 : vector<16x64xf32> to vector<16x64xbf16>
    %c0_90 = arith.constant 0 : index
    %c0_91 = arith.constant 0 : index
    %142 = vector.load %arg10[%c0_90, %c0_91] : memref<64x64xbf16, #tpu.memory_space<vmem>>, vector<64x64xbf16>
    %cst_92 = arith.constant dense<0.000000e+00> : vector<16x64xf32>
    %143 = tpu.matmul %141, %142, %cst_92 {dimension_numbers = #tpu.dot_dimension_numbers<[1], [0], [0], [1], [0, 0, 1, 1], [], []>} : vector<16x64xbf16>, vector<64x64xbf16>, vector<16x64xf32> -> vector<16x64xf32>
    %c0_93 = arith.constant 0 : index
    %c0_94 = arith.constant 0 : index
    %144 = vector.load %arg11[%c0_93, %c0_94] : memref<1x64xf32, #tpu.memory_space<vmem>>, vector<1x64xf32>
    %145 = vector.broadcast %144 : vector<1x64xf32> to vector<16x64xf32>
    %146 = arith.addf %143, %145 : vector<16x64xf32>
    %147 = arith.addf %7, %146 : vector<16x64xf32>
    %c0_95 = arith.constant 0 : index
    %c0_96 = arith.constant 0 : index
    %148 = vector.load %arg12[%c0_95, %c0_96] : memref<1x64xf32, #tpu.memory_space<vmem>>, vector<1x64xf32>
    %c0_97 = arith.constant 0 : index
    %c0_98 = arith.constant 0 : index
    %149 = vector.load %arg13[%c0_97, %c0_98] : memref<1x64xf32, #tpu.memory_space<vmem>>, vector<1x64xf32>
    %cst_99 = arith.constant dense<0.000000e+00> : vector<16xf32>
    %150 = vector.multi_reduction <add>, %147, %cst_99 [1] : vector<16x64xf32> to vector<16xf32>
    %151 = vector.shape_cast %150 : vector<16xf32> to vector<16x1xf32>
    %cst_100 = arith.constant 6.400000e+01 : f32
    %152 = vector.broadcast %cst_100 : f32 to vector<16x1xf32>
    %153 = arith.divf %151, %152 : vector<16x1xf32>
    %154 = vector.broadcast %153 : vector<16x1xf32> to vector<16x64xf32>
    %155 = arith.subf %147, %154 : vector<16x64xf32>
    %156 = arith.mulf %155, %155 : vector<16x64xf32>
    %cst_101 = arith.constant dense<0.000000e+00> : vector<16xf32>
    %157 = vector.multi_reduction <add>, %156, %cst_101 [1] : vector<16x64xf32> to vector<16xf32>
    %158 = vector.shape_cast %157 : vector<16xf32> to vector<16x1xf32>
    %cst_102 = arith.constant 6.400000e+01 : f32
    %159 = vector.broadcast %cst_102 : f32 to vector<16x1xf32>
    %160 = arith.divf %158, %159 : vector<16x1xf32>
    %161 = vector.broadcast %153 : vector<16x1xf32> to vector<16x64xf32>
    %162 = arith.subf %147, %161 : vector<16x64xf32>
    %cst_103 = arith.constant 9.99999974E-6 : f32
    %163 = vector.broadcast %cst_103 : f32 to vector<16x1xf32>
    %164 = arith.addf %160, %163 : vector<16x1xf32>
    %165 = math.rsqrt %164 : vector<16x1xf32>
    %166 = vector.broadcast %165 : vector<16x1xf32> to vector<16x64xf32>
    %167 = arith.mulf %162, %166 : vector<16x64xf32>
    %168 = vector.broadcast %148 : vector<1x64xf32> to vector<16x64xf32>
    %169 = arith.mulf %167, %168 : vector<16x64xf32>
    %170 = vector.broadcast %149 : vector<1x64xf32> to vector<16x64xf32>
    %171 = arith.addf %169, %170 : vector<16x64xf32>
    %172 = arith.truncf %171 : vector<16x64xf32> to vector<16x64xbf16>
    %c0_104 = arith.constant 0 : index
    %c0_105 = arith.constant 0 : index
    %173 = vector.load %arg14[%c0_104, %c0_105] : memref<64x128xbf16, #tpu.memory_space<vmem>>, vector<64x128xbf16>
    %cst_106 = arith.constant dense<0.000000e+00> : vector<16x128xf32>
    %174 = tpu.matmul %172, %173, %cst_106 {dimension_numbers = #tpu.dot_dimension_numbers<[1], [0], [0], [1], [0, 0, 1, 1], [], []>} : vector<16x64xbf16>, vector<64x128xbf16>, vector<16x128xf32> -> vector<16x128xf32>
    %c0_107 = arith.constant 0 : index
    %c0_108 = arith.constant 0 : index
    %175 = vector.load %arg15[%c0_107, %c0_108] : memref<1x128xf32, #tpu.memory_space<vmem>>, vector<1x128xf32>
    %176 = vector.broadcast %175 : vector<1x128xf32> to vector<16x128xf32>
    %177 = arith.addf %174, %176 : vector<16x128xf32>
    %cst_109 = arith.constant 0.000000e+00 : f32
    %178 = vector.broadcast %cst_109 : f32 to vector<16x128xf32>
    %179 = arith.maximumf %177, %178 : vector<16x128xf32>
    %180 = arith.truncf %179 : vector<16x128xf32> to vector<16x128xbf16>
    %c0_110 = arith.constant 0 : index
    %c0_111 = arith.constant 0 : index
    %181 = vector.load %arg16[%c0_110, %c0_111] : memref<128x64xbf16, #tpu.memory_space<vmem>>, vector<128x64xbf16>
    %cst_112 = arith.constant dense<0.000000e+00> : vector<16x64xf32>
    %182 = tpu.matmul %180, %181, %cst_112 {dimension_numbers = #tpu.dot_dimension_numbers<[1], [0], [0], [1], [0, 0, 1, 1], [], []>} : vector<16x128xbf16>, vector<128x64xbf16>, vector<16x64xf32> -> vector<16x64xf32>
    %c0_113 = arith.constant 0 : index
    %c0_114 = arith.constant 0 : index
    %183 = vector.load %arg17[%c0_113, %c0_114] : memref<1x64xf32, #tpu.memory_space<vmem>>, vector<1x64xf32>
    %184 = vector.broadcast %183 : vector<1x64xf32> to vector<16x64xf32>
    %185 = arith.addf %182, %184 : vector<16x64xf32>
    %186 = arith.addf %171, %185 : vector<16x64xf32>
    %c0_115 = arith.constant 0 : index
    %c0_116 = arith.constant 0 : index
    %187 = vector.load %arg18[%c0_115, %c0_116] : memref<1x64xf32, #tpu.memory_space<vmem>>, vector<1x64xf32>
    %c0_117 = arith.constant 0 : index
    %c0_118 = arith.constant 0 : index
    %188 = vector.load %arg19[%c0_117, %c0_118] : memref<1x64xf32, #tpu.memory_space<vmem>>, vector<1x64xf32>
    %cst_119 = arith.constant dense<0.000000e+00> : vector<16xf32>
    %189 = vector.multi_reduction <add>, %186, %cst_119 [1] : vector<16x64xf32> to vector<16xf32>
    %190 = vector.shape_cast %189 : vector<16xf32> to vector<16x1xf32>
    %cst_120 = arith.constant 6.400000e+01 : f32
    %191 = vector.broadcast %cst_120 : f32 to vector<16x1xf32>
    %192 = arith.divf %190, %191 : vector<16x1xf32>
    %193 = vector.broadcast %192 : vector<16x1xf32> to vector<16x64xf32>
    %194 = arith.subf %186, %193 : vector<16x64xf32>
    %195 = arith.mulf %194, %194 : vector<16x64xf32>
    %cst_121 = arith.constant dense<0.000000e+00> : vector<16xf32>
    %196 = vector.multi_reduction <add>, %195, %cst_121 [1] : vector<16x64xf32> to vector<16xf32>
    %197 = vector.shape_cast %196 : vector<16xf32> to vector<16x1xf32>
    %cst_122 = arith.constant 6.400000e+01 : f32
    %198 = vector.broadcast %cst_122 : f32 to vector<16x1xf32>
    %199 = arith.divf %197, %198 : vector<16x1xf32>
    %200 = vector.broadcast %192 : vector<16x1xf32> to vector<16x64xf32>
    %201 = arith.subf %186, %200 : vector<16x64xf32>
    %cst_123 = arith.constant 9.99999974E-6 : f32
    %202 = vector.broadcast %cst_123 : f32 to vector<16x1xf32>
    %203 = arith.addf %199, %202 : vector<16x1xf32>
    %204 = math.rsqrt %203 : vector<16x1xf32>
    %205 = vector.broadcast %204 : vector<16x1xf32> to vector<16x64xf32>
    %206 = arith.mulf %201, %205 : vector<16x64xf32>
    %207 = vector.broadcast %187 : vector<1x64xf32> to vector<16x64xf32>
    %208 = arith.mulf %206, %207 : vector<16x64xf32>
    %209 = vector.broadcast %188 : vector<1x64xf32> to vector<16x64xf32>
    %210 = arith.addf %208, %209 : vector<16x64xf32>
    %211 = arith.truncf %210 : vector<16x64xf32> to vector<16x64xbf16>
    %c0_124 = arith.constant 0 : index
    %c0_125 = arith.constant 0 : index
    %c0_126 = arith.constant 0 : index
    %212 = vector.load %arg20[%c0_124, %c0_125, %c0_126] : memref<4x64x16xbf16, #tpu.memory_space<vmem>>, vector<1x64x16xbf16>
    %213 = vector.shape_cast %212 : vector<1x64x16xbf16> to vector<64x16xbf16>
    %cst_127 = arith.constant dense<0.000000e+00> : vector<16x16xf32>
    %214 = tpu.matmul %211, %213, %cst_127 {dimension_numbers = #tpu.dot_dimension_numbers<[1], [0], [0], [1], [0, 0, 1, 1], [], []>} : vector<16x64xbf16>, vector<64x16xbf16>, vector<16x16xf32> -> vector<16x16xf32>
    %c0_128 = arith.constant 0 : index
    %c0_129 = arith.constant 0 : index
    %c0_130 = arith.constant 0 : index
    %215 = vector.load %arg21[%c0_128, %c0_129, %c0_130] : memref<4x1x16xf32, #tpu.memory_space<vmem>>, vector<1x1x16xf32>
    %216 = vector.shape_cast %215 : vector<1x1x16xf32> to vector<1x16xf32>
    %217 = vector.broadcast %216 : vector<1x16xf32> to vector<16x16xf32>
    %218 = arith.addf %214, %217 : vector<16x16xf32>
    %219 = vector.shape_cast %218 : vector<16x16xf32> to vector<2x8x16xf32>
    %220 = arith.truncf %219 : vector<2x8x16xf32> to vector<2x8x16xbf16>
    %c1_131 = arith.constant 1 : index
    %c0_132 = arith.constant 0 : index
    %c0_133 = arith.constant 0 : index
    %221 = vector.load %arg20[%c1_131, %c0_132, %c0_133] : memref<4x64x16xbf16, #tpu.memory_space<vmem>>, vector<1x64x16xbf16>
    %222 = vector.shape_cast %221 : vector<1x64x16xbf16> to vector<64x16xbf16>
    %cst_134 = arith.constant dense<0.000000e+00> : vector<16x16xf32>
    %223 = tpu.matmul %211, %222, %cst_134 {dimension_numbers = #tpu.dot_dimension_numbers<[1], [0], [0], [1], [0, 0, 1, 1], [], []>} : vector<16x64xbf16>, vector<64x16xbf16>, vector<16x16xf32> -> vector<16x16xf32>
    %c1_135 = arith.constant 1 : index
    %c0_136 = arith.constant 0 : index
    %c0_137 = arith.constant 0 : index
    %224 = vector.load %arg21[%c1_135, %c0_136, %c0_137] : memref<4x1x16xf32, #tpu.memory_space<vmem>>, vector<1x1x16xf32>
    %225 = vector.shape_cast %224 : vector<1x1x16xf32> to vector<1x16xf32>
    %226 = vector.broadcast %225 : vector<1x16xf32> to vector<16x16xf32>
    %227 = arith.addf %223, %226 : vector<16x16xf32>
    %228 = vector.shape_cast %227 : vector<16x16xf32> to vector<2x8x16xf32>
    %229 = arith.truncf %228 : vector<2x8x16xf32> to vector<2x8x16xbf16>
    %c2_138 = arith.constant 2 : index
    %c0_139 = arith.constant 0 : index
    %c0_140 = arith.constant 0 : index
    %230 = vector.load %arg20[%c2_138, %c0_139, %c0_140] : memref<4x64x16xbf16, #tpu.memory_space<vmem>>, vector<1x64x16xbf16>
    %231 = vector.shape_cast %230 : vector<1x64x16xbf16> to vector<64x16xbf16>
    %cst_141 = arith.constant dense<0.000000e+00> : vector<16x16xf32>
    %232 = tpu.matmul %211, %231, %cst_141 {dimension_numbers = #tpu.dot_dimension_numbers<[1], [0], [0], [1], [0, 0, 1, 1], [], []>} : vector<16x64xbf16>, vector<64x16xbf16>, vector<16x16xf32> -> vector<16x16xf32>
    %c2_142 = arith.constant 2 : index
    %c0_143 = arith.constant 0 : index
    %c0_144 = arith.constant 0 : index
    %233 = vector.load %arg21[%c2_142, %c0_143, %c0_144] : memref<4x1x16xf32, #tpu.memory_space<vmem>>, vector<1x1x16xf32>
    %234 = vector.shape_cast %233 : vector<1x1x16xf32> to vector<1x16xf32>
    %235 = vector.broadcast %234 : vector<1x16xf32> to vector<16x16xf32>
    %236 = arith.addf %232, %235 : vector<16x16xf32>
    %237 = vector.shape_cast %236 : vector<16x16xf32> to vector<2x8x16xf32>
    %238 = arith.truncf %237 : vector<2x8x16xf32> to vector<2x8x16xbf16>
    %c3_145 = arith.constant 3 : index
    %c0_146 = arith.constant 0 : index
    %c0_147 = arith.constant 0 : index
    %239 = vector.load %arg20[%c3_145, %c0_146, %c0_147] : memref<4x64x16xbf16, #tpu.memory_space<vmem>>, vector<1x64x16xbf16>
    %240 = vector.shape_cast %239 : vector<1x64x16xbf16> to vector<64x16xbf16>
    %cst_148 = arith.constant dense<0.000000e+00> : vector<16x16xf32>
    %241 = tpu.matmul %211, %240, %cst_148 {dimension_numbers = #tpu.dot_dimension_numbers<[1], [0], [0], [1], [0, 0, 1, 1], [], []>} : vector<16x64xbf16>, vector<64x16xbf16>, vector<16x16xf32> -> vector<16x16xf32>
    %c3_149 = arith.constant 3 : index
    %c0_150 = arith.constant 0 : index
    %c0_151 = arith.constant 0 : index
    %242 = vector.load %arg21[%c3_149, %c0_150, %c0_151] : memref<4x1x16xf32, #tpu.memory_space<vmem>>, vector<1x1x16xf32>
    %243 = vector.shape_cast %242 : vector<1x1x16xf32> to vector<1x16xf32>
    %244 = vector.broadcast %243 : vector<1x16xf32> to vector<16x16xf32>
    %245 = arith.addf %241, %244 : vector<16x16xf32>
    %246 = vector.shape_cast %245 : vector<16x16xf32> to vector<2x8x16xf32>
    %247 = arith.truncf %246 : vector<2x8x16xf32> to vector<2x8x16xbf16>
    %248 = tpu.concatenate %220, %229, %238, %247 in 0 : vector<2x8x16xbf16>, vector<2x8x16xbf16>, vector<2x8x16xbf16>, vector<2x8x16xbf16> -> vector<8x8x16xbf16>
    %c0_152 = arith.constant 0 : index
    %c0_153 = arith.constant 0 : index
    %c0_154 = arith.constant 0 : index
    %249 = vector.load %arg22[%c0_152, %c0_153, %c0_154] : memref<4x64x16xbf16, #tpu.memory_space<vmem>>, vector<1x64x16xbf16>
    %250 = vector.shape_cast %249 : vector<1x64x16xbf16> to vector<64x16xbf16>
    %cst_155 = arith.constant dense<0.000000e+00> : vector<16x16xf32>
    %251 = tpu.matmul %211, %250, %cst_155 {dimension_numbers = #tpu.dot_dimension_numbers<[1], [0], [0], [1], [0, 0, 1, 1], [], []>} : vector<16x64xbf16>, vector<64x16xbf16>, vector<16x16xf32> -> vector<16x16xf32>
    %c0_156 = arith.constant 0 : index
    %c0_157 = arith.constant 0 : index
    %c0_158 = arith.constant 0 : index
    %252 = vector.load %arg23[%c0_156, %c0_157, %c0_158] : memref<4x1x16xf32, #tpu.memory_space<vmem>>, vector<1x1x16xf32>
    %253 = vector.shape_cast %252 : vector<1x1x16xf32> to vector<1x16xf32>
    %254 = vector.broadcast %253 : vector<1x16xf32> to vector<16x16xf32>
    %255 = arith.addf %251, %254 : vector<16x16xf32>
    %256 = vector.shape_cast %255 : vector<16x16xf32> to vector<2x8x16xf32>
    %257 = arith.truncf %256 : vector<2x8x16xf32> to vector<2x8x16xbf16>
    %c1_159 = arith.constant 1 : index
    %c0_160 = arith.constant 0 : index
    %c0_161 = arith.constant 0 : index
    %258 = vector.load %arg22[%c1_159, %c0_160, %c0_161] : memref<4x64x16xbf16, #tpu.memory_space<vmem>>, vector<1x64x16xbf16>
    %259 = vector.shape_cast %258 : vector<1x64x16xbf16> to vector<64x16xbf16>
    %cst_162 = arith.constant dense<0.000000e+00> : vector<16x16xf32>
    %260 = tpu.matmul %211, %259, %cst_162 {dimension_numbers = #tpu.dot_dimension_numbers<[1], [0], [0], [1], [0, 0, 1, 1], [], []>} : vector<16x64xbf16>, vector<64x16xbf16>, vector<16x16xf32> -> vector<16x16xf32>
    %c1_163 = arith.constant 1 : index
    %c0_164 = arith.constant 0 : index
    %c0_165 = arith.constant 0 : index
    %261 = vector.load %arg23[%c1_163, %c0_164, %c0_165] : memref<4x1x16xf32, #tpu.memory_space<vmem>>, vector<1x1x16xf32>
    %262 = vector.shape_cast %261 : vector<1x1x16xf32> to vector<1x16xf32>
    %263 = vector.broadcast %262 : vector<1x16xf32> to vector<16x16xf32>
    %264 = arith.addf %260, %263 : vector<16x16xf32>
    %265 = vector.shape_cast %264 : vector<16x16xf32> to vector<2x8x16xf32>
    %266 = arith.truncf %265 : vector<2x8x16xf32> to vector<2x8x16xbf16>
    %c2_166 = arith.constant 2 : index
    %c0_167 = arith.constant 0 : index
    %c0_168 = arith.constant 0 : index
    %267 = vector.load %arg22[%c2_166, %c0_167, %c0_168] : memref<4x64x16xbf16, #tpu.memory_space<vmem>>, vector<1x64x16xbf16>
    %268 = vector.shape_cast %267 : vector<1x64x16xbf16> to vector<64x16xbf16>
    %cst_169 = arith.constant dense<0.000000e+00> : vector<16x16xf32>
    %269 = tpu.matmul %211, %268, %cst_169 {dimension_numbers = #tpu.dot_dimension_numbers<[1], [0], [0], [1], [0, 0, 1, 1], [], []>} : vector<16x64xbf16>, vector<64x16xbf16>, vector<16x16xf32> -> vector<16x16xf32>
    %c2_170 = arith.constant 2 : index
    %c0_171 = arith.constant 0 : index
    %c0_172 = arith.constant 0 : index
    %270 = vector.load %arg23[%c2_170, %c0_171, %c0_172] : memref<4x1x16xf32, #tpu.memory_space<vmem>>, vector<1x1x16xf32>
    %271 = vector.shape_cast %270 : vector<1x1x16xf32> to vector<1x16xf32>
    %272 = vector.broadcast %271 : vector<1x16xf32> to vector<16x16xf32>
    %273 = arith.addf %269, %272 : vector<16x16xf32>
    %274 = vector.shape_cast %273 : vector<16x16xf32> to vector<2x8x16xf32>
    %275 = arith.truncf %274 : vector<2x8x16xf32> to vector<2x8x16xbf16>
    %c3_173 = arith.constant 3 : index
    %c0_174 = arith.constant 0 : index
    %c0_175 = arith.constant 0 : index
    %276 = vector.load %arg22[%c3_173, %c0_174, %c0_175] : memref<4x64x16xbf16, #tpu.memory_space<vmem>>, vector<1x64x16xbf16>
    %277 = vector.shape_cast %276 : vector<1x64x16xbf16> to vector<64x16xbf16>
    %cst_176 = arith.constant dense<0.000000e+00> : vector<16x16xf32>
    %278 = tpu.matmul %211, %277, %cst_176 {dimension_numbers = #tpu.dot_dimension_numbers<[1], [0], [0], [1], [0, 0, 1, 1], [], []>} : vector<16x64xbf16>, vector<64x16xbf16>, vector<16x16xf32> -> vector<16x16xf32>
    %c3_177 = arith.constant 3 : index
    %c0_178 = arith.constant 0 : index
    %c0_179 = arith.constant 0 : index
    %279 = vector.load %arg23[%c3_177, %c0_178, %c0_179] : memref<4x1x16xf32, #tpu.memory_space<vmem>>, vector<1x1x16xf32>
    %280 = vector.shape_cast %279 : vector<1x1x16xf32> to vector<1x16xf32>
    %281 = vector.broadcast %280 : vector<1x16xf32> to vector<16x16xf32>
    %282 = arith.addf %278, %281 : vector<16x16xf32>
    %283 = vector.shape_cast %282 : vector<16x16xf32> to vector<2x8x16xf32>
    %284 = arith.truncf %283 : vector<2x8x16xf32> to vector<2x8x16xbf16>
    %285 = tpu.concatenate %257, %266, %275, %284 in 0 : vector<2x8x16xbf16>, vector<2x8x16xbf16>, vector<2x8x16xbf16>, vector<2x8x16xbf16> -> vector<8x8x16xbf16>
    %c0_180 = arith.constant 0 : index
    %c0_181 = arith.constant 0 : index
    %c0_182 = arith.constant 0 : index
    %286 = vector.load %arg24[%c0_180, %c0_181, %c0_182] : memref<4x64x16xbf16, #tpu.memory_space<vmem>>, vector<1x64x16xbf16>
    %287 = vector.shape_cast %286 : vector<1x64x16xbf16> to vector<64x16xbf16>
    %cst_183 = arith.constant dense<0.000000e+00> : vector<16x16xf32>
    %288 = tpu.matmul %211, %287, %cst_183 {dimension_numbers = #tpu.dot_dimension_numbers<[1], [0], [0], [1], [0, 0, 1, 1], [], []>} : vector<16x64xbf16>, vector<64x16xbf16>, vector<16x16xf32> -> vector<16x16xf32>
    %c0_184 = arith.constant 0 : index
    %c0_185 = arith.constant 0 : index
    %c0_186 = arith.constant 0 : index
    %289 = vector.load %arg25[%c0_184, %c0_185, %c0_186] : memref<4x1x16xf32, #tpu.memory_space<vmem>>, vector<1x1x16xf32>
    %290 = vector.shape_cast %289 : vector<1x1x16xf32> to vector<1x16xf32>
    %291 = vector.broadcast %290 : vector<1x16xf32> to vector<16x16xf32>
    %292 = arith.addf %288, %291 : vector<16x16xf32>
    %293 = vector.shape_cast %292 : vector<16x16xf32> to vector<2x8x16xf32>
    %294 = arith.truncf %293 : vector<2x8x16xf32> to vector<2x8x16xbf16>
    %c1_187 = arith.constant 1 : index
    %c0_188 = arith.constant 0 : index
    %c0_189 = arith.constant 0 : index
    %295 = vector.load %arg24[%c1_187, %c0_188, %c0_189] : memref<4x64x16xbf16, #tpu.memory_space<vmem>>, vector<1x64x16xbf16>
    %296 = vector.shape_cast %295 : vector<1x64x16xbf16> to vector<64x16xbf16>
    %cst_190 = arith.constant dense<0.000000e+00> : vector<16x16xf32>
    %297 = tpu.matmul %211, %296, %cst_190 {dimension_numbers = #tpu.dot_dimension_numbers<[1], [0], [0], [1], [0, 0, 1, 1], [], []>} : vector<16x64xbf16>, vector<64x16xbf16>, vector<16x16xf32> -> vector<16x16xf32>
    %c1_191 = arith.constant 1 : index
    %c0_192 = arith.constant 0 : index
    %c0_193 = arith.constant 0 : index
    %298 = vector.load %arg25[%c1_191, %c0_192, %c0_193] : memref<4x1x16xf32, #tpu.memory_space<vmem>>, vector<1x1x16xf32>
    %299 = vector.shape_cast %298 : vector<1x1x16xf32> to vector<1x16xf32>
    %300 = vector.broadcast %299 : vector<1x16xf32> to vector<16x16xf32>
    %301 = arith.addf %297, %300 : vector<16x16xf32>
    %302 = vector.shape_cast %301 : vector<16x16xf32> to vector<2x8x16xf32>
    %303 = arith.truncf %302 : vector<2x8x16xf32> to vector<2x8x16xbf16>
    %c2_194 = arith.constant 2 : index
    %c0_195 = arith.constant 0 : index
    %c0_196 = arith.constant 0 : index
    %304 = vector.load %arg24[%c2_194, %c0_195, %c0_196] : memref<4x64x16xbf16, #tpu.memory_space<vmem>>, vector<1x64x16xbf16>
    %305 = vector.shape_cast %304 : vector<1x64x16xbf16> to vector<64x16xbf16>
    %cst_197 = arith.constant dense<0.000000e+00> : vector<16x16xf32>
    %306 = tpu.matmul %211, %305, %cst_197 {dimension_numbers = #tpu.dot_dimension_numbers<[1], [0], [0], [1], [0, 0, 1, 1], [], []>} : vector<16x64xbf16>, vector<64x16xbf16>, vector<16x16xf32> -> vector<16x16xf32>
    %c2_198 = arith.constant 2 : index
    %c0_199 = arith.constant 0 : index
    %c0_200 = arith.constant 0 : index
    %307 = vector.load %arg25[%c2_198, %c0_199, %c0_200] : memref<4x1x16xf32, #tpu.memory_space<vmem>>, vector<1x1x16xf32>
    %308 = vector.shape_cast %307 : vector<1x1x16xf32> to vector<1x16xf32>
    %309 = vector.broadcast %308 : vector<1x16xf32> to vector<16x16xf32>
    %310 = arith.addf %306, %309 : vector<16x16xf32>
    %311 = vector.shape_cast %310 : vector<16x16xf32> to vector<2x8x16xf32>
    %312 = arith.truncf %311 : vector<2x8x16xf32> to vector<2x8x16xbf16>
    %c3_201 = arith.constant 3 : index
    %c0_202 = arith.constant 0 : index
    %c0_203 = arith.constant 0 : index
    %313 = vector.load %arg24[%c3_201, %c0_202, %c0_203] : memref<4x64x16xbf16, #tpu.memory_space<vmem>>, vector<1x64x16xbf16>
    %314 = vector.shape_cast %313 : vector<1x64x16xbf16> to vector<64x16xbf16>
    %cst_204 = arith.constant dense<0.000000e+00> : vector<16x16xf32>
    %315 = tpu.matmul %211, %314, %cst_204 {dimension_numbers = #tpu.dot_dimension_numbers<[1], [0], [0], [1], [0, 0, 1, 1], [], []>} : vector<16x64xbf16>, vector<64x16xbf16>, vector<16x16xf32> -> vector<16x16xf32>
    %c3_205 = arith.constant 3 : index
    %c0_206 = arith.constant 0 : index
    %c0_207 = arith.constant 0 : index
    %316 = vector.load %arg25[%c3_205, %c0_206, %c0_207] : memref<4x1x16xf32, #tpu.memory_space<vmem>>, vector<1x1x16xf32>
    %317 = vector.shape_cast %316 : vector<1x1x16xf32> to vector<1x16xf32>
    %318 = vector.broadcast %317 : vector<1x16xf32> to vector<16x16xf32>
    %319 = arith.addf %315, %318 : vector<16x16xf32>
    %320 = vector.shape_cast %319 : vector<16x16xf32> to vector<2x8x16xf32>
    %321 = arith.truncf %320 : vector<2x8x16xf32> to vector<2x8x16xbf16>
    %322 = tpu.concatenate %294, %303, %312, %321 in 0 : vector<2x8x16xbf16>, vector<2x8x16xbf16>, vector<2x8x16xbf16>, vector<2x8x16xbf16> -> vector<8x8x16xbf16>
    "tpu.trace_start"() <{level = 10 : i32, message = "nqd,nkd->nqk"}> : () -> ()
    %cst_208 = arith.constant dense<0.000000e+00> : vector<8x8x8xf32>
    %323 = tpu.matmul %248, %285, %cst_208 {dimension_numbers = #tpu.dot_dimension_numbers<[2], [2], [1], [1], [0, 0, 0, 1, 1, 1], [0], [0]>} : vector<8x8x16xbf16>, vector<8x8x16xbf16>, vector<8x8x8xf32> -> vector<8x8x8xf32>
    "tpu.trace_stop"() : () -> ()
    %cst_209 = arith.constant 2.500000e-01 : f32
    %324 = vector.broadcast %cst_209 : f32 to vector<8x8x8xf32>
    %325 = arith.mulf %323, %324 : vector<8x8x8xf32>
    %cst_210 = arith.constant dense<0xFF800000> : vector<8x8xf32>
    %326 = vector.multi_reduction <maximumf>, %325, %cst_210 [2] : vector<8x8x8xf32> to vector<8x8xf32>
    %327 = vector.shape_cast %326 : vector<8x8xf32> to vector<8x8x1xf32>
    %328 = vector.broadcast %327 : vector<8x8x1xf32> to vector<8x8x8xf32>
    %329 = arith.subf %325, %328 : vector<8x8x8xf32>
    %330 = math.exp %329 : vector<8x8x8xf32>
    %cst_211 = arith.constant dense<0.000000e+00> : vector<8x8xf32>
    %331 = vector.multi_reduction <add>, %330, %cst_211 [2] : vector<8x8x8xf32> to vector<8x8xf32>
    %332 = vector.shape_cast %331 : vector<8x8xf32> to vector<8x8x1xf32>
    %333 = tpu.reciprocal %332 {approx = true} : vector<8x8x1xf32> -> vector<8x8x1xf32>
    %334 = vector.broadcast %333 : vector<8x8x1xf32> to vector<8x8x8xf32>
    %335 = arith.mulf %330, %334 : vector<8x8x8xf32>
    %336 = arith.truncf %335 : vector<8x8x8xf32> to vector<8x8x8xbf16>
    "tpu.trace_start"() <{level = 10 : i32, message = "nqk,nkd->nqd"}> : () -> ()
    %cst_212 = arith.constant dense<0.000000e+00> : vector<8x8x16xf32>
    %337 = tpu.matmul %336, %322, %cst_212 {dimension_numbers = #tpu.dot_dimension_numbers<[2], [1], [1], [2], [0, 0, 0, 1, 1, 2], [0], [0]>} : vector<8x8x8xbf16>, vector<8x8x16xbf16>, vector<8x8x16xf32> -> vector<8x8x16xf32>
    "tpu.trace_stop"() : () -> ()
    %338 = vector.extract_strided_slice %337 {offsets = [0, 0, 0], sizes = [2, 8, 16], strides = [1, 1, 1]} : vector<8x8x16xf32> to vector<2x8x16xf32>
    %339 = vector.extract_strided_slice %337 {offsets = [2, 0, 0], sizes = [2, 8, 16], strides = [1, 1, 1]} : vector<8x8x16xf32> to vector<2x8x16xf32>
    %340 = vector.extract_strided_slice %337 {offsets = [4, 0, 0], sizes = [2, 8, 16], strides = [1, 1, 1]} : vector<8x8x16xf32> to vector<2x8x16xf32>
    %341 = vector.extract_strided_slice %337 {offsets = [6, 0, 0], sizes = [2, 8, 16], strides = [1, 1, 1]} : vector<8x8x16xf32> to vector<2x8x16xf32>
    %342 = tpu.concatenate %338, %339, %340, %341 in 2 : vector<2x8x16xf32>, vector<2x8x16xf32>, vector<2x8x16xf32>, vector<2x8x16xf32> -> vector<2x8x64xf32>
    %343 = vector.shape_cast %342 : vector<2x8x64xf32> to vector<16x64xf32>
    %344 = arith.truncf %343 : vector<16x64xf32> to vector<16x64xbf16>
    %c0_213 = arith.constant 0 : index
    %c0_214 = arith.constant 0 : index
    %345 = vector.load %arg26[%c0_213, %c0_214] : memref<64x64xbf16, #tpu.memory_space<vmem>>, vector<64x64xbf16>
    %cst_215 = arith.constant dense<0.000000e+00> : vector<16x64xf32>
    %346 = tpu.matmul %344, %345, %cst_215 {dimension_numbers = #tpu.dot_dimension_numbers<[1], [0], [0], [1], [0, 0, 1, 1], [], []>} : vector<16x64xbf16>, vector<64x64xbf16>, vector<16x64xf32> -> vector<16x64xf32>
    %c0_216 = arith.constant 0 : index
    %c0_217 = arith.constant 0 : index
    %347 = vector.load %arg27[%c0_216, %c0_217] : memref<1x64xf32, #tpu.memory_space<vmem>>, vector<1x64xf32>
    %348 = vector.broadcast %347 : vector<1x64xf32> to vector<16x64xf32>
    %349 = arith.addf %346, %348 : vector<16x64xf32>
    %350 = arith.addf %210, %349 : vector<16x64xf32>
    %c0_218 = arith.constant 0 : index
    %c0_219 = arith.constant 0 : index
    %351 = vector.load %arg28[%c0_218, %c0_219] : memref<1x64xf32, #tpu.memory_space<vmem>>, vector<1x64xf32>
    %c0_220 = arith.constant 0 : index
    %c0_221 = arith.constant 0 : index
    %352 = vector.load %arg29[%c0_220, %c0_221] : memref<1x64xf32, #tpu.memory_space<vmem>>, vector<1x64xf32>
    %cst_222 = arith.constant dense<0.000000e+00> : vector<16xf32>
    %353 = vector.multi_reduction <add>, %350, %cst_222 [1] : vector<16x64xf32> to vector<16xf32>
    %354 = vector.shape_cast %353 : vector<16xf32> to vector<16x1xf32>
    %cst_223 = arith.constant 6.400000e+01 : f32
    %355 = vector.broadcast %cst_223 : f32 to vector<16x1xf32>
    %356 = arith.divf %354, %355 : vector<16x1xf32>
    %357 = vector.broadcast %356 : vector<16x1xf32> to vector<16x64xf32>
    %358 = arith.subf %350, %357 : vector<16x64xf32>
    %359 = arith.mulf %358, %358 : vector<16x64xf32>
    %cst_224 = arith.constant dense<0.000000e+00> : vector<16xf32>
    %360 = vector.multi_reduction <add>, %359, %cst_224 [1] : vector<16x64xf32> to vector<16xf32>
    %361 = vector.shape_cast %360 : vector<16xf32> to vector<16x1xf32>
    %cst_225 = arith.constant 6.400000e+01 : f32
    %362 = vector.broadcast %cst_225 : f32 to vector<16x1xf32>
    %363 = arith.divf %361, %362 : vector<16x1xf32>
    %364 = vector.broadcast %356 : vector<16x1xf32> to vector<16x64xf32>
    %365 = arith.subf %350, %364 : vector<16x64xf32>
    %cst_226 = arith.constant 9.99999974E-6 : f32
    %366 = vector.broadcast %cst_226 : f32 to vector<16x1xf32>
    %367 = arith.addf %363, %366 : vector<16x1xf32>
    %368 = math.rsqrt %367 : vector<16x1xf32>
    %369 = vector.broadcast %368 : vector<16x1xf32> to vector<16x64xf32>
    %370 = arith.mulf %365, %369 : vector<16x64xf32>
    %371 = vector.broadcast %351 : vector<1x64xf32> to vector<16x64xf32>
    %372 = arith.mulf %370, %371 : vector<16x64xf32>
    %373 = vector.broadcast %352 : vector<1x64xf32> to vector<16x64xf32>
    %374 = arith.addf %372, %373 : vector<16x64xf32>
    %375 = arith.truncf %374 : vector<16x64xf32> to vector<16x64xbf16>
    %c0_227 = arith.constant 0 : index
    %c0_228 = arith.constant 0 : index
    %376 = vector.load %arg30[%c0_227, %c0_228] : memref<64x128xbf16, #tpu.memory_space<vmem>>, vector<64x128xbf16>
    %cst_229 = arith.constant dense<0.000000e+00> : vector<16x128xf32>
    %377 = tpu.matmul %375, %376, %cst_229 {dimension_numbers = #tpu.dot_dimension_numbers<[1], [0], [0], [1], [0, 0, 1, 1], [], []>} : vector<16x64xbf16>, vector<64x128xbf16>, vector<16x128xf32> -> vector<16x128xf32>
    %c0_230 = arith.constant 0 : index
    %c0_231 = arith.constant 0 : index
    %378 = vector.load %arg31[%c0_230, %c0_231] : memref<1x128xf32, #tpu.memory_space<vmem>>, vector<1x128xf32>
    %379 = vector.broadcast %378 : vector<1x128xf32> to vector<16x128xf32>
    %380 = arith.addf %377, %379 : vector<16x128xf32>
    %cst_232 = arith.constant 0.000000e+00 : f32
    %381 = vector.broadcast %cst_232 : f32 to vector<16x128xf32>
    %382 = arith.maximumf %380, %381 : vector<16x128xf32>
    %383 = arith.truncf %382 : vector<16x128xf32> to vector<16x128xbf16>
    %c0_233 = arith.constant 0 : index
    %c0_234 = arith.constant 0 : index
    %384 = vector.load %arg32[%c0_233, %c0_234] : memref<128x64xbf16, #tpu.memory_space<vmem>>, vector<128x64xbf16>
    %cst_235 = arith.constant dense<0.000000e+00> : vector<16x64xf32>
    %385 = tpu.matmul %383, %384, %cst_235 {dimension_numbers = #tpu.dot_dimension_numbers<[1], [0], [0], [1], [0, 0, 1, 1], [], []>} : vector<16x128xbf16>, vector<128x64xbf16>, vector<16x64xf32> -> vector<16x64xf32>
    %c0_236 = arith.constant 0 : index
    %c0_237 = arith.constant 0 : index
    %386 = vector.load %arg33[%c0_236, %c0_237] : memref<1x64xf32, #tpu.memory_space<vmem>>, vector<1x64xf32>
    %387 = vector.broadcast %386 : vector<1x64xf32> to vector<16x64xf32>
    %388 = arith.addf %385, %387 : vector<16x64xf32>
    %389 = arith.addf %374, %388 : vector<16x64xf32>
    %c0_238 = arith.constant 0 : index
    %c0_239 = arith.constant 0 : index
    %390 = vector.load %arg34[%c0_238, %c0_239] : memref<1x64xf32, #tpu.memory_space<vmem>>, vector<1x64xf32>
    %c0_240 = arith.constant 0 : index
    %c0_241 = arith.constant 0 : index
    %391 = vector.load %arg35[%c0_240, %c0_241] : memref<1x64xf32, #tpu.memory_space<vmem>>, vector<1x64xf32>
    %cst_242 = arith.constant dense<0.000000e+00> : vector<16xf32>
    %392 = vector.multi_reduction <add>, %389, %cst_242 [1] : vector<16x64xf32> to vector<16xf32>
    %393 = vector.shape_cast %392 : vector<16xf32> to vector<16x1xf32>
    %cst_243 = arith.constant 6.400000e+01 : f32
    %394 = vector.broadcast %cst_243 : f32 to vector<16x1xf32>
    %395 = arith.divf %393, %394 : vector<16x1xf32>
    %396 = vector.broadcast %395 : vector<16x1xf32> to vector<16x64xf32>
    %397 = arith.subf %389, %396 : vector<16x64xf32>
    %398 = arith.mulf %397, %397 : vector<16x64xf32>
    %cst_244 = arith.constant dense<0.000000e+00> : vector<16xf32>
    %399 = vector.multi_reduction <add>, %398, %cst_244 [1] : vector<16x64xf32> to vector<16xf32>
    %400 = vector.shape_cast %399 : vector<16xf32> to vector<16x1xf32>
    %cst_245 = arith.constant 6.400000e+01 : f32
    %401 = vector.broadcast %cst_245 : f32 to vector<16x1xf32>
    %402 = arith.divf %400, %401 : vector<16x1xf32>
    %403 = vector.broadcast %395 : vector<16x1xf32> to vector<16x64xf32>
    %404 = arith.subf %389, %403 : vector<16x64xf32>
    %cst_246 = arith.constant 9.99999974E-6 : f32
    %405 = vector.broadcast %cst_246 : f32 to vector<16x1xf32>
    %406 = arith.addf %402, %405 : vector<16x1xf32>
    %407 = math.rsqrt %406 : vector<16x1xf32>
    %408 = vector.broadcast %407 : vector<16x1xf32> to vector<16x64xf32>
    %409 = arith.mulf %404, %408 : vector<16x64xf32>
    %410 = vector.broadcast %390 : vector<1x64xf32> to vector<16x64xf32>
    %411 = arith.mulf %409, %410 : vector<16x64xf32>
    %412 = vector.broadcast %391 : vector<1x64xf32> to vector<16x64xf32>
    %413 = arith.addf %411, %412 : vector<16x64xf32>
    %414 = vector.shape_cast %413 : vector<16x64xf32> to vector<2x8x64xf32>
    %cst_247 = arith.constant dense<0.000000e+00> : vector<2x64xf32>
    %415 = vector.multi_reduction <add>, %414, %cst_247 [1] : vector<2x8x64xf32> to vector<2x64xf32>
    %cst_248 = arith.constant 8.000000e+00 : f32
    %416 = vector.broadcast %cst_248 : f32 to vector<2x64xf32>
    %417 = arith.divf %415, %416 : vector<2x64xf32>
    %c0_249 = arith.constant 0 : index
    %c0_250 = arith.constant 0 : index
    %418 = vector.load %arg3[%c0_249, %c0_250] : memref<2x16xf32, #tpu.memory_space<vmem>>, vector<2x16xf32>
    %419 = arith.truncf %418 : vector<2x16xf32> to vector<2x16xbf16>
    %c0_251 = arith.constant 0 : index
    %c0_252 = arith.constant 0 : index
    %420 = vector.load %arg36[%c0_251, %c0_252] : memref<16x32xbf16, #tpu.memory_space<vmem>>, vector<16x32xbf16>
    %cst_253 = arith.constant dense<0.000000e+00> : vector<2x32xf32>
    %421 = tpu.matmul %419, %420, %cst_253 {dimension_numbers = #tpu.dot_dimension_numbers<[1], [0], [0], [1], [0, 0, 1, 1], [], []>} : vector<2x16xbf16>, vector<16x32xbf16>, vector<2x32xf32> -> vector<2x32xf32>
    %c0_254 = arith.constant 0 : index
    %c0_255 = arith.constant 0 : index
    %422 = vector.load %arg37[%c0_254, %c0_255] : memref<1x32xf32, #tpu.memory_space<vmem>>, vector<1x32xf32>
    %423 = vector.broadcast %422 : vector<1x32xf32> to vector<2x32xf32>
    %424 = arith.addf %421, %423 : vector<2x32xf32>
    %c0_256 = arith.constant 0 : index
    %c0_257 = arith.constant 0 : index
    %425 = vector.load %arg40[%c0_256, %c0_257] : memref<1x32xf32, #tpu.memory_space<vmem>>, vector<1x32xf32>
    %426 = vector.broadcast %425 : vector<1x32xf32> to vector<2x32xf32>
    %427 = arith.subf %424, %426 : vector<2x32xf32>
    %c0_258 = arith.constant 0 : index
    %c0_259 = arith.constant 0 : index
    %428 = vector.load %arg41[%c0_258, %c0_259] : memref<1x32xf32, #tpu.memory_space<vmem>>, vector<1x32xf32>
    %cst_260 = arith.constant 9.99999974E-6 : f32
    %429 = vector.broadcast %cst_260 : f32 to vector<1x32xf32>
    %430 = arith.addf %428, %429 : vector<1x32xf32>
    %431 = math.rsqrt %430 : vector<1x32xf32>
    %432 = vector.broadcast %431 : vector<1x32xf32> to vector<2x32xf32>
    %433 = arith.mulf %427, %432 : vector<2x32xf32>
    %c0_261 = arith.constant 0 : index
    %c0_262 = arith.constant 0 : index
    %434 = vector.load %arg38[%c0_261, %c0_262] : memref<1x32xf32, #tpu.memory_space<vmem>>, vector<1x32xf32>
    %435 = vector.broadcast %434 : vector<1x32xf32> to vector<2x32xf32>
    %436 = arith.mulf %433, %435 : vector<2x32xf32>
    %c0_263 = arith.constant 0 : index
    %c0_264 = arith.constant 0 : index
    %437 = vector.load %arg39[%c0_263, %c0_264] : memref<1x32xf32, #tpu.memory_space<vmem>>, vector<1x32xf32>
    %438 = vector.broadcast %437 : vector<1x32xf32> to vector<2x32xf32>
    %439 = arith.addf %436, %438 : vector<2x32xf32>
    %cst_265 = arith.constant 0.000000e+00 : f32
    %440 = vector.broadcast %cst_265 : f32 to vector<2x32xf32>
    %441 = arith.maximumf %439, %440 : vector<2x32xf32>
    %442 = arith.truncf %441 : vector<2x32xf32> to vector<2x32xbf16>
    %c0_266 = arith.constant 0 : index
    %c0_267 = arith.constant 0 : index
    %443 = vector.load %arg42[%c0_266, %c0_267] : memref<32x32xbf16, #tpu.memory_space<vmem>>, vector<32x32xbf16>
    %cst_268 = arith.constant dense<0.000000e+00> : vector<2x32xf32>
    %444 = tpu.matmul %442, %443, %cst_268 {dimension_numbers = #tpu.dot_dimension_numbers<[1], [0], [0], [1], [0, 0, 1, 1], [], []>} : vector<2x32xbf16>, vector<32x32xbf16>, vector<2x32xf32> -> vector<2x32xf32>
    %c0_269 = arith.constant 0 : index
    %c0_270 = arith.constant 0 : index
    %445 = vector.load %arg43[%c0_269, %c0_270] : memref<1x32xf32, #tpu.memory_space<vmem>>, vector<1x32xf32>
    %446 = vector.broadcast %445 : vector<1x32xf32> to vector<2x32xf32>
    %447 = arith.addf %444, %446 : vector<2x32xf32>
    %448 = arith.truncf %417 : vector<2x64xf32> to vector<2x64xbf16>
    %c0_271 = arith.constant 0 : index
    %c0_272 = arith.constant 0 : index
    %449 = vector.load %arg44[%c0_271, %c0_272] : memref<64x64xbf16, #tpu.memory_space<vmem>>, vector<64x64xbf16>
    %cst_273 = arith.constant dense<0.000000e+00> : vector<2x64xf32>
    %450 = tpu.matmul %448, %449, %cst_273 {dimension_numbers = #tpu.dot_dimension_numbers<[1], [0], [0], [1], [0, 0, 1, 1], [], []>} : vector<2x64xbf16>, vector<64x64xbf16>, vector<2x64xf32> -> vector<2x64xf32>
    %451 = arith.truncf %447 : vector<2x32xf32> to vector<2x32xbf16>
    %c0_274 = arith.constant 0 : index
    %c0_275 = arith.constant 0 : index
    %452 = vector.load %arg45[%c0_274, %c0_275] : memref<32x64xbf16, #tpu.memory_space<vmem>>, vector<32x64xbf16>
    %cst_276 = arith.constant dense<0.000000e+00> : vector<2x64xf32>
    %453 = tpu.matmul %451, %452, %cst_276 {dimension_numbers = #tpu.dot_dimension_numbers<[1], [0], [0], [1], [0, 0, 1, 1], [], []>} : vector<2x32xbf16>, vector<32x64xbf16>, vector<2x64xf32> -> vector<2x64xf32>
    %454 = arith.addf %450, %453 : vector<2x64xf32>
    %c0_277 = arith.constant 0 : index
    %c0_278 = arith.constant 0 : index
    %455 = vector.load %arg46[%c0_277, %c0_278] : memref<1x64xf32, #tpu.memory_space<vmem>>, vector<1x64xf32>
    %456 = vector.broadcast %455 : vector<1x64xf32> to vector<2x64xf32>
    %457 = arith.addf %454, %456 : vector<2x64xf32>
    %cst_279 = arith.constant 0.000000e+00 : f32
    %458 = vector.broadcast %cst_279 : f32 to vector<2x64xf32>
    %459 = arith.maximumf %457, %458 : vector<2x64xf32>
    %460 = arith.truncf %459 : vector<2x64xf32> to vector<2x64xbf16>
    %c0_280 = arith.constant 0 : index
    %c0_281 = arith.constant 0 : index
    %461 = vector.load %arg47[%c0_280, %c0_281] : memref<64x32xbf16, #tpu.memory_space<vmem>>, vector<64x32xbf16>
    %cst_282 = arith.constant dense<0.000000e+00> : vector<2x32xf32>
    %462 = tpu.matmul %460, %461, %cst_282 {dimension_numbers = #tpu.dot_dimension_numbers<[1], [0], [0], [1], [0, 0, 1, 1], [], []>} : vector<2x64xbf16>, vector<64x32xbf16>, vector<2x32xf32> -> vector<2x32xf32>
    %c0_283 = arith.constant 0 : index
    %c0_284 = arith.constant 0 : index
    %463 = vector.load %arg48[%c0_283, %c0_284] : memref<1x32xf32, #tpu.memory_space<vmem>>, vector<1x32xf32>
    %464 = vector.broadcast %463 : vector<1x32xf32> to vector<2x32xf32>
    %465 = arith.addf %462, %464 : vector<2x32xf32>
    %cst_285 = arith.constant 0.000000e+00 : f32
    %466 = vector.broadcast %cst_285 : f32 to vector<2x32xf32>
    %467 = arith.maximumf %465, %466 : vector<2x32xf32>
    %468 = arith.truncf %467 : vector<2x32xf32> to vector<2x32xbf16>
    %c0_286 = arith.constant 0 : index
    %c0_287 = arith.constant 0 : index
    %469 = vector.load %arg49[%c0_286, %c0_287] : memref<32x8xbf16, #tpu.memory_space<vmem>>, vector<32x8xbf16>
    %cst_288 = arith.constant dense<0.000000e+00> : vector<2x8xf32>
    %470 = tpu.matmul %468, %469, %cst_288 {dimension_numbers = #tpu.dot_dimension_numbers<[1], [0], [0], [1], [0, 0, 1, 1], [], []>} : vector<2x32xbf16>, vector<32x8xbf16>, vector<2x8xf32> -> vector<2x8xf32>
    %c0_289 = arith.constant 0 : index
    %c0_290 = arith.constant 0 : index
    %471 = vector.load %arg50[%c0_289, %c0_290] : memref<1x8xf32, #tpu.memory_space<vmem>>, vector<1x8xf32>
    %472 = vector.broadcast %471 : vector<1x8xf32> to vector<2x8xf32>
    %473 = arith.addf %470, %472 : vector<2x8xf32>
    %c0_291 = arith.constant 0 : index
    %c0_292 = arith.constant 0 : index
    %474 = vector.load %arg51[%c0_291, %c0_292] : memref<2x8xf32, #tpu.memory_space<vmem>>, vector<2x8xf32>
    tpu.vector_store %arg51[%c0_291, %c0_292], %473 {strides = array<i32>} : memref<2x8xf32, #tpu.memory_space<vmem>>, vector<2x8xf32>,
    return
  }
  func.func @transform_0(%arg0: i32) -> (i32, i32, i32) {
    %c0_i32 = arith.constant 0 : i32
    %c0_i32_0 = arith.constant 0 : i32
    %c0_i32_1 = arith.constant 0 : i32
    return %arg0, %c0_i32, %c0_i32_0 : i32, i32, i32
  }
  func.func @transform_1(%arg0: i32) -> (i32, i32) {
    %c0_i32 = arith.constant 0 : i32
    %c0_i32_0 = arith.constant 0 : i32
    %c0_i32_1 = arith.constant 0 : i32
    return %c0_i32, %c0_i32_0 : i32, i32
  }
  func.func @transform_2(%arg0: i32) -> (i32, i32) {
    %c0_i32 = arith.constant 0 : i32
    %c0_i32_0 = arith.constant 0 : i32
    return %arg0, %c0_i32 : i32, i32
  }
  func.func @transform_3(%arg0: i32) -> (i32, i32, i32) {
    %c0_i32 = arith.constant 0 : i32
    %c0_i32_0 = arith.constant 0 : i32
    %c0_i32_1 = arith.constant 0 : i32
    %c0_i32_2 = arith.constant 0 : i32
    return %c0_i32, %c0_i32_0, %c0_i32_1 : i32, i32, i32
  }
  func.func @transform_4(%arg0: i32) -> (i32, i32, i32) {
    %c0_i32 = arith.constant 0 : i32
    %c0_i32_0 = arith.constant 0 : i32
    %c0_i32_1 = arith.constant 0 : i32
    %c0_i32_2 = arith.constant 0 : i32
    return %c0_i32, %c0_i32_0, %c0_i32_1 : i32, i32, i32
  }
  func.func @transform_5(%arg0: i32) -> (i32, i32, i32) {
    %c0_i32 = arith.constant 0 : i32
    %c0_i32_0 = arith.constant 0 : i32
    %c0_i32_1 = arith.constant 0 : i32
    %c0_i32_2 = arith.constant 0 : i32
    return %c0_i32, %c0_i32_0, %c0_i32_1 : i32, i32, i32
  }
  func.func @transform_6(%arg0: i32) -> (i32, i32, i32) {
    %c0_i32 = arith.constant 0 : i32
    %c0_i32_0 = arith.constant 0 : i32
    %c0_i32_1 = arith.constant 0 : i32
    %c0_i32_2 = arith.constant 0 : i32
    return %c0_i32, %c0_i32_0, %c0_i32_1 : i32, i32, i32
  }
  func.func @transform_7(%arg0: i32) -> (i32, i32, i32) {
    %c0_i32 = arith.constant 0 : i32
    %c0_i32_0 = arith.constant 0 : i32
    %c0_i32_1 = arith.constant 0 : i32
    %c0_i32_2 = arith.constant 0 : i32
    return %c0_i32, %c0_i32_0, %c0_i32_1 : i32, i32, i32
  }
  func.func @transform_8(%arg0: i32) -> (i32, i32, i32) {
    %c0_i32 = arith.constant 0 : i32
    %c0_i32_0 = arith.constant 0 : i32
    %c0_i32_1 = arith.constant 0 : i32
    %c0_i32_2 = arith.constant 0 : i32
    return %c0_i32, %c0_i32_0, %c0_i32_1 : i32, i32, i32
  }
  func.func @transform_9(%arg0: i32) -> (i32, i32) {
    %c0_i32 = arith.constant 0 : i32
    %c0_i32_0 = arith.constant 0 : i32
    %c0_i32_1 = arith.constant 0 : i32
    return %c0_i32, %c0_i32_0 : i32, i32
  }
  func.func @transform_10(%arg0: i32) -> (i32, i32) {
    %c0_i32 = arith.constant 0 : i32
    %c0_i32_0 = arith.constant 0 : i32
    %c0_i32_1 = arith.constant 0 : i32
    return %c0_i32, %c0_i32_0 : i32, i32
  }
  func.func @transform_11(%arg0: i32) -> (i32, i32) {
    %c0_i32 = arith.constant 0 : i32
    %c0_i32_0 = arith.constant 0 : i32
    %c0_i32_1 = arith.constant 0 : i32
    return %c0_i32, %c0_i32_0 : i32, i32
  }
  func.func @transform_12(%arg0: i32) -> (i32, i32) {
    %c0_i32 = arith.constant 0 : i32
    %c0_i32_0 = arith.constant 0 : i32
    %c0_i32_1 = arith.constant 0 : i32
    return %c0_i32, %c0_i32_0 : i32, i32
  }
  func.func @transform_13(%arg0: i32) -> (i32, i32) {
    %c0_i32 = arith.constant 0 : i32
    %c0_i32_0 = arith.constant 0 : i32
    %c0_i32_1 = arith.constant 0 : i32
    return %c0_i32, %c0_i32_0 : i32, i32
  }
  func.func @transform_14(%arg0: i32) -> (i32, i32) {
    %c0_i32 = arith.constant 0 : i32
    %c0_i32_0 = arith.constant 0 : i32
    %c0_i32_1 = arith.constant 0 : i32
    return %c0_i32, %c0_i32_0 : i32, i32
  }
  func.func @transform_15(%arg0: i32) -> (i32, i32) {
    %c0_i32 = arith.constant 0 : i32
    %c0_i32_0 = arith.constant 0 : i32
    %c0_i32_1 = arith.constant 0 : i32
    return %c0_i32, %c0_i32_0 : i32, i32
  }
  func.func @transform_16(%arg0: i32) -> (i32, i32) {
    %c0_i32 = arith.constant 0 : i32
    %c0_i32_0 = arith.constant 0 : i32
    %c0_i32_1 = arith.constant 0 : i32
    return %c0_i32, %c0_i32_0 : i32, i32
  }
  func.func @transform_17(%arg0: i32) -> (i32, i32) {
    %c0_i32 = arith.constant 0 : i32
    %c0_i32_0 = arith.constant 0 : i32
    %c0_i32_1 = arith.constant 0 : i32
    return %c0_i32, %c0_i32_0 : i32, i32
  }
  func.func @transform_18(%arg0: i32) -> (i32, i32) {
    %c0_i32 = arith.constant 0 : i32
    %c0_i32_0 = arith.constant 0 : i32
    %c0_i32_1 = arith.constant 0 : i32
    return %c0_i32, %c0_i32_0 : i32, i32
  }
  func.func @transform_19(%arg0: i32) -> (i32, i32, i32) {
    %c0_i32 = arith.constant 0 : i32
    %c0_i32_0 = arith.constant 0 : i32
    %c0_i32_1 = arith.constant 0 : i32
    %c0_i32_2 = arith.constant 0 : i32
    return %c0_i32, %c0_i32_0, %c0_i32_1 : i32, i32, i32
  }
  func.func @transform_20(%arg0: i32) -> (i32, i32, i32) {
    %c0_i32 = arith.constant 0 : i32
    %c0_i32_0 = arith.constant 0 : i32
    %c0_i32_1 = arith.constant 0 : i32
    %c0_i32_2 = arith.constant 0 : i32
    return %c0_i32, %c0_i32_0, %c0_i32_1 : i32, i32, i32
  }
  func.func @transform_21(%arg0: i32) -> (i32, i32, i32) {
    %c0_i32 = arith.constant 0 : i32
    %c0_i32_0 = arith.constant 0 : i32
    %c0_i32_1 = arith.constant 0 : i32
    %c0_i32_2 = arith.constant 0 : i32
    return %c0_i32, %c0_i32_0, %c0_i32_1 : i32, i32, i32
  }
  func.func @transform_22(%arg0: i32) -> (i32, i32, i32) {
    %c0_i32 = arith.constant 0 : i32
    %c0_i32_0 = arith.constant 0 : i32
    %c0_i32_1 = arith.constant 0 : i32
    %c0_i32_2 = arith.constant 0 : i32
    return %c0_i32, %c0_i32_0, %c0_i32_1 : i32, i32, i32
  }
  func.func @transform_23(%arg0: i32) -> (i32, i32, i32) {
    %c0_i32 = arith.constant 0 : i32
    %c0_i32_0 = arith.constant 0 : i32
    %c0_i32_1 = arith.constant 0 : i32
    %c0_i32_2 = arith.constant 0 : i32
    return %c0_i32, %c0_i32_0, %c0_i32_1 : i32, i32, i32
  }
  func.func @transform_24(%arg0: i32) -> (i32, i32, i32) {
    %c0_i32 = arith.constant 0 : i32
    %c0_i32_0 = arith.constant 0 : i32
    %c0_i32_1 = arith.constant 0 : i32
    %c0_i32_2 = arith.constant 0 : i32
    return %c0_i32, %c0_i32_0, %c0_i32_1 : i32, i32, i32
  }
  func.func @transform_25(%arg0: i32) -> (i32, i32) {
    %c0_i32 = arith.constant 0 : i32
    %c0_i32_0 = arith.constant 0 : i32
    %c0_i32_1 = arith.constant 0 : i32
    return %c0_i32, %c0_i32_0 : i32, i32
  }
  func.func @transform_26(%arg0: i32) -> (i32, i32) {
    %c0_i32 = arith.constant 0 : i32
    %c0_i32_0 = arith.constant 0 : i32
    %c0_i32_1 = arith.constant 0 : i32
    return %c0_i32, %c0_i32_0 : i32, i32
  }
  func.func @transform_27(%arg0: i32) -> (i32, i32) {
    %c0_i32 = arith.constant 0 : i32
    %c0_i32_0 = arith.constant 0 : i32
    %c0_i32_1 = arith.constant 0 : i32
    return %c0_i32, %c0_i32_0 : i32, i32
  }
  func.func @transform_28(%arg0: i32) -> (i32, i32) {
    %c0_i32 = arith.constant 0 : i32
    %c0_i32_0 = arith.constant 0 : i32
    %c0_i32_1 = arith.constant 0 : i32
    return %c0_i32, %c0_i32_0 : i32, i32
  }
  func.func @transform_29(%arg0: i32) -> (i32, i32) {
    %c0_i32 = arith.constant 0 : i32
    %c0_i32_0 = arith.constant 0 : i32
    %c0_i32_1 = arith.constant 0 : i32
    return %c0_i32, %c0_i32_0 : i32, i32
  }
  func.func @transform_30(%arg0: i32) -> (i32, i32) {
    %c0_i32 = arith.constant 0 : i32
    %c0_i32_0 = arith.constant 0 : i32
    %c0_i32_1 = arith.constant 0 : i32
    return %c0_i32, %c0_i32_0 : i32, i32
  }
  func.func @transform_31(%arg0: i32) -> (i32, i32) {
    %c0_i32 = arith.constant 0 : i32
    %c0_i32_0 = arith.constant 0 : i32
    %c0_i32_1 = arith.constant 0 : i32
    return %c0_i32, %c0_i32_0 : i32, i32
  }
  func.func @transform_32(%arg0: i32) -> (i32, i32) {
    %c0_i32 = arith.constant 0 : i32
    %c0_i32_0 = arith.constant 0 : i32
    %c0_i32_1 = arith.constant 0 : i32
    return %c0_i32, %c0_i32_0 : i32, i32
  }
  func.func @transform_33(%arg0: i32) -> (i32, i32) {
    %c0_i32 = arith.constant 0 : i32
    %c0_i32_0 = arith.constant 0 : i32
    %c0_i32_1 = arith.constant 0 : i32
    return %c0_i32, %c0_i32_0 : i32, i32
  }
  func.func @transform_34(%arg0: i32) -> (i32, i32) {
    %c0_i32 = arith.constant 0 : i32
    %c0_i32_0 = arith.constant 0 : i32
    %c0_i32_1 = arith.constant 0 : i32
    return %c0_i32, %c0_i32_0 : i32, i32
  }
  func.func @transform_35(%arg0: i32) -> (i32, i32) {
    %c0_i32 = arith.constant 0 : i32
    %c0_i32_0 = arith.constant 0 : i32
    %c0_i32_1 = arith.constant 0 : i32
    return %c0_i32, %c0_i32_0 : i32, i32
  }
  func.func @transform_36(%arg0: i32) -> (i32, i32) {
    %c0_i32 = arith.constant 0 : i32
    %c0_i32_0 = arith.constant 0 : i32
    %c0_i32_1 = arith.constant 0 : i32
    return %c0_i32, %c0_i32_0 : i32, i32
  }
  func.func @transform_37(%arg0: i32) -> (i32, i32) {
    %c0_i32 = arith.constant 0 : i32
    %c0_i32_0 = arith.constant 0 : i32
    %c0_i32_1 = arith.constant 0 : i32
    return %c0_i32, %c0_i32_0 : i32, i32
  }
  func.func @transform_38(%arg0: i32) -> (i32, i32) {
    %c0_i32 = arith.constant 0 : i32
    %c0_i32_0 = arith.constant 0 : i32
    %c0_i32_1 = arith.constant 0 : i32
    return %c0_i32, %c0_i32_0 : i32, i32
  }
  func.func @transform_39(%arg0: i32) -> (i32, i32) {
    %c0_i32 = arith.constant 0 : i32
    %c0_i32_0 = arith.constant 0 : i32
    %c0_i32_1 = arith.constant 0 : i32
    return %c0_i32, %c0_i32_0 : i32, i32
  }
  func.func @transform_40(%arg0: i32) -> (i32, i32) {
    %c0_i32 = arith.constant 0 : i32
    %c0_i32_0 = arith.constant 0 : i32
    %c0_i32_1 = arith.constant 0 : i32
    return %c0_i32, %c0_i32_0 : i32, i32
  }
  func.func @transform_41(%arg0: i32) -> (i32, i32) {
    %c0_i32 = arith.constant 0 : i32
    %c0_i32_0 = arith.constant 0 : i32
    %c0_i32_1 = arith.constant 0 : i32
    return %c0_i32, %c0_i32_0 : i32, i32
  }
  func.func @transform_42(%arg0: i32) -> (i32, i32) {
    %c0_i32 = arith.constant 0 : i32
    %c0_i32_0 = arith.constant 0 : i32
    %c0_i32_1 = arith.constant 0 : i32
    return %c0_i32, %c0_i32_0 : i32, i32
  }
  func.func @transform_43(%arg0: i32) -> (i32, i32) {
    %c0_i32 = arith.constant 0 : i32
    %c0_i32_0 = arith.constant 0 : i32
    %c0_i32_1 = arith.constant 0 : i32
    return %c0_i32, %c0_i32_0 : i32, i32
  }
  func.func @transform_44(%arg0: i32) -> (i32, i32) {
    %c0_i32 = arith.constant 0 : i32
    %c0_i32_0 = arith.constant 0 : i32
    %c0_i32_1 = arith.constant 0 : i32
    return %c0_i32, %c0_i32_0 : i32, i32
  }
  func.func @transform_45(%arg0: i32) -> (i32, i32) {
    %c0_i32 = arith.constant 0 : i32
    %c0_i32_0 = arith.constant 0 : i32
    %c0_i32_1 = arith.constant 0 : i32
    return %c0_i32, %c0_i32_0 : i32, i32
  }
  func.func @transform_46(%arg0: i32) -> (i32, i32) {
    %c0_i32 = arith.constant 0 : i32
    %c0_i32_0 = arith.constant 0 : i32
    %c0_i32_1 = arith.constant 0 : i32
    return %c0_i32, %c0_i32_0 : i32, i32
  }
  func.func @transform_47(%arg0: i32) -> (i32, i32) {
    %c0_i32 = arith.constant 0 : i32
    %c0_i32_0 = arith.constant 0 : i32
    %c0_i32_1 = arith.constant 0 : i32
    return %c0_i32, %c0_i32_0 : i32, i32
  }
  func.func @transform_48(%arg0: i32) -> (i32, i32) {
    %c0_i32 = arith.constant 0 : i32
    %c0_i32_0 = arith.constant 0 : i32
    %c0_i32_1 = arith.constant 0 : i32
    return %c0_i32, %c0_i32_0 : i32, i32
  }
  func.func @transform_49(%arg0: i32) -> (i32, i32) {
    %c0_i32 = arith.constant 0 : i32
    %c0_i32_0 = arith.constant 0 : i32
    %c0_i32_1 = arith.constant 0 : i32
    return %c0_i32, %c0_i32_0 : i32, i32
  }
  func.func @transform_50(%arg0: i32) -> (i32, i32) {
    %c0_i32 = arith.constant 0 : i32
    %c0_i32_0 = arith.constant 0 : i32
    return %arg0, %c0_i32 : i32, i32
  }
}

</mosaic_0001>

<bundles_post_ra>
// kernel: tpu_custom_call.1
= control target key start
LH: loop header
LB: loop body
LE: loop exit
PB: predicated region body
PF: predicated region fallthrough
CT: control target
= control target key end

     0   :  { %s4700_s6 = smov 1   ;;  %s4701_s10 = smov 2   ;;  %s5458_s0 = inlined_call_operand.smem [shape: u32[51], index: -1, kind: input, shape index: {}] }
   0x1   :  { %s4767_s5 = sld [smem:[%s5458_s0]]   ;;  %s4702_s14 = smov 3  }
   0x2   :  { %s4772_s9 = sld [smem:[%s5458_s0 + %s4700_s6]]   ;;  %s4703_s18 = smov 4  }
   0x3   :  { %s4777_s13 = sld [smem:[%s5458_s0 + %s4701_s10]]   ;;  %s4704_s22 = smov 5  }
   0x4   :  { %s4782_s17 = sld [smem:[%s5458_s0 + %s4702_s14]]   ;;  %s4705_s26 = smov 6  }
   0x5   :  { %s4787_s21 = sld [smem:[%s5458_s0 + %s4703_s18]]   ;;  %s4706_s30 = smov 7  }
   0x6   :  { %s4792_s25 = sld [smem:[%s5458_s0 + %s4704_s22]]   ;;  %s4707_s4 = smov 8  }
   0x7   :  { %s4797_s29 = sld [smem:[%s5458_s0 + %s4705_s26]]   ;;  %s4708_s10 = smov 9  }
   0x8   :  { %s4802_s3 = sld [smem:[%s5458_s0 + %s4706_s30]]   ;;  %s4709_s15 = smov 10  }
   0x9   :  { %5472 = sst [smem:[#allocation12_spill]] %s4777_s13  ;;  %s4710_s20 = smov 11  }
   0xa   :  { %s4807_s8 = sld [smem:[%s5458_s0 + %s4707_s4]]   ;;  %s4711_s26 = smov 12  }
   0xb   :  { %s4812_s14 = sld [smem:[%s5458_s0 + %s4708_s10]]   ;;  %s4712_s1 = smov 13  }
   0xc   :  { %s4817_s19 = sld [smem:[%s5458_s0 + %s4709_s15]]   ;;  %s4713_s7 = smov 14  }
   0xd   :  { %s4822_s24 = sld [smem:[%s5458_s0 + %s4710_s20]]   ;;  %s4714_s15 = smov 15  }
   0xe   :  { %s4827_s30 = sld [smem:[%s5458_s0 + %s4711_s26]]   ;;  %s4715_s22 = smov 16  }
   0xf   :  { %s4832_s6 = sld [smem:[%s5458_s0 + %s4712_s1]]   ;;  %s4716_s28 = smov 17  }
  0x10   :  { %s4837_s12 = sld [smem:[%s5458_s0 + %s4713_s7]]   ;;  %s4717_s7 = smov 18  }
  0x11   :  { %s4842_s20 = sld [smem:[%s5458_s0 + %s4714_s15]]   ;;  %s4718_s15 = smov 19  }
  0x12   :  { %s4847_s27 = sld [smem:[%s5458_s0 + %s4715_s22]]   ;;  %s4719_s22 = smov 20  }
  0x13   :  { %s4852_s4 = sld [smem:[%s5458_s0 + %s4716_s28]]   ;;  %s4720_s28 = smov 21  }
  0x14   :  { %5473 = sst [smem:[#allocation13_spill]] %s4827_s30  ;;  %s4747_s23 = smov 48  }
  0x15   :  { %s4857_s13 = sld [smem:[%s5458_s0 + %s4717_s7]]   ;;  %s4721_s7 = smov 22  }
  0x16   :  { %5474 = sst [smem:[#allocation14_spill]] %s4837_s12  ;;  %s4748_s1 = smov 49  }
  0x17   :  { %s4862_s12 = sld [smem:[%s5458_s0 + %s4718_s15]]   ;;  %s4722_s15 = smov 23  }
  0x18   :  { %5475 = sst [smem:[#allocation15_spill]] %s4847_s27  ;;  %s4749_s10 = smov 50  }
  0x19   :  { %5476 = sst [smem:[#allocation16_spill]] %s4852_s4 }
  0x1a   :  { %s4867_s27 = sld [smem:[%s5458_s0 + %s4719_s22]]   ;;  %s4723_s22 = smov 24  }
  0x1b   :  { %5477 = sst [smem:[#allocation17_spill]] %s4857_s13 }
  0x1c   :  { %s4872_s4 = sld [smem:[%s5458_s0 + %s4720_s28]]   ;;  %s4724_s28 = smov 25  }
  0x1d   :  { %5478 = sst [smem:[#allocation18_spill]] %s4862_s12 }
  0x1e   :  { %s4877_s13 = sld [smem:[%s5458_s0 + %s4721_s7]]   ;;  %s4725_s7 = smov 26  }
  0x1f   :  { %s4882_s12 = sld [smem:[%s5458_s0 + %s4722_s15]]   ;;  %s4726_s15 = smov 27  }
  0x20   :  { %5479 = sst [smem:[#allocation19_spill]] %s4867_s27 }
  0x21   :  { %s4887_s27 = sld [smem:[%s5458_s0 + %s4723_s22]]   ;;  %s4727_s22 = smov 28  }
  0x22   :  { %5480 = sst [smem:[#allocation20_spill]] %s4872_s4 }
  0x23   :  { %s4892_s4 = sld [smem:[%s5458_s0 + %s4724_s28]]   ;;  %s4728_s28 = smov 29  }
  0x24   :  { %5481 = sst [smem:[#allocation21_spill]] %s4877_s13 }
  0x25   :  { %5482 = sst [smem:[#allocation22_spill]] %s4882_s12 }
  0x26   :  { %s4897_s13 = sld [smem:[%s5458_s0 + %s4725_s7]]   ;;  %s4729_s7 = smov 30  }
  0x27   :  { %5483 = sst [smem:[#allocation23_spill]] %s4887_s27 }
  0x28   :  { %s4902_s12 = sld [smem:[%s5458_s0 + %s4726_s15]]   ;;  %s4730_s15 = smov 31  }
  0x29   :  { %5484 = sst [smem:[#allocation24_spill]] %s4892_s4 }
  0x2a   :  { %s4907_s27 = sld [smem:[%s5458_s0 + %s4727_s22]]   ;;  %s4731_s22 = smov 32  }
  0x2b   :  { %s4912_s4 = sld [smem:[%s5458_s0 + %s4728_s28]]   ;;  %s4732_s28 = smov 33  }
  0x2c   :  { %5485 = sst [smem:[#allocation25_spill]] %s4897_s13 }
  0x2d   :  { %s4917_s13 = sld [smem:[%s5458_s0 + %s4729_s7]]   ;;  %s4733_s7 = smov 34  }
  0x2e   :  { %5486 = sst [smem:[#allocation26_spill]] %s4902_s12 }
  0x2f   :  { %s4922_s12 = sld [smem:[%s5458_s0 + %s4730_s15]]   ;;  %s4734_s15 = smov 35  }
  0x30   :  { %5487 = sst [smem:[#allocation27_spill]] %s4907_s27 }
  0x31   :  { %5488 = sst [smem:[#allocation28_spill]] %s4912_s4 }
  0x32   :  { %s4927_s27 = sld [smem:[%s5458_s0 + %s4731_s22]]   ;;  %s4735_s22 = smov 36  }
  0x33   :  { %5489 = sst [smem:[#allocation29_spill]] %s4917_s13 }
  0x34   :  { %s4932_s4 = sld [smem:[%s5458_s0 + %s4732_s28]]   ;;  %s4736_s28 = smov 37  }
  0x35   :  { %5490 = sst [smem:[#allocation30_spill]] %s4922_s12 }
  0x36   :  { %s4937_s13 = sld [smem:[%s5458_s0 + %s4733_s7]]   ;;  %s4737_s7 = smov 38  }
  0x37   :  { %s4942_s12 = sld [smem:[%s5458_s0 + %s4734_s15]]   ;;  %s4738_s15 = smov 39  }
  0x38   :  { %5491 = sst [smem:[#allocation31_spill]] %s4927_s27 }
  0x39   :  { %s4947_s27 = sld [smem:[%s5458_s0 + %s4735_s22]]   ;;  %s4739_s22 = smov 40  }
  0x3a   :  { %5492 = sst [smem:[#allocation32_spill]] %s4932_s4 }
  0x3b   :  { %s4952_s4 = sld [smem:[%s5458_s0 + %s4736_s28]]   ;;  %s4740_s28 = smov 41  }
  0x3c   :  { %5493 = sst [smem:[#allocation33_spill]] %s4937_s13 }
  0x3d   :  { %5494 = sst [smem:[#allocation34_spill]] %s4942_s12 }
  0x3e   :  { %s4957_s13 = sld [smem:[%s5458_s0 + %s4737_s7]]   ;;  %s4741_s7 = smov 42  }
  0x3f   :  { %5495 = sst [smem:[#allocation35_spill]] %s4947_s27 }
  0x40   :  { %s4962_s12 = sld [smem:[%s5458_s0 + %s4738_s15]]   ;;  %s4742_s15 = smov 43  }
  0x41   :  { %5496 = sst [smem:[#allocation36_spill]] %s4952_s4 }
  0x42   :  { %s4967_s27 = sld [smem:[%s5458_s0 + %s4739_s22]]   ;;  %s4743_s22 = smov 44  }
  0x43   :  { %s4972_s4 = sld [smem:[%s5458_s0 + %s4740_s28]]   ;;  %s4744_s28 = smov 45  }
  0x44   :  { %5497 = sst [smem:[#allocation37_spill]] %s4957_s13 }
  0x45   :  { %s4977_s13 = sld [smem:[%s5458_s0 + %s4741_s7]]   ;;  %s4745_s7 = smov 46  }
  0x46   :  { %5498 = sst [smem:[#allocation38_spill]] %s4962_s12 }
  0x47   :  { %s4982_s12 = sld [smem:[%s5458_s0 + %s4742_s15]]   ;;  %s4746_s15 = smov 47  }
  0x48   :  { %5499 = sst [smem:[#allocation39_spill]] %s4967_s27 }
  0x49   :  { %5500 = sst [smem:[#allocation40_spill]] %s4972_s4 }
  0x4a   :  { %s4987_s27 = sld [smem:[%s5458_s0 + %s4743_s22]]  }
  0x4b   :  { %5501 = sst [smem:[#allocation41_spill]] %s4977_s13 }
  0x4c   :  { %s4992_s4 = sld [smem:[%s5458_s0 + %s4744_s28]]  }
  0x4d   :  { %5502 = sst [smem:[#allocation42_spill]] %s4982_s12 }
  0x4e   :  { %s4997_s13 = sld [smem:[%s5458_s0 + %s4745_s7]]  }
  0x4f   :  { %s3430_s12 = sld [smem:[%s5458_s0 + %s4746_s15]]  }
  0x50   :  { %5503 = sst [smem:[#allocation43_spill]] %s4987_s27 }
  0x51   :  { %s5005_s27 = sld [smem:[%s5458_s0 + %s4747_s23]]  }
  0x52   :  { %s5010_s30 = sld [smem:[%s5458_s0 + %s4748_s1]]  }
  0x54   :  { %5504 = sst [smem:[#allocation44_spill]] %s4997_s13 }
  0x55   :  { %s5015_s13 = sld [smem:[%s5458_s0 + %s4749_s10]]  }
  0x56   :  { %106 = vsyncpa [#allocation3], 0 }
  0x57   :  { %107 = vsyncpa [#allocation6], 0  ;;  %s217_s15 = sshll.u32 %s3430_s12, 4  ;;  %s218_s15 = int_to_ptr.hbm [resolvable:$true] %s217_s15 }
  0x58   :  { %108 = vsyncpa [#allocation4], 0  ;;  %s4750_s16 = smov [#allocation5]   ;;  %s204_s23 = sshll.u32 %s4992_s4, 4  ;;  %s205_s23 = int_to_ptr.hbm [resolvable:$true] %s204_s23 }
  0x59   :  { %s219_s18 = sshll.u32 %s4750_s16, 4  ;;  %s4598_s22 = sshra.s32 %s218_s15, 4  ;;  %s220_s18 = int_to_ptr.vmem [resolvable:$true] %s219_s18  ;;  %s4599_s22 = int_to_ptr.hbm [resolvable:$true] %s4598_s22 }
  0x5a   :  { %s4600_s26 = scalar_lea.hbm %s4599_s22, 1  ;;  %s4602_s1 = scalar_lea.hbm %s3430_s12, 1 }
  0x5b   :  { %p4601_p0 = scmp.ne.s32.totalorder %s4599_s22, %s4600_s26  ;;  %p4603_p1 = scmp.lt.s32.totalorder %s4599_s22, %s3430_s12 }
  0x5c   :  { %p4604_p2 = scmp.lt.s32.totalorder %s4602_s1, %s4600_s26 }
  0x5e   :  { %p4605_p3 = por %p4604_p2, %p4603_p1 }
  0x60   :  { %p4606_p4 = pnand %p4605_p3, %p4601_p0 }
  0x62   :  { %4609 = shalt.err (!%p4606_p4)
}
  0x63   :  { %222 = dma.hbm_to_vmem [thread:$0]  %s218_s15, 16, %s220_s18, [#allocation6]  }
  0x64   :  { %s4751_s0 = smov [#allocation2]   ;;  %s230_s2 = sshll.u32 %s5010_s30, 4  ;;  %s231_s2 = int_to_ptr.hbm [resolvable:$true] %s230_s2 }
  0x65   :  { %s206_s28 = sshll.u32 %s4751_s0, 4  ;;  %s4622_s10 = sshra.s32 %s205_s23, 4  ;;  %s207_s28 = int_to_ptr.vmem [resolvable:$true] %s206_s28  ;;  %s4623_s10 = int_to_ptr.hbm [resolvable:$true] %s4622_s10 }
  0x66   :  { %s4624_s7 = scalar_lea.hbm %s4623_s10, 1  ;;  %s4626_s11 = scalar_lea.hbm %s4992_s4, 1 }
  0x67   :  { %p4625_p5 = scmp.ne.s32.totalorder %s4623_s10, %s4624_s7  ;;  %p4627_p6 = scmp.lt.s32.totalorder %s4623_s10, %s4992_s4 }
  0x68   :  { %p4628_p7 = scmp.lt.s32.totalorder %s4626_s11, %s4624_s7 }
  0x6a   :  { %p4629_p8 = por %p4628_p7, %p4627_p6 }
  0x6c   :  { %p4630_p9 = pnand %p4629_p8, %p4625_p5 }
  0x6e   :  { %4633 = shalt.err (!%p4630_p9)
}
  0x6f   :  { %209 = dma.hbm_to_vmem [thread:$0]  %s205_s23, 16, %s207_s28, [#allocation3]  }
  0x70   :  { %s4752_s12 = smov [#allocation7]   ;;  %s4646_s16 = sshra.s32 %s231_s2, 4  ;;  %s4647_s16 = int_to_ptr.hbm [resolvable:$true] %s4646_s16 }
  0x71   :  { %s232_s15 = sshll.u32 %s4752_s12, 4  ;;  %s4648_s18 = scalar_lea.hbm %s4647_s16, 1  ;;  %s233_s15 = int_to_ptr.vmem [resolvable:$true] %s232_s15 }
  0x72   :  { %p4649_p10 = scmp.ne.s32.totalorder %s4647_s16, %s4648_s18  ;;  %s4650_s22 = scalar_lea.hbm %s5010_s30, 1 }
  0x73   :  { %p4651_p11 = scmp.lt.s32.totalorder %s4647_s16, %s5010_s30  ;;  %p4652_p12 = scmp.lt.s32.totalorder %s4650_s22, %s4648_s18 }
  0x75   :  { %p4653_p13 = por %p4652_p12, %p4651_p11 }
  0x77   :  { %p4654_p0 = pnand %p4653_p13, %p4649_p10 }
  0x79   :  { %4657 = shalt.err (!%p4654_p0)
}
  0x7a   :  { %235 = dma.hbm_to_vmem [thread:$0]  %s231_s2, 16, %s233_s15, [#allocation6]  }
  0x7b   :  { %4694 = dma.done.wait [#allocation3], 16  }
  0x7c   :  { %4695 = vsyncadd [#allocation3], 4294967280 }
  0x7d   :  { %4696 = dma.done.wait [#allocation6], 32  }
  0x7e   :  { %4697 = vsyncadd [#allocation6], 4294967264  ;;  %v4237_v0 = vld [vmem:[%s4782_s17 + $0x18] sm:$0xff]  ;;  %v4236_v3 = vld [vmem:[%s4782_s17 + $0x10] sm:$0xff]  ;;  %vm293_vm0 = vcmask 523264   ;;  %vm903_vm1 = vcmask 130048  }
  0x7f   :  { %v4241_v1 = vld [vmem:[%s4782_s17 + $0x38] sm:$0xff]  ;;  %301 = vmatpush.bf16.msra.mxu0 %v4237_v0  ;;  %v4240_v4 = vld [vmem:[%s4782_s17 + $0x30] sm:$0xff]  ;;  %v249_v8 = vld [vmem:[%s4767_s5] sm:$0xff]  ;;  %vm1164_vm2 = vcmask 1043456   ;;  %vm1064_vm3 = vcmask 64512   ;;  %vm1340_vm4 = vcmask 261120  }
  0x80   :  { %v4249_v2 = vld [vmem:[%s4782_s17 + $0x78] sm:$0xff]  ;;  %355 = vmatpush.bf16.msra.mxu1 %v4241_v1  ;;  %v4248_v6 = vld [vmem:[%s4782_s17 + $0x70] sm:$0xff]  ;;  %v250_v9 = vld [vmem:[%s4767_s5 + $0x8] sm:$0xff]  ;;  %v251_v10 = vmul.f32 8.0, %v249_v8  ;;  %s4753_s5 = smov 16   ;;  %vm1343_vm5 = vcmask 392192  }
  0x81   :  { %v4245_v5 = vld [vmem:[%s4782_s17 + $0x58] sm:$0xff]  ;;  %463 = vmatpush.bf16.msra.mxu3 %v4249_v2  ;;  %v4244_v7 = vld [vmem:[%s4782_s17 + $0x50] sm:$0xff]  ;;  %v4235_v11 = vld [vmem:[%s4782_s17 + $0x8] sm:$0xff]  ;;  %v252_v13 = vmul.f32 8.0, %v250_v9  ;;  %s5513_s30 = sld [smem:[#allocation21_spill]] }
  0x82   :  { %409 = vmatpush.bf16.msra.mxu2 %v4245_v5  ;;  %v4239_v12 = vld [vmem:[%s4782_s17 + $0x28] sm:$0xff]  ;;  %v253_v14 = vld [vmem:[%s4772_s9] sm:$0xff]  ;;  %v4253_v22 = vld [vmem:[%s4792_s25 + $0x18] sm:$0xff]  ;;  %s4754_s9 = smov 32   ;;  %s5516_s4 = sld [smem:[#allocation24_spill]] }
  0x83   :  { %302 = vmatpush.bf16.msra.mxu0 %v4236_v3  ;;  %v4247_v15 = vld [vmem:[%s4782_s17 + $0x68] sm:$0xff]  ;;  %v5038_v17 = vadd.f32 %v253_v14, %v251_v10  ;;  %v5040_v18 = vadd.f32 %v253_v14, %v252_v13  ;;  %v4234_v19 = vld [vmem:[%s4782_s17] sm:$0xff]  ;;  %v4257_v23 = vld [vmem:[%s4792_s25 + $0x38] sm:$0xff]  ;;  %s5517_s23 = sld [smem:[#allocation25_spill]] }
  0x84   :  { %356 = vmatpush.bf16.msra.mxu1 %v4240_v4  ;;  %v4243_v16 = vld [vmem:[%s4782_s17 + $0x48] sm:$0xff]  ;;  %v4238_v20 = vld [vmem:[%s4782_s17 + $0x20] sm:$0xff]  ;;  %v4265_v24 = vld [vmem:[%s4792_s25 + $0x78] sm:$0xff]  ;;  %s5518_s26 = sld [smem:[#allocation28_spill]] }
  0x85   :  { %464 = vmatpush.bf16.msra.mxu3 %v4248_v6  ;;  %v4246_v21 = vld [vmem:[%s4782_s17 + $0x60] sm:$0xff]  ;;  %v5050_v25 = vpack.c.bf16 %v5040_v18, %v5038_v17  ;;  %v4252_v26 = vld [vmem:[%s4792_s25 + $0x10] sm:$0xff]  ;;  %v4261_v30 = vld [vmem:[%s4792_s25 + $0x58] sm:$0xff]  ;;  %s5519_s1 = sld [smem:[#allocation30_spill]] }
  0x86   :  { %410 = vmatpush.bf16.msra.mxu2 %v4244_v7  ;;  %v4242_v27 = vld [vmem:[%s4782_s17 + $0x40] sm:$0xff]  ;;  %v4256_v28 = vld [vmem:[%s4792_s25 + $0x30] sm:$0xff]  ;;  %v4251_v31 = vld [vmem:[%s4792_s25 + $0x8] sm:$0xff]  ;;  %s4755_s17 = smov 48   ;;  %s5520_s0 = sld [smem:[#allocation26_spill]] }
  0x87   :  { %303 = vmatpush.bf16.msra.mxu0 %v4235_v11  ;;  %v4264_v29 = vld [vmem:[%s4792_s25 + $0x70] sm:$0xff]  ;;  %v4255_v33 = vld [vmem:[%s4792_s25 + $0x28] sm:$0xff]  ;;  %v4250_v35 = vld [vmem:[%s4792_s25] sm:$0xff]  ;;  %s5521_s28 = sld [smem:[#allocation27_spill]] }
  0x88   :  { %357 = vmatpush.bf16.msra.mxu1 %v4239_v12  ;;  %v4260_v32 = vld [vmem:[%s4792_s25 + $0x50] sm:$0xff]  ;;  %v4263_v34 = vld [vmem:[%s4792_s25 + $0x68] sm:$0xff]  ;;  %v4254_v37 = vld [vmem:[%s4792_s25 + $0x20] sm:$0xff]  ;;  %s5522_s2 = sld [smem:[#allocation29_spill]] }
  0x89   :  { %465 = vmatpush.bf16.msra.mxu3 %v4247_v15  ;;  %v4259_v36 = vld [vmem:[%s4792_s25 + $0x48] sm:$0xff]  ;;  %v4262_v38 = vld [vmem:[%s4792_s25 + $0x60] sm:$0xff]  ;;  %v4269_v39 = vld [vmem:[%s4802_s3 + $0x18] sm:$0xff]  ;;  %s5523_s10 = sld [smem:[#allocation34_spill]] }
  0x8a   :  { %411 = vmatpush.bf16.msra.mxu2 %v4243_v16  ;;  %v4281_v40 = vld [vmem:[%s4802_s3 + $0x78] sm:$0xff]  ;;  %v4258_v41 = vld [vmem:[%s4792_s25 + $0x40] sm:$0xff]  ;;  %v4268_v43 = vld [vmem:[%s4802_s3 + $0x10] sm:$0xff]  ;;  %s5506_s25 = sld [smem:[#allocation14_spill]] }
  0x8b   :  { %304 = vmatpush.bf16.msra.mxu0 %v4234_v19  ;;  %v4277_v42 = vld [vmem:[%s4802_s3 + $0x58] sm:$0xff]  ;;  %v4276_v44 = vld [vmem:[%s4802_s3 + $0x50] sm:$0xff]  ;;  %v4275_v45 = vld [vmem:[%s4802_s3 + $0x48] sm:$0xff]  ;;  %s5524_s7 = sld [smem:[#allocation12_spill]] }
  0x8c   :  { %358 = vmatpush.bf16.msra.mxu1 %v4238_v20  ;;  %v4274_v46 = vld [vmem:[%s4802_s3 + $0x40] sm:$0xff]  ;;  %v4280_v47 = vld [vmem:[%s4802_s3 + $0x70] sm:$0xff]  ;;  %v4267_v48 = vld [vmem:[%s4802_s3 + $0x8] sm:$0xff]  ;;  %s5525_s11 = sld [smem:[#allocation31_spill]] }
  0x8d   :  { %466 = vmatpush.bf16.msra.mxu3 %v4246_v21  ;;  %v4273_v49 = vld [vmem:[%s4802_s3 + $0x38] sm:$0xff]  ;;  %v4279_v50 = vld [vmem:[%s4802_s3 + $0x68] sm:$0xff]  ;;  %v4266_v51 = vld [vmem:[%s4802_s3] sm:$0xff]  ;;  %s5526_s12 = sld [smem:[#allocation39_spill]] }
  0x8e   :  { %3450 = vmatmul.msk.bf16.vlgmr.msra.gmra.mxu0 %vm293_vm0, %v5050_v25  ;;  %412 = vmatpush.bf16.msra.mxu2 %v4242_v27  ;;  %v4272_v52 = vld [vmem:[%s4802_s3 + $0x30] sm:$0xff]  ;;  %v4278_v53 = vld [vmem:[%s4802_s3 + $0x60] sm:$0xff]  ;;  %v4271_v54 = vld [vmem:[%s4802_s3 + $0x28] sm:$0xff]  ;;  %s5527_s15 = sld [smem:[#allocation40_spill]] }
  0x8f   :  { %515 = vmatpush.bf16.msrb.mxu0 %v4253_v22  ;;  %3476 = vmatmul.msk.bf16.vlgmr.msra.gmra.mxu1 %vm293_vm0, %v5050_v25  ;;  %v4270_v55 = vld [vmem:[%s4802_s3 + $0x20] sm:$0xff]  ;;  %s5508_s3 = sld [smem:[#allocation18_spill]] }
  0x90   :  { %569 = vmatpush.bf16.msrb.mxu1 %v4257_v23  ;;  %3528 = vmatmul.msk.bf16.vlgmr.msra.gmra.mxu3 %vm293_vm0, %v5050_v25  ;;  %v4470_v62 = vld [vmem:[%s4797_s29] ss:$0 sm:$0xff]  ;;  %v4471_v63 = vld [vmem:[%s4797_s29 + $0x1] ss:$0 sm:$0xff]  ;;  %v4472_v10 = vld [vmem:[%s4797_s29 + $0x3] ss:$0 sm:$0xff] }
  0x91   :  { %677 = vmatpush.bf16.msrb.mxu3 %v4265_v24  ;;  %3502 = vmatmul.msk.bf16.vlgmr.msra.gmra.mxu2 %vm293_vm0, %v5050_v25  ;;  %v4466_v5 = vld [vmem:[%s4787_s21] ss:$0 sm:$0xff]  ;;  %v4467_v7 = vld [vmem:[%s4787_s21 + $0x1] ss:$0 sm:$0xff]  ;;  %v4473_v16 = vld [vmem:[%s4797_s29 + $0x2] ss:$0 sm:$0xff] }
  0x92   :  { %623 = vmatpush.bf16.msrb.mxu2 %v4261_v30  ;;  %s5507_s29 = sld [smem:[#allocation15_spill]] }
  0x93   :  { %516 = vmatpush.bf16.msrb.mxu0 %v4252_v26  ;;  %s5528_s16 = sld [smem:[#allocation35_spill]] }
  0x94   :  { %570 = vmatpush.bf16.msrb.mxu1 %v4256_v28  ;;  %s5529_s18 = sld [smem:[#allocation38_spill]] }
  0x95   :  { %678 = vmatpush.bf16.msrb.mxu3 %v4264_v29  ;;  %s5530_s22 = sld [smem:[#allocation36_spill]] }
  0x96   :  { %624 = vmatpush.bf16.msrb.mxu2 %v4260_v32 }
  0x97   :  { %517 = vmatpush.bf16.msrb.mxu0 %v4251_v31 }
  0x98   :  { %571 = vmatpush.bf16.msrb.mxu1 %v4255_v33 }
  0x99   :  { %679 = vmatpush.bf16.msrb.mxu3 %v4263_v34 }
  0x9a   :  { %625 = vmatpush.bf16.msrb.mxu2 %v4259_v36 }
  0x9b   :  { %518 = vmatpush.bf16.msrb.mxu0 %v4250_v35 }
  0x9c   :  { %572 = vmatpush.bf16.msrb.mxu1 %v4254_v37 }
  0x9d   :  { %680 = vmatpush.bf16.msrb.mxu3 %v4262_v38 }
  0x9e   :  { %626 = vmatpush.bf16.msrb.mxu2 %v4258_v41  ;;  %3545 = vmatmul.msk.bf16.vlgmr.msrb.gmra.mxu0 %vm293_vm0, %v5050_v25 }
  0x9f   :  { %729 = vmatpush.bf16.msra.mxu0 %v4269_v39  ;;  %3571 = vmatmul.msk.bf16.vlgmr.msrb.gmra.mxu1 %vm293_vm0, %v5050_v25 }
  0xa0   :  { %3623 = vmatmul.msk.bf16.vlgmr.msrb.gmra.mxu3 %vm293_vm0, %v5050_v25  ;;  %783 = vmatpush.bf16.msra.mxu1 %v4273_v49 }
  0xa1   :  { %891 = vmatpush.bf16.msra.mxu3 %v4281_v40  ;;  %3597 = vmatmul.msk.bf16.vlgmr.msrb.gmra.mxu2 %vm293_vm0, %v5050_v25  ;;  %v4469_v40 = vld [vmem:[%s4787_s21 + $0x2] ss:$0 sm:$0xff] }
  0xa2   :  { %837 = vmatpush.bf16.msra.mxu2 %v4277_v42 }
  0xa3   :  { %730 = vmatpush.bf16.msra.mxu0 %v4268_v43 }
  0xa4   :  { %784 = vmatpush.bf16.msra.mxu1 %v4272_v52 }
  0xa5   :  { %892 = vmatpush.bf16.msra.mxu3 %v4280_v47 }
  0xa6   :  { %838 = vmatpush.bf16.msra.mxu2 %v4276_v44 }
  0xa7   :  { %731 = vmatpush.bf16.msra.mxu0 %v4267_v48 }
  0xa8   :  { %785 = vmatpush.bf16.msra.mxu1 %v4271_v54 }
  0xa9   :  { %893 = vmatpush.bf16.msra.mxu3 %v4279_v50 }
  0xaa   :  { %839 = vmatpush.bf16.msra.mxu2 %v4275_v45  ;;  %v4468_v45 = vld [vmem:[%s4787_s21 + $0x3] ss:$0 sm:$0xff]  ;;  %s5505_s21 = sld [smem:[#allocation13_spill]] }
  0xab   :  { %732 = vmatpush.bf16.msra.mxu0 %v4266_v51 }
  0xac   :  { %786 = vmatpush.bf16.msra.mxu1 %v4270_v55 }
  0xad   :  { %894 = vmatpush.bf16.msra.mxu3 %v4278_v53 }
  0xae   :  { %840 = vmatpush.bf16.msra.mxu2 %v4274_v46  ;;  %3640 = vmatmul.msk.bf16.vlgmr.msra.gmra.mxu0 %vm293_vm0, %v5050_v25 }
  0xaf   :  { %3666 = vmatmul.msk.bf16.vlgmr.msra.gmra.mxu1 %vm293_vm0, %v5050_v25 }
  0xb0   :  { %3718 = vmatmul.msk.bf16.vlgmr.msra.gmra.mxu3 %vm293_vm0, %v5050_v25 }
  0xb1   :  { %3692 = vmatmul.msk.bf16.vlgmr.msra.gmra.mxu2 %vm293_vm0, %v5050_v25 }
 0x10b   :  { %v306_v56 = vpop.f32.mrf.mxu0 }
 0x10c   :  { %v360_v57 = vpop.f32.mrf.mxu1  ;;  %v307_v13 = vadd.f32 %v4466_v5, %v306_v56 }
 0x10d   :  { %v361_v14 = vadd.f32 %v4467_v7, %v360_v57 }
 0x10e   :  { %v311_v24 = vpack.c.bf16 %v307_v13, %v307_v13 }
 0x10f   :  { %v365_v27 = vpack.c.bf16 %v361_v14, %v361_v14 }
 0x113   :  { %v5106_v58 = vpop.f32.mrf.mxu3  ;;  %v308_v59 = vpop.f32.mrf.mxu0 }
 0x114   :  { %v362_v60 = vpop.f32.mrf.mxu1  ;;  %v414_v61 = vpop.f32.mrf.mxu2  ;;  %v309_v35 = vadd.f32 %v4466_v5, %v308_v59  ;;  %v469_v50 = vadd.f32 %v4468_v45, %v5106_v58  ;;  %v4474_v58 = vld [vmem:[%s4807_s8] ss:$0 sm:$0xff]  ;;  %v4475_v59 = vld [vmem:[%s4807_s8 + $0x2] ss:$0 sm:$0xff]  ;;  %v4477_v5 = vld [vmem:[%s4807_s8 + $0x3] ss:$0 sm:$0xff] }
 0x115   :  { %v363_v36 = vadd.f32 %v4467_v7, %v362_v60  ;;  %v415_v48 = vadd.f32 %v4469_v40, %v414_v61 }
 0x116   :  { %v312_v43 = vpack.c.bf16 %v309_v35, %v309_v35  ;;  %v473_v53 = vpack.c.bf16 %v469_v50, %v469_v50 }
 0x117   :  { %v366_v44 = vpack.c.bf16 %v363_v36, %v363_v36  ;;  %v419_v52 = vpack.c.bf16 %v415_v48, %v415_v48 }
 0x11b   :  { %v5110_v0 = vpop.f32.mrf.mxu3  ;;  %v520_v1 = vpop.f32.mrf.mxu0 }
 0x11c   :  { %v574_v2 = vpop.f32.mrf.mxu1  ;;  %v521_v3 = vadd.f32 %v4470_v62, %v520_v1  ;;  %v416_v6 = vpop.f32.mrf.mxu2  ;;  %v471_v55 = vadd.f32 %v4468_v45, %v5110_v0 }
 0x11d   :  { %v575_v4 = vadd.f32 %v4471_v63, %v574_v2  ;;  %v417_v54 = vadd.f32 %v4469_v40, %v416_v6 }
 0x11e   :  { %v525_v8 = vpack.c.bf16 %v521_v3, %v521_v3  ;;  %v474_v57 = vpack.c.bf16 %v471_v55, %v471_v55 }
 0x11f   :  { %v579_v9 = vpack.c.bf16 %v575_v4, %v575_v4  ;;  %v420_v56 = vpack.c.bf16 %v417_v54, %v417_v54  ;;  %v4476_v4 = vld [vmem:[%s4807_s8 + $0x1] ss:$0 sm:$0xff]  ;;  %s5509_s8 = sld [smem:[#allocation20_spill]] }
 0x120   :  { %v908_v11 = vsel %vm903_vm1, %v525_v8, 0 }
 0x121   :  { %v946_v12 = vsel %vm903_vm1, %v579_v9, 0  ;;  %917 = vmatpush.bf16.xpose.msrb.mxu0 %v908_v11 }
 0x122   :  { %955 = vmatpush.bf16.xpose.msrb.mxu2 %v946_v12 }
 0x123   :  { %v682_v15 = vpop.f32.mrf.mxu3  ;;  %v522_v19 = vpop.f32.mrf.mxu0 }
 0x124   :  { %v576_v20 = vpop.f32.mrf.mxu1  ;;  %v683_v21 = vadd.f32 %v4472_v10, %v682_v15  ;;  %v523_v22 = vadd.f32 %v4470_v62, %v522_v19  ;;  %v628_v26 = vpop.f32.mrf.mxu2 }
 0x125   :  { %v577_v23 = vadd.f32 %v4471_v63, %v576_v20  ;;  %v629_v30 = vadd.f32 %v4473_v16, %v628_v26 }
 0x126   :  { %v687_v25 = vpack.c.bf16 %v683_v21, %v683_v21  ;;  %v526_v28 = vpack.c.bf16 %v523_v22, %v523_v22 }
 0x127   :  { %v580_v29 = vpack.c.bf16 %v577_v23, %v577_v23  ;;  %v633_v34 = vpack.c.bf16 %v629_v30, %v629_v30 }
 0x128   :  { %v1022_v31 = vsel %vm903_vm1, %v687_v25, 0  ;;  %3719 = vmatmul.msk.bf16.vlgmr.msrb.gmra.mxu0 %vm903_vm1, %v311_v24  ;;  %v927_v32 = vsel %vm903_vm1, %v526_v28, 0 }
 0x129   :  { %3721 = vmatmul.msk.bf16.vlgmr.msrb.gmra.mxu2 %vm903_vm1, %v365_v27  ;;  %v965_v33 = vsel %vm903_vm1, %v580_v29, 0  ;;  %936 = vmatpush.bf16.xpose.msrb.mxu1 %v927_v32  ;;  %v984_v37 = vsel %vm903_vm1, %v633_v34, 0 }
 0x12a   :  { %974 = vmatpush.bf16.xpose.msrb.mxu3 %v965_v33  ;;  %1031 = vmatpush.bf16.xpose.msra.mxu2 %v1022_v31 }
 0x12b   :  { %v684_v38 = vpop.f32.mrf.mxu3  ;;  %993 = vmatpush.bf16.xpose.msra.mxu0 %v984_v37  ;;  %v734_v60 = vpop.f32.mrf.mxu0 }
 0x12c   :  { %v685_v39 = vadd.f32 %v4472_v10, %v684_v38  ;;  %v630_v42 = vpop.f32.mrf.mxu2  ;;  %v735_v61 = vadd.f32 %v4474_v58, %v734_v60  ;;  %v788_v7 = vpop.f32.mrf.mxu1 }
 0x12d   :  { %v631_v46 = vadd.f32 %v4473_v16, %v630_v42  ;;  %v789_v9 = vadd.f32 %v4476_v4, %v788_v7 }
 0x12e   :  { %v688_v41 = vpack.c.bf16 %v685_v39, %v685_v39  ;;  %v739_v1 = vpack.c.bf16 %v735_v61, %v735_v61 }
 0x12f   :  { %v634_v49 = vpack.c.bf16 %v631_v46, %v631_v46  ;;  %v793_v15 = vpack.c.bf16 %v789_v9, %v789_v9 }
 0x130   :  { %v1041_v47 = vsel %vm903_vm1, %v688_v41, 0  ;;  %3720 = vmatmul.msk.bf16.vlgmr.msrb.gmra.mxu1 %vm903_vm1, %v312_v43  ;;  %v1166_v3 = vsel %vm1164_vm2, %v739_v1, 0 }
 0x131   :  { %3722 = vmatmul.msk.bf16.vlgmr.msrb.gmra.mxu3 %vm903_vm1, %v366_v44  ;;  %v1003_v51 = vsel %vm903_vm1, %v634_v49, 0  ;;  %v1204_v20 = vsel %vm1164_vm2, %v793_v15, 0 }
 0x132   :  { %1050 = vmatpush.bf16.xpose.msra.mxu3 %v1041_v47  ;;  %1012 = vmatpush.bf16.xpose.msra.mxu1 %v1003_v51 }
 0x133   :  { %1175 = vmatpush.bf16.msrb.mxu0 %v1166_v3  ;;  %v736_v6 = vpop.f32.mrf.mxu0  ;;  %v896_v11 = vpop.f32.mrf.mxu3  ;;  %1213 = vmatpush.bf16.msrb.mxu2 %v1204_v20 }
 0x134   :  { %v842_v62 = vpop.f32.mrf.mxu2  ;;  %v737_v8 = vadd.f32 %v4474_v58, %v736_v6  ;;  %v897_v13 = vadd.f32 %v4477_v5, %v896_v11  ;;  %v790_v24 = vpop.f32.mrf.mxu1 }
 0x135   :  { %v843_v63 = vadd.f32 %v4475_v59, %v842_v62  ;;  %v791_v25 = vadd.f32 %v4476_v4, %v790_v24 }
 0x136   :  { %v740_v14 = vpack.c.bf16 %v737_v8, %v737_v8  ;;  %v901_v19 = vpack.c.bf16 %v897_v13, %v897_v13 }
 0x137   :  { %v847_v2 = vpack.c.bf16 %v843_v63, %v843_v63  ;;  %v794_v28 = vpack.c.bf16 %v791_v25, %v791_v25 }
 0x138   :  { %3723 = vmatmul.msk.bf16.vlgmr.msra.gmra.mxu0 %vm903_vm1, %v419_v52  ;;  %v1185_v21 = vsel %vm1164_vm2, %v740_v14, 0  ;;  %v1280_v22 = vsel %vm1164_vm2, %v901_v19, 0 }
 0x139   :  { %3725 = vmatmul.msk.bf16.vlgmr.msra.gmra.mxu2 %vm903_vm1, %v473_v53  ;;  %v1242_v0 = vsel %vm1164_vm2, %v847_v2, 0  ;;  %v1223_v30 = vsel %vm1164_vm2, %v794_v28, 0 }
 0x13a   :  { %1251 = vmatpush.bf16.msra.mxu0 %v1242_v0  ;;  %1194 = vmatpush.bf16.msrb.mxu1 %v1185_v21 }
 0x13b   :  { %1289 = vmatpush.bf16.msra.mxu2 %v1280_v22  ;;  %v898_v26 = vpop.f32.mrf.mxu3  ;;  %1232 = vmatpush.bf16.msrb.mxu3 %v1223_v30 }
 0x13c   :  { %v844_v10 = vpop.f32.mrf.mxu2  ;;  %v899_v27 = vadd.f32 %v4477_v5, %v898_v26 }
 0x13d   :  { %v845_v12 = vadd.f32 %v4475_v59, %v844_v10 }
 0x13e   :  { %v902_v29 = vpack.c.bf16 %v899_v27, %v899_v27 }
 0x13f   :  { %v848_v16 = vpack.c.bf16 %v845_v12, %v845_v12 }
 0x140   :  { %3724 = vmatmul.msk.bf16.vlgmr.msra.gmra.mxu1 %vm903_vm1, %v420_v56  ;;  %v1299_v31 = vsel %vm1164_vm2, %v902_v29, 0 }
 0x141   :  { %3726 = vmatmul.msk.bf16.vlgmr.msra.gmra.mxu3 %vm903_vm1, %v474_v57  ;;  %v1261_v23 = vsel %vm1164_vm2, %v848_v16, 0 }
 0x142   :  { %1270 = vmatpush.bf16.msra.mxu1 %v1261_v23  ;;  %1308 = vmatpush.bf16.msra.mxu3 %v1299_v31 }
 0x1a5   :  { %v919_v32 = vpop.f32.mrf.mxu0 }
 0x1a6   :  { %v1056_v33 = vmul.f32 0.25, %v919_v32 }
 0x1a8   :  { %v1065_v34 = vsel %vm1064_vm3, %v1056_v33, -inf }
 0x1a9   :  { %1066 = vmax.xlane.f32.xlu1 %v1065_v34 }
 0x1ac   :  { %v957_v35 = vpop.f32.mrf.mxu2 }
 0x1ad   :  { %v1058_v36 = vmul.f32 0.25, %v957_v35  ;;  %v921_v37 = vpop.f32.mrf.mxu0  ;;  %v938_v38 = vpop.f32.mrf.mxu1 }
 0x1ae   :  { %v1057_v39 = vmul.f32 0.25, %v938_v38 }
 0x1af   :  { %v1071_v40 = vsel %vm1064_vm3, %v1058_v36, -inf }
 0x1b0   :  { %1072 = vmax.xlane.f32.xlu0 %v1071_v40  ;;  %v1068_v41 = vsel %vm1064_vm3, %v1057_v39, -inf }
 0x1b1   :  { %1069 = vmax.xlane.f32.xlu1 %v1068_v41 }
 0x1b4   :  { %v959_v42 = vpop.f32.mrf.mxu2  ;;  %v976_v43 = vpop.f32.mrf.mxu3 }
 0x1b5   :  { %v1059_v44 = vmul.f32 0.25, %v976_v43  ;;  %v940_v45 = vpop.f32.mrf.mxu1  ;;  %v995_v46 = vpop.f32.mrf.mxu0 }
 0x1b6   :  { %v1060_v48 = vmul.f32 0.25, %v995_v46 }
 0x1b7   :  { %v1074_v47 = vsel %vm1064_vm3, %v1059_v44, -inf }
 0x1b8   :  { %1075 = vmax.xlane.f32.xlu0 %v1074_v47  ;;  %v1077_v52 = vsel %vm1064_vm3, %v1060_v48, -inf }
 0x1bc   :  { %v978_v49 = vpop.f32.mrf.mxu3  ;;  %v1033_v50 = vpop.f32.mrf.mxu2 }
 0x1bd   :  { %v1062_v51 = vmul.f32 0.25, %v1033_v50  ;;  %v1014_v53 = vpop.f32.mrf.mxu1  ;;  %v997_v54 = vpop.f32.mrf.mxu0 }
 0x1be   :  { %v1061_v55 = vmul.f32 0.25, %v1014_v53 }
 0x1bf   :  { %v1083_v56 = vsel %vm1064_vm3, %v1062_v51, -inf }
 0x1c0   :  { %1084 = vmax.xlane.f32.xlu2 %v1083_v56  ;;  %1078 = vmax.xlane.f32.xlu0 %v1077_v52  ;;  %v1080_v57 = vsel %vm1064_vm3, %v1061_v55, -inf }
 0x1c1   :  { %1081 = vmax.xlane.f32.xlu1 %v1080_v57 }
 0x1c4   :  { %v1035_v58 = vpop.f32.mrf.mxu2  ;;  %v1052_v59 = vpop.f32.mrf.mxu3 }
 0x1c5   :  { %v1063_v60 = vmul.f32 0.25, %v1052_v59  ;;  %v1016_v61 = vpop.f32.mrf.mxu1 }
 0x1c7   :  { %v1086_v62 = vsel %vm1064_vm3, %v1063_v60, -inf }
 0x1c8   :  { %1087 = vmax.xlane.f32.xlu2 %v1086_v62 }
 0x1cc   :  { %v1054_v63 = vpop.f32.mrf.mxu3 }
 0x21c   :  { %v1067_v1 = vpop.xlane.xlu1 %1066 }
 0x21d   :  { %v1089_v2 = vsub.f32 %v1056_v33, %v1067_v1 }
 0x21f   :  { %v1097_v3 = vmul.f32 1.442695, %v1089_v2 }
 0x221   :  { %4512 = vpow2.f32 %v1097_v3 }
 0x223   :  { %v1073_v4 = vpop.xlane.xlu0 %1072 }
 0x224   :  { %v1091_v0 = vsub.f32 %v1058_v36, %v1073_v4  ;;  %v1070_v5 = vpop.xlane.xlu1 %1069 }
 0x225   :  { %v1090_v7 = vsub.f32 %v1057_v39, %v1070_v5 }
 0x226   :  { %v1101_v6 = vmul.f32 1.442695, %v1091_v0 }
 0x227   :  { %v4513_v8 = vpop.eup %4512  ;;  %v1099_v10 = vmul.f32 1.442695, %v1090_v7 }
 0x228   :  { %4514 = vpow2.f32 %v1101_v6  ;;  %v1113_v9 = vsel %vm1064_vm3, %v4513_v8, 0.0 }
 0x229   :  { %1114 = vadd.xlane.f32.xlu1 %v1113_v9  ;;  %4516 = vpow2.f32 %v1099_v10 }
 0x22b   :  { %v1076_v11 = vpop.xlane.xlu0 %1075 }
 0x22c   :  { %v1092_v12 = vsub.f32 %v1059_v44, %v1076_v11 }
 0x22e   :  { %v4515_v13 = vpop.eup %4514  ;;  %v1103_v14 = vmul.f32 1.442695, %v1092_v12 }
 0x22f   :  { %v1119_v15 = vsel %vm1064_vm3, %v4515_v13, 0.0  ;;  %v4517_v20 = vpop.eup %4516 }
 0x230   :  { %4518 = vpow2.f32 %v1103_v14  ;;  %1120 = vadd.xlane.f32.xlu2 %v1119_v15  ;;  %v1116_v28 = vsel %vm1064_vm3, %v4517_v20, 0.0 }
 0x233   :  { %v1085_v16 = vpop.xlane.xlu2 %1084  ;;  %v1079_v19 = vpop.xlane.xlu0 %1078 }
 0x234   :  { %v1095_v21 = vsub.f32 %v1062_v51, %v1085_v16  ;;  %v1093_v22 = vsub.f32 %v1060_v48, %v1079_v19  ;;  %v1082_v23 = vpop.xlane.xlu1 %1081 }
 0x235   :  { %v1094_v27 = vsub.f32 %v1061_v55, %v1082_v23 }
 0x236   :  { %v4519_v24 = vpop.eup %4518  ;;  %v1109_v25 = vmul.f32 1.442695, %v1095_v21  ;;  %v1105_v26 = vmul.f32 1.442695, %v1093_v22 }
 0x237   :  { %v1122_v29 = vsel %vm1064_vm3, %v4519_v24, 0.0  ;;  %v1107_v30 = vmul.f32 1.442695, %v1094_v27 }
 0x238   :  { %4520 = vpow2.f32 %v1109_v25  ;;  %1117 = vadd.xlane.f32.xlu2 %v1116_v28  ;;  %1123 = vadd.xlane.f32.xlu0 %v1122_v29 }
 0x239   :  { %4522 = vpow2.f32 %v1105_v26 }
 0x23a   :  { %4524 = vpow2.f32 %v1107_v30 }
 0x23b   :  { %v1088_v31 = vpop.xlane.xlu2 %1087 }
 0x23c   :  { %v1096_v32 = vsub.f32 %v1063_v60, %v1088_v31  ;;  %v4285_v31 = vld [vmem:[%s4812_s14 + $0x18] sm:$0xff] }
 0x23e   :  { %v4521_v33 = vpop.eup %4520  ;;  %v1111_v34 = vmul.f32 1.442695, %v1096_v32  ;;  %v4284_v32 = vld [vmem:[%s4812_s14 + $0x10] sm:$0xff] }
 0x23f   :  { %v4523_v35 = vpop.eup %4522  ;;  %v1131_v36 = vsel %vm1064_vm3, %v4521_v33, 0.0 }
 0x240   :  { %4526 = vpow2.f32 %v1111_v34  ;;  %1132 = vadd.xlane.f32.xlu0 %v1131_v36  ;;  %v1125_v37 = vsel %vm1064_vm3, %v4523_v35, 0.0  ;;  %v4525_v38 = vpop.eup %4524  ;;  %v4282_v34 = vld [vmem:[%s4812_s14] sm:$0xff] }
 0x241   :  { %1126 = vadd.xlane.f32.xlu2 %v1125_v37  ;;  %v1128_v41 = vsel %vm1064_vm3, %v4525_v38, 0.0 }
 0x246   :  { %v4527_v39 = vpop.eup %4526 }
 0x247   :  { %v1134_v40 = vsel %vm1064_vm3, %v4527_v39, 0.0 }
 0x248   :  { %1135 = vadd.xlane.f32.xlu1 %v1134_v40  ;;  %1129 = vadd.xlane.f32.xlu0 %v1128_v41 }
 0x29c   :  { %v1115_v42 = vpop.xlane.xlu1 %1114 }
 0x29d   :  { %4528 = vrcp.f32 %v1115_v42 }
 0x2a3   :  { %v1121_v43 = vpop.xlane.xlu2 %1120  ;;  %v4529_v44 = vpop.eup %4528 }
 0x2a4   :  { %4530 = vrcp.f32 %v1121_v43  ;;  %v1145_v45 = vmul.f32 %v4529_v44, %v4513_v8 }
 0x2a6   :  { %v1153_v46 = vpack.c.bf16 %v1145_v45, %v1145_v45 }
 0x2a8   :  { %3727 = vmatmul.msk.bf16.vlgmr.msrb.gmra.mxu0 %vm1064_vm3, %v1153_v46 }
 0x2a9   :  { %1390 = vmatpush.bf16.msrb.mxu0 %v4285_v31 }
 0x2aa   :  { %v4531_v47 = vpop.eup %4530 }
 0x2ab   :  { %v1147_v48 = vmul.f32 %v4531_v47, %v4515_v13  ;;  %v1118_v49 = vpop.xlane.xlu2 %1117  ;;  %v1124_v50 = vpop.xlane.xlu0 %1123 }
 0x2ac   :  { %4532 = vrcp.f32 %v1118_v49 }
 0x2ad   :  { %v1155_v51 = vpack.c.bf16 %v1147_v48, %v1147_v48  ;;  %4534 = vrcp.f32 %v1124_v50  ;;  %1391 = vmatpush.bf16.msrb.mxu0 %v4284_v32 }
 0x2af   :  { %3729 = vmatmul.msk.bf16.vlgmr.msrb.gmra.mxu2 %vm1064_vm3, %v1155_v51  ;;  %v4478_v51 = vld [vmem:[%s4817_s19] ss:$0 sm:$0xff]  ;;  %s5511_s19 = sld [smem:[#allocation16_spill]] }
 0x2b2   :  { %v4533_v52 = vpop.eup %4532 }
 0x2b3   :  { %v4535_v53 = vpop.eup %4534  ;;  %v1146_v54 = vmul.f32 %v4533_v52, %v4517_v20  ;;  %v1133_v55 = vpop.xlane.xlu0 %1132 }
 0x2b4   :  { %v1148_v56 = vmul.f32 %v4535_v53, %v4519_v24  ;;  %v1127_v57 = vpop.xlane.xlu2 %1126  ;;  %4536 = vrcp.f32 %v1133_v55 }
 0x2b5   :  { %v1154_v58 = vpack.c.bf16 %v1146_v54, %v1146_v54  ;;  %4538 = vrcp.f32 %v1127_v57 }
 0x2b6   :  { %v1156_v59 = vpack.c.bf16 %v1148_v56, %v1148_v56 }
 0x2b7   :  { %3728 = vmatmul.msk.bf16.vlgmr.msrb.gmra.mxu1 %vm1064_vm3, %v1154_v58 }
 0x2b8   :  { %3730 = vmatmul.msk.bf16.vlgmr.msrb.gmra.mxu3 %vm1064_vm3, %v1156_v59 }
 0x2ba   :  { %v4537_v60 = vpop.eup %4536 }
 0x2bb   :  { %v4539_v61 = vpop.eup %4538  ;;  %v1151_v62 = vmul.f32 %v4537_v60, %v4521_v33  ;;  %v1136_v63 = vpop.xlane.xlu1 %1135  ;;  %v4283_v33 = vld [vmem:[%s4812_s14 + $0x8] sm:$0xff]  ;;  %v4756_v60 = vmov 64.0   ;;  %s5510_s14 = sld [smem:[#allocation22_spill]] }
 0x2bc   :  { %v1130_v1 = vpop.xlane.xlu0 %1129  ;;  %v1149_v2 = vmul.f32 %v4539_v61, %v4523_v35  ;;  %4540 = vrcp.f32 %v1136_v63  ;;  %1392 = vmatpush.bf16.msrb.mxu0 %v4283_v33 }
 0x2bd   :  { %v1159_v3 = vpack.c.bf16 %v1151_v62, %v1151_v62  ;;  %4542 = vrcp.f32 %v1130_v1 }
 0x2be   :  { %v1157_v4 = vpack.c.bf16 %v1149_v2, %v1149_v2  ;;  %4544 = vrcp.f32 %v4756_v60 }
 0x2bf   :  { %3733 = vmatmul.msk.bf16.vlgmr.msra.gmra.mxu2 %vm1064_vm3, %v1159_v3 }
 0x2c0   :  { %3731 = vmatmul.msk.bf16.vlgmr.msra.gmra.mxu0 %vm1064_vm3, %v1157_v4 }
 0x2c1   :  { %1393 = vmatpush.bf16.msrb.mxu0 %v4282_v34 }
 0x2c2   :  { %v4541_v0 = vpop.eup %4540 }
 0x2c3   :  { %v4543_v5 = vpop.eup %4542  ;;  %v1152_v6 = vmul.f32 %v4541_v0, %v4527_v39 }
 0x2c4   :  { %v1150_v7 = vmul.f32 %v4543_v5, %v4525_v38  ;;  %v4545_v61 = vpop.eup %4544 }
 0x2c5   :  { %v1160_v8 = vpack.c.bf16 %v1152_v6, %v1152_v6  ;;  %v1411_v62 = vmul.f32 64.0, %v4545_v61  ;;  %vm1415_vm6 = vweird.f32 %v4545_v61 }
 0x2c6   :  { %v1158_v9 = vpack.c.bf16 %v1150_v7, %v1150_v7 }
 0x2c7   :  { %v1412_v63 = vsub.f32 1.0, %v1411_v62  ;;  %v4482_v62 = vld [vmem:[%s5507_s29] ss:$0 sm:$0xff]  ;;  %s5536_s29 = sld [smem:[#allocation33_spill]] }
 0x2c8   :  { %3732 = vmatmul.msk.bf16.vlgmr.msra.gmra.mxu1 %vm1064_vm3, %v1158_v9  ;;  %3734 = vmatmul.msk.bf16.vlgmr.msra.gmra.mxu3 %vm1064_vm3, %v1160_v8 }
 0x2c9   :  { %v1413_v1 = vmul.f32 %v4545_v61, %v1412_v63 }
 0x2cb   :  { %v1414_v2 = vadd.f32 %v4545_v61, %v1413_v1 }
 0x325   :  { %v1177_v10 = vpop.f32.mrf.mxu0 }
 0x32d   :  { %v1179_v11 = vpop.f32.mrf.mxu0 }
 0x32e   :  { %v4289_v11 = vld [vmem:[%s4832_s6 + $0x18] sm:$0xff] }
 0x32f   :  { %1509 = vmatpush.bf16.msrb.mxu1 %v4289_v11 }
 0x332   :  { %v1215_v12 = vpop.f32.mrf.mxu2 }
 0x334   :  { %v1196_v13 = vpop.f32.mrf.mxu1 }
 0x33a   :  { %v1217_v14 = vpop.f32.mrf.mxu2 }
 0x33b   :  { %v1234_v15 = vpop.f32.mrf.mxu3 }
 0x33c   :  { %v4436_v16 = vpack.i.bf16 %v1234_v15, %v1215_v12  ;;  %v1198_v19 = vpop.f32.mrf.mxu1  ;;  %v4288_v12 = vld [vmem:[%s4832_s6 + $0x10] sm:$0xff] }
 0x33d   :  { %v1253_v20 = vpop.f32.mrf.mxu0  ;;  %1510 = vmatpush.bf16.msrb.mxu1 %v4288_v12 }
 0x33e   :  { %4437 = vrot.lane.b32.xlu1 %v4436_v16, %s4753_s5  ;;  %v4286_v16 = vld [vmem:[%s4832_s6] sm:$0xff] }
 0x342   :  { %v1291_v21 = vpop.f32.mrf.mxu2 }
 0x343   :  { %v1236_v22 = vpop.f32.mrf.mxu3 }
 0x345   :  { %v1255_v23 = vpop.f32.mrf.mxu0  ;;  %v1272_v24 = vpop.f32.mrf.mxu1 }
 0x346   :  { %v4441_v25 = vpack.i.bf16 %v1272_v24, %v1253_v20  ;;  %v4297_v20 = vld [vmem:[%s4842_s20 + $0x38] sm:$0xff]  ;;  %v4296_v23 = vld [vmem:[%s4842_s20 + $0x30] sm:$0xff] }
 0x347   :  { %1590 = vmatpush.bf16.msrb.mxu2 %v4297_v20  ;;  %v4309_v20 = vld [vmem:[%s5508_s3 + $0x58] sm:$0xff] }
 0x348   :  { %4442 = vrot.lane.b32.xlu2 %v4441_v25, %s4754_s9 }
 0x34a   :  { %v1293_v26 = vpop.f32.mrf.mxu2 }
 0x34b   :  { %v1310_v27 = vpop.f32.mrf.mxu3  ;;  %1591 = vmatpush.bf16.msrb.mxu2 %v4296_v23  ;;  %v4304_v23 = vld [vmem:[%s5508_s3 + $0x30] sm:$0xff] }
 0x34c   :  { %v4446_v28 = vpack.i.bf16 %v1310_v27, %v1291_v21  ;;  %v4295_v27 = vld [vmem:[%s4842_s20 + $0x28] sm:$0xff] }
 0x34d   :  { %v1274_v29 = vpop.f32.mrf.mxu1 }
 0x34e   :  { %4447 = vrot.lane.b32.xlu0 %v4446_v28, %s4755_s17 }
 0x34f   :  { %1592 = vmatpush.bf16.msrb.mxu2 %v4295_v27  ;;  %v4303_v27 = vld [vmem:[%s5508_s3 + $0x28] sm:$0xff] }
 0x353   :  { %v1312_v30 = vpop.f32.mrf.mxu3 }
 0x354   :  { %v4294_v30 = vld [vmem:[%s4842_s20 + $0x20] sm:$0xff] }
 0x355   :  { %1593 = vmatpush.bf16.msrb.mxu2 %v4294_v30 }
 0x3a2   :  { %v4443_v38 = vpop.permute.xlu2 %4442 }
 0x3a3   :  { %v4445_v41 = vunpack.i.h.bf16 %v4443_v38  ;;  %v4444_v42 = vunpack.i.l.bf16 %v4443_v38 }
 0x3b0   :  { %v4438_v35 = vpop.permute.xlu1 %4437 }
 0x3b1   :  { %v4440_v36 = vunpack.i.h.bf16 %v4438_v35  ;;  %v4439_v37 = vunpack.i.l.bf16 %v4438_v35 }
 0x3b3   :  { %v1339_v39 = vsel %vm903_vm1, %v1196_v13, %v4440_v36  ;;  %v1338_v40 = vsel %vm903_vm1, %v1177_v10, %v4439_v37  ;;  %v4287_v13 = vld [vmem:[%s4832_s6 + $0x8] sm:$0xff]  ;;  %s5514_s6 = sld [smem:[#allocation19_spill]] }
 0x3b4   :  { %v1341_v46 = vsel %vm1340_vm4, %v1338_v40, %v4444_v42  ;;  %v1342_v47 = vsel %vm1340_vm4, %v1339_v39, %v4445_v41  ;;  %1511 = vmatpush.bf16.msrb.mxu1 %v4287_v13  ;;  %v4479_v39 = vld [vmem:[%s4822_s24] ss:$0 sm:$0xff]  ;;  %s5512_s24 = sld [smem:[#allocation17_spill]] }
 0x3b8   :  { %1512 = vmatpush.bf16.msrb.mxu1 %v4286_v16  ;;  %v4301_v16 = vld [vmem:[%s5508_s3 + $0x18] sm:$0xff] }
 0x3b9   :  { %1706 = vmatpush.bf16.msrb.mxu3 %v4301_v16  ;;  %v4333_v16 = vld [vmem:[%s5510_s14 + $0x18] sm:$0xff] }
 0x3bc   :  { %1814 = vmatpush.bf16.msra.mxu1 %v4309_v20  ;;  %v4332_v20 = vld [vmem:[%s5510_s14 + $0x10] sm:$0xff] }
 0x3c0   :  { %v4448_v43 = vpop.permute.xlu0 %4447 }
 0x3c1   :  { %v4450_v44 = vunpack.i.h.bf16 %v4448_v43  ;;  %v4449_v45 = vunpack.i.l.bf16 %v4448_v43  ;;  %v4480_v43 = vld [vmem:[%s5505_s21] ss:$0 sm:$0xff]  ;;  %s5534_s21 = sld [smem:[#allocation32_spill]] }
 0x3c3   :  { %v1344_v48 = vsel %vm1343_vm5, %v1341_v46, %v4449_v45  ;;  %v1345_v49 = vsel %vm1343_vm5, %v1342_v47, %v4450_v44 }
 0x3c4   :  { %v1346_v50 = vpack.c.bf16 %v1345_v49, %v1344_v48 }
 0x3c6   :  { %3751 = vmatmul.msk.bf16.vlgmr.msrb.gmra.mxu0 %vm293_vm0, %v1346_v50  ;;  %v4293_v50 = vld [vmem:[%s4842_s20 + $0x18] sm:$0xff] }
 0x3c7   :  { %1594 = vmatpush.bf16.msrb.mxu2 %v4293_v50  ;;  %v4311_v50 = vld [vmem:[%s5508_s3 + $0x68] sm:$0xff] }
 0x443   :  { %v1395_v52 = vpop.f32.mrf.mxu0 }
 0x444   :  { %v1396_v53 = vadd.f32 %v4478_v51, %v1395_v52  ;;  %v4291_v52 = vld [vmem:[%s4842_s20 + $0x8] sm:$0xff] }
 0x446   :  { %v1400_v54 = vadd.f32 %v1396_v53, %v5038_v17  ;;  %v5191_v17 = vsel %vm1415_vm6, %v4545_v61, %v1414_v2  ;;  %v4290_v53 = vld [vmem:[%s4842_s20] sm:$0xff] }
 0x448   :  { %v1404_v55 = vsel %vm293_vm0, %v1400_v54, 0.0 }
 0x449   :  { %1405 = vadd.xlane.f32.xlu2 %v1404_v55  ;;  %v4481_v55 = vld [vmem:[%s5506_s25] ss:$0 sm:$0xff]  ;;  %s5535_s25 = sld [smem:[#allocation41_spill]] }
 0x44b   :  { %v1397_v56 = vpop.f32.mrf.mxu0 }
 0x44c   :  { %v1398_v57 = vadd.f32 %v4478_v51, %v1397_v56  ;;  %v4292_v51 = vld [vmem:[%s4842_s20 + $0x10] sm:$0xff]  ;;  %s5515_s20 = sld [smem:[#allocation23_spill]] }
 0x44d   :  { %1595 = vmatpush.bf16.msrb.mxu2 %v4292_v51  ;;  %v4315_v51 = vld [vmem:[%s5509_s8 + $0x8] sm:$0xff] }
 0x44e   :  { %v1401_v58 = vadd.f32 %v1398_v57, %v5040_v18 }
 0x450   :  { %v1407_v59 = vsel %vm293_vm0, %v1401_v58, 0.0 }
 0x451   :  { %1408 = vadd.xlane.f32.xlu1 %v1407_v59  ;;  %1596 = vmatpush.bf16.msrb.mxu2 %v4291_v52 }
 0x455   :  { %1597 = vmatpush.bf16.msrb.mxu2 %v4290_v53  ;;  %v4319_v53 = vld [vmem:[%s5509_s8 + $0x28] sm:$0xff] }
 0x4bc   :  { %v1406_v3 = vpop.xlane.xlu2 %1405 }
 0x4bd   :  { %v1417_v4 = vmul.f32 %v5191_v17, %v1406_v3 }
 0x4bf   :  { %v1419_v18 = vsub.f32 %v1400_v54, %v1417_v4 }
 0x4c1   :  { %v1421_v0 = vmul.f32 %v1419_v18, %v1419_v18 }
 0x4c3   :  { %v1423_v5 = vsel %vm293_vm0, %v1421_v0, 0.0 }
 0x4c4   :  { %v1409_v6 = vpop.xlane.xlu1 %1408  ;;  %1424 = vadd.xlane.f32.xlu0 %v1423_v5 }
 0x4c5   :  { %v1418_v7 = vmul.f32 %v5191_v17, %v1409_v6 }
 0x4c7   :  { %v1420_v8 = vsub.f32 %v1401_v58, %v1418_v7 }
 0x4c9   :  { %v1422_v9 = vmul.f32 %v1420_v8, %v1420_v8 }
 0x4cb   :  { %v1426_v10 = vsel %vm293_vm0, %v1422_v9, 0.0 }
 0x4cc   :  { %1427 = vadd.xlane.f32.xlu2 %v1426_v10 }
 0x537   :  { %v1425_v14 = vpop.xlane.xlu0 %1424 }
 0x538   :  { %v1429_v15 = vmul.f32 %v1425_v14, %v5191_v17 }
 0x53a   :  { %v1431_v19 = vadd.f32 1e-05, %v1429_v15 }
 0x53c   :  { %4546 = vrsqrt.f32 %v1431_v19  ;;  %vm1439_vm8 = vweird.f32 %v1431_v19 }
 0x53f   :  { %v1428_v21 = vpop.xlane.xlu2 %1427 }
 0x540   :  { %v1430_v22 = vmul.f32 %v1428_v21, %v5191_v17  ;;  %v4325_v21 = vld [vmem:[%s5509_s8 + $0x58] sm:$0xff] }
 0x541   :  { %2028 = vmatpush.bf16.msra.mxu2 %v4325_v21  ;;  %v4336_v21 = vld [vmem:[%s5510_s14 + $0x30] sm:$0xff] }
 0x542   :  { %v4547_v24 = vpop.eup %4546  ;;  %v1432_v25 = vadd.f32 1e-05, %v1430_v22  ;;  %v4300_v22 = vld [vmem:[%s5508_s3 + $0x10] sm:$0xff] }
 0x543   :  { %v1434_v26 = vmul.f32 %v4547_v24, %v1431_v19  ;;  %vm1440_vm7 = vweird.f32 %v4547_v24  ;;  %v4305_v19 = vld [vmem:[%s5508_s3 + $0x38] sm:$0xff]  ;;  %1707 = vmatpush.bf16.msrb.mxu3 %v4300_v22  ;;  %v4327_v22 = vld [vmem:[%s5509_s8 + $0x68] sm:$0xff] }
 0x544   :  { %4548 = vrsqrt.f32 %v1432_v25  ;;  %vm1441_vm9 = vmor %vm1439_vm8, %vm1440_vm7  ;;  %vm1449_vm11 = vweird.f32 %v1432_v25  ;;  %1760 = vmatpush.bf16.msra.mxu0 %v4305_v19  ;;  %v4337_v19 = vld [vmem:[%s5510_s14 + $0x38] sm:$0xff] }
 0x545   :  { %v1435_v28 = vmul.f32 %v4547_v24, %v1434_v26  ;;  %v4299_v26 = vld [vmem:[%s5508_s3 + $0x8] sm:$0xff] }
 0x547   :  { %v1436_v29 = vmul.f32 0.5, %v1435_v28  ;;  %v4307_v28 = vld [vmem:[%s5508_s3 + $0x48] sm:$0xff]  ;;  %1708 = vmatpush.bf16.msrb.mxu3 %v4299_v26  ;;  %v4330_v26 = vld [vmem:[%s5510_s14] sm:$0xff] }
 0x548   :  { %1761 = vmatpush.bf16.msra.mxu0 %v4304_v23  ;;  %v4331_v23 = vld [vmem:[%s5510_s14 + $0x8] sm:$0xff] }
 0x549   :  { %v1437_v31 = vsub.f32 1.5, %v1436_v29  ;;  %v4323_v29 = vld [vmem:[%s5509_s8 + $0x48] sm:$0xff] }
 0x54a   :  { %v4549_v32 = vpop.eup %4548 }
 0x54b   :  { %v1438_v33 = vmul.f32 %v4547_v24, %v1437_v31  ;;  %v1444_v34 = vmul.f32 %v4549_v32, %v1432_v25  ;;  %vm1450_vm10 = vweird.f32 %v4549_v32  ;;  %v4324_v25 = vld [vmem:[%s5509_s8 + $0x50] sm:$0xff] }
 0x54c   :  { %vm1451_vm12 = vmor %vm1449_vm11, %vm1450_vm10  ;;  %2029 = vmatpush.bf16.msra.mxu2 %v4324_v25  ;;  %1762 = vmatpush.bf16.msra.mxu0 %v4303_v27  ;;  %v4326_v25 = vld [vmem:[%s5509_s8 + $0x60] sm:$0xff] }
 0x54d   :  { %v1445_v35 = vmul.f32 %v4549_v32, %v1444_v34  ;;  %v1442_v36 = vsel %vm1441_vm9, %v4547_v24, %v1438_v33  ;;  %v4308_v24 = vld [vmem:[%s5508_s3 + $0x50] sm:$0xff]  ;;  %v4302_v33 = vld [vmem:[%s5508_s3 + $0x20] sm:$0xff] }
 0x54e   :  { %v1453_v40 = vmul.f32 %v1442_v36, %v1419_v18  ;;  %1815 = vmatpush.bf16.msra.mxu1 %v4308_v24  ;;  %v4306_v34 = vld [vmem:[%s5508_s3 + $0x40] sm:$0xff]  ;;  %v4335_v24 = vld [vmem:[%s5510_s14 + $0x28] sm:$0xff] }
 0x54f   :  { %v1446_v37 = vmul.f32 0.5, %v1445_v35  ;;  %v4322_v36 = vld [vmem:[%s5509_s8 + $0x40] sm:$0xff] }
 0x550   :  { %v1458_v44 = vmul.f32 %v4479_v39, %v1453_v40  ;;  %2030 = vmatpush.bf16.msra.mxu2 %v4323_v29  ;;  %1763 = vmatpush.bf16.msra.mxu0 %v4302_v33  ;;  %v4334_v27 = vld [vmem:[%s5510_s14 + $0x20] sm:$0xff]  ;;  %v4344_v29 = vld [vmem:[%s5510_s14 + $0x70] sm:$0xff] }
 0x551   :  { %v1447_v38 = vsub.f32 1.5, %v1446_v37  ;;  %v4313_v37 = vld [vmem:[%s5508_s3 + $0x78] sm:$0xff] }
 0x552   :  { %v1463_v47 = vadd.f32 %v4480_v43, %v1458_v44  ;;  %1816 = vmatpush.bf16.msra.mxu1 %v4307_v28  ;;  %v4316_v44 = vld [vmem:[%s5509_s8 + $0x10] sm:$0xff]  ;;  %v4345_v28 = vld [vmem:[%s5510_s14 + $0x78] sm:$0xff] }
 0x553   :  { %v1448_v41 = vmul.f32 %v4549_v32, %v1447_v38  ;;  %v4317_v38 = vld [vmem:[%s5509_s8 + $0x18] sm:$0xff] }
 0x554   :  { %2031 = vmatpush.bf16.msra.mxu2 %v4322_v36  ;;  %1920 = vmatpush.bf16.msrb.mxu0 %v4317_v38  ;;  %v4488_v38 = vld [vmem:[%s5513_s30 + $0x2] ss:$0 sm:$0xff] }
 0x555   :  { %v1452_v42 = vsel %vm1451_vm12, %v4549_v32, %v1448_v41  ;;  %v4298_v32 = vld [vmem:[%s5508_s3] sm:$0xff]  ;;  %v4341_v41 = vld [vmem:[%s5510_s14 + $0x58] sm:$0xff] }
 0x556   :  { %v1454_v45 = vmul.f32 %v1452_v42, %v1420_v8  ;;  %1709 = vmatpush.bf16.msrb.mxu3 %v4298_v32  ;;  %1817 = vmatpush.bf16.msra.mxu1 %v4306_v34 }
 0x558   :  { %v1459_v46 = vmul.f32 %v4479_v39, %v1454_v45  ;;  %v4321_v39 = vld [vmem:[%s5509_s8 + $0x38] sm:$0xff]  ;;  %v4320_v45 = vld [vmem:[%s5509_s8 + $0x30] sm:$0xff]  ;;  %1921 = vmatpush.bf16.msrb.mxu0 %v4316_v44 }
 0x55a   :  { %v1464_v48 = vadd.f32 %v4480_v43, %v1459_v46  ;;  %1868 = vmatpush.bf16.msra.mxu3 %v4313_v37  ;;  %v4312_v43 = vld [vmem:[%s5508_s3 + $0x70] sm:$0xff] }
 0x55b   :  { %v4340_v46 = vld [vmem:[%s5510_s14 + $0x50] sm:$0xff] }
 0x55c   :  { %v1465_v49 = vpack.c.bf16 %v1464_v48, %v1463_v47  ;;  %1922 = vmatpush.bf16.msrb.mxu0 %v4315_v51  ;;  %v4485_v51 = vld [vmem:[%s5514_s6 + $0x1] ss:$0 sm:$0xff] }
 0x55e   :  { %3768 = vmatmul.msk.bf16.vlgmr.msrb.gmra.mxu1 %vm293_vm0, %v1465_v49  ;;  %1869 = vmatpush.bf16.msra.mxu3 %v4312_v43 }
 0x55f   :  { %1974 = vmatpush.bf16.msrb.mxu1 %v4321_v39  ;;  %v4489_v39 = vld [vmem:[%s5513_s30] ss:$0 sm:$0xff] }
 0x562   :  { %1870 = vmatpush.bf16.msra.mxu3 %v4311_v50 }
 0x563   :  { %1975 = vmatpush.bf16.msrb.mxu1 %v4320_v45 }
 0x567   :  { %1976 = vmatpush.bf16.msrb.mxu1 %v4319_v53 }
 0x5db   :  { %v1514_v54 = vpop.f32.mrf.mxu1 }
 0x5dc   :  { %v1515_v56 = vadd.f32 %v4481_v55, %v1514_v54  ;;  %v4339_v54 = vld [vmem:[%s5510_s14 + $0x48] sm:$0xff] }
 0x5de   :  { %v1519_v59 = vmax.f32 %v1515_v56, 0.0  ;;  %v4310_v56 = vld [vmem:[%s5508_s3 + $0x60] sm:$0xff]  ;;  %s5537_s3 = sld [smem:[#allocation44_spill]] }
 0x5df   :  { %1871 = vmatpush.bf16.msra.mxu3 %v4310_v56 }
 0x5e3   :  { %v1516_v57 = vpop.f32.mrf.mxu1 }
 0x5e4   :  { %v1517_v58 = vadd.f32 %v4481_v55, %v1516_v57  ;;  %v4314_v57 = vld [vmem:[%s5509_s8] sm:$0xff] }
 0x5e5   :  { %1923 = vmatpush.bf16.msrb.mxu0 %v4314_v57 }
 0x5e6   :  { %v1520_v60 = vmax.f32 %v1517_v58, 0.0 }
 0x5e8   :  { %v1521_v61 = vpack.c.bf16 %v1520_v60, %v1519_v59  ;;  %v4318_v59 = vld [vmem:[%s5509_s8 + $0x20] sm:$0xff] }
 0x5e9   :  { %v4338_v60 = vld [vmem:[%s5510_s14 + $0x40] sm:$0xff]  ;;  %1977 = vmatpush.bf16.msrb.mxu1 %v4318_v59 }
 0x5ea   :  { %1598 = vmatmul.bf16.vlgmr.msrb.gmra.mxu2 %v1521_v61 }
 0x5eb   :  { %2242 = vmatpush.bf16.msrb.mxu2 %v4341_v41 }
 0x5ef   :  { %2243 = vmatpush.bf16.msrb.mxu2 %v4340_v46 }
 0x5f3   :  { %2244 = vmatpush.bf16.msrb.mxu2 %v4339_v54 }
 0x5f7   :  { %2245 = vmatpush.bf16.msrb.mxu2 %v4338_v60 }
 0x66d   :  { %v1599_v63 = vpop.f32.mrf.mxu2 }
 0x66e   :  { %v1600_v1 = vadd.f32 %v4482_v62, %v1599_v63 }
 0x670   :  { %v1604_v2 = vadd.f32 %v1600_v1, %v1463_v47 }
 0x672   :  { %v1608_v3 = vsel %vm293_vm0, %v1604_v2, 0.0 }
 0x673   :  { %1609 = vadd.xlane.f32.xlu1 %v1608_v3 }
 0x675   :  { %v1601_v4 = vpop.f32.mrf.mxu2 }
 0x676   :  { %v1602_v18 = vadd.f32 %v4482_v62, %v1601_v4 }
 0x678   :  { %v1605_v0 = vadd.f32 %v1602_v18, %v1464_v48  ;;  %v4483_v18 = vld [vmem:[%s5511_s19] ss:$0 sm:$0xff]  ;;  %s3373_s19 = sshll.u32 %s5015_s13, 4  ;;  %s3374_s19 = int_to_ptr.hbm [resolvable:$true] %s3373_s19 }
 0x67a   :  { %v1611_v5 = vsel %vm293_vm0, %v1605_v0, 0.0 }
 0x67b   :  { %1612 = vadd.xlane.f32.xlu0 %v1611_v5 }
 0x6e6   :  { %v1610_v6 = vpop.xlane.xlu1 %1609 }
 0x6e7   :  { %v1614_v7 = vmul.f32 %v1610_v6, %v5191_v17 }
 0x6e9   :  { %v5219_v8 = vsub.f32 %v1604_v2, %v1614_v7  ;;  %v4484_v7 = vld [vmem:[%s5512_s24] ss:$0 sm:$0xff] }
 0x6eb   :  { %v1618_v9 = vmul.f32 %v5219_v8, %v5219_v8 }
 0x6ed   :  { %v1620_v10 = vsel %vm293_vm0, %v1618_v9, 0.0 }
 0x6ee   :  { %v1613_v11 = vpop.xlane.xlu0 %1612  ;;  %1621 = vadd.xlane.f32.xlu2 %v1620_v10 }
 0x6ef   :  { %v1615_v12 = vmul.f32 %v1613_v11, %v5191_v17 }
 0x6f1   :  { %v5225_v13 = vsub.f32 %v1605_v0, %v1615_v12 }
 0x6f3   :  { %v1619_v14 = vmul.f32 %v5225_v13, %v5225_v13 }
 0x6f5   :  { %v1623_v15 = vsel %vm293_vm0, %v1619_v14, 0.0 }
 0x6f6   :  { %1624 = vadd.xlane.f32.xlu1 %v1623_v15 }
 0x761   :  { %v1622_v30 = vpop.xlane.xlu2 %1621 }
 0x762   :  { %v1626_v31 = vmul.f32 %v1622_v30, %v5191_v17  ;;  %v4343_v30 = vld [vmem:[%s5510_s14 + $0x68] sm:$0xff] }
 0x764   :  { %v1628_v35 = vadd.f32 1e-05, %v1626_v31  ;;  %v4342_v31 = vld [vmem:[%s5510_s14 + $0x60] sm:$0xff] }
 0x766   :  { %4550 = vrsqrt.f32 %v1628_v35  ;;  %vm1636_vm14 = vweird.f32 %v1628_v35 }
 0x769   :  { %v1625_v40 = vpop.xlane.xlu1 %1624 }
 0x76a   :  { %v1627_v42 = vmul.f32 %v1625_v40, %v5191_v17 }
 0x76c   :  { %v4551_v47 = vpop.eup %4550  ;;  %v1629_v48 = vadd.f32 1e-05, %v1627_v42  ;;  %v4490_v42 = vld [vmem:[%s5513_s30 + $0x1] ss:$0 sm:$0xff] }
 0x76d   :  { %v1631_v49 = vmul.f32 %v4551_v47, %v1628_v35  ;;  %vm1637_vm13 = vweird.f32 %v4551_v47 }
 0x76e   :  { %4552 = vrsqrt.f32 %v1629_v48  ;;  %vm1638_vm15 = vmor %vm1636_vm14, %vm1637_vm13  ;;  %vm1646_vm7 = vweird.f32 %v1629_v48 }
 0x76f   :  { %v1632_v52 = vmul.f32 %v4551_v47, %v1631_v49 }
 0x771   :  { %v1633_v55 = vmul.f32 0.5, %v1632_v52 }
 0x773   :  { %v1634_v58 = vsub.f32 1.5, %v1633_v55 }
 0x774   :  { %v4553_v61 = vpop.eup %4552 }
 0x775   :  { %v1635_v62 = vmul.f32 %v4551_v47, %v1634_v58  ;;  %v1641_v63 = vmul.f32 %v4553_v61, %v1629_v48  ;;  %vm1647_vm6 = vweird.f32 %v4553_v61  ;;  %v4487_v48 = vld [vmem:[%s5514_s6] ss:$0 sm:$0xff] }
 0x776   :  { %vm1648_vm8 = vmor %vm1646_vm7, %vm1647_vm6 }
 0x777   :  { %v1642_v1 = vmul.f32 %v4553_v61, %v1641_v63  ;;  %v1639_v2 = vsel %vm1638_vm15, %v4551_v47, %v1635_v62 }
 0x778   :  { %v1650_v0 = vmul.f32 %v1639_v2, %v5219_v8  ;;  %v4329_v8 = vld [vmem:[%s5509_s8 + $0x78] sm:$0xff] }
 0x779   :  { %v1643_v3 = vmul.f32 0.5, %v1642_v1 }
 0x77a   :  { %v1655_v9 = vmul.f32 %v4483_v18, %v1650_v0 }
 0x77b   :  { %v1644_v4 = vsub.f32 1.5, %v1643_v3 }
 0x77c   :  { %v5268_v12 = vadd.f32 %v4484_v7, %v1655_v9 }
 0x77d   :  { %v1645_v5 = vmul.f32 %v4553_v61, %v1644_v4 }
 0x77f   :  { %v1649_v6 = vsel %vm1648_vm8, %v4553_v61, %v1645_v5  ;;  %v4493_v5 = vld [vmem:[%s5515_s20] ss:$0 sm:$0xff] }
 0x780   :  { %v1651_v10 = vmul.f32 %v1649_v6, %v5225_v13  ;;  %v4328_v13 = vld [vmem:[%s5509_s8 + $0x70] sm:$0xff]  ;;  %s4758_s8 = smov [#allocation8]  }
 0x781   :  { %s3371_s14 = sshll.u32 %s4758_s8, 4  ;;  %s3372_s14 = int_to_ptr.vmem [resolvable:$true] %s3371_s14 }
 0x782   :  { %v1656_v11 = vmul.f32 %v4483_v18, %v1651_v10 }
 0x784   :  { %v5270_v14 = vadd.f32 %v4484_v7, %v1656_v11 }
 0x786   :  { %v1662_v15 = vpack.c.bf16 %v5270_v14, %v5268_v12 }
 0x788   :  { %3817 = vmatmul.msk.bf16.vlgmr.msrb.gmra.mxu3 %vm293_vm0, %v1662_v15  ;;  %3843 = vmatmul.msk.bf16.vlgmr.msra.gmra.mxu0 %vm293_vm0, %v1662_v15 }
 0x789   :  { %3869 = vmatmul.msk.bf16.vlgmr.msra.gmra.mxu1 %vm293_vm0, %v1662_v15  ;;  %3964 = vmatmul.msk.bf16.vlgmr.msra.gmra.mxu2 %vm293_vm0, %v1662_v15 }
 0x78a   :  { %2082 = vmatpush.bf16.msrb.mxu3 %v4329_v8  ;;  %2134 = vmatpush.bf16.msra.mxu0 %v4333_v16  ;;  %v4494_v16 = vld [vmem:[%s5515_s20 + $0x1] ss:$0 sm:$0xff] }
 0x78b   :  { %2188 = vmatpush.bf16.msra.mxu1 %v4337_v19  ;;  %v4492_v19 = vld [vmem:[%s5515_s20 + $0x2] ss:$0 sm:$0xff] }
 0x78e   :  { %2083 = vmatpush.bf16.msrb.mxu3 %v4328_v13  ;;  %2135 = vmatpush.bf16.msra.mxu0 %v4332_v20 }
 0x78f   :  { %2189 = vmatpush.bf16.msra.mxu1 %v4336_v21  ;;  %v4486_v21 = vld [vmem:[%s5514_s6 + $0x2] ss:$0 sm:$0xff] }
 0x792   :  { %2084 = vmatpush.bf16.msrb.mxu3 %v4327_v22  ;;  %2136 = vmatpush.bf16.msra.mxu0 %v4331_v23 }
 0x793   :  { %2190 = vmatpush.bf16.msra.mxu1 %v4335_v24  ;;  %v4495_v24 = vld [vmem:[%s5513_s30 + $0x3] ss:$0 sm:$0xff]  ;;  %s4686_s30 = scalar_lea.hbm %s5015_s13, 2 }
 0x796   :  { %2085 = vmatpush.bf16.msrb.mxu3 %v4326_v25  ;;  %2137 = vmatpush.bf16.msra.mxu0 %v4330_v26 }
 0x797   :  { %2191 = vmatpush.bf16.msra.mxu1 %v4334_v27 }
 0x798   :  { %3895 = vmatmul.msk.bf16.vlgmr.msra.gmra.mxu3 %vm293_vm0, %v1662_v15  ;;  %3912 = vmatmul.msk.bf16.vlgmr.msrb.gmra.mxu0 %vm293_vm0, %v1662_v15 }
 0x799   :  { %3938 = vmatmul.msk.bf16.vlgmr.msrb.gmra.mxu1 %vm293_vm0, %v1662_v15  ;;  %4059 = vmatmul.msk.bf16.vlgmr.msrb.gmra.mxu2 %vm293_vm0, %v1662_v15 }
 0x79a   :  { %2296 = vmatpush.bf16.msra.mxu3 %v4345_v28 }
 0x79e   :  { %2297 = vmatpush.bf16.msra.mxu3 %v4344_v29 }
 0x7a2   :  { %2298 = vmatpush.bf16.msra.mxu3 %v4343_v30 }
 0x7a6   :  { %2299 = vmatpush.bf16.msra.mxu3 %v4342_v31 }
 0x7a8   :  { %3990 = vmatmul.msk.bf16.vlgmr.msrb.gmra.mxu3 %vm293_vm0, %v1662_v15  ;;  %4007 = vmatmul.msk.bf16.vlgmr.msra.gmra.mxu0 %vm293_vm0, %v1662_v15 }
 0x7a9   :  { %4033 = vmatmul.msk.bf16.vlgmr.msra.gmra.mxu1 %vm293_vm0, %v1662_v15 }
 0x7b8   :  { %4085 = vmatmul.msk.bf16.vlgmr.msra.gmra.mxu3 %vm293_vm0, %v1662_v15 }
 0x805   :  { %v1765_v32 = vpop.f32.mrf.mxu0 }
 0x806   :  { %v5302_v33 = vpop.f32.mrf.mxu1  ;;  %v1766_v59 = vadd.f32 %v4485_v51, %v1765_v32 }
 0x807   :  { %v1820_v30 = vadd.f32 %v4486_v21, %v5302_v33 }
 0x808   :  { %v1770_v4 = vpack.c.bf16 %v1766_v59, %v1766_v59  ;;  %v4496_v59 = vld [vmem:[%s5515_s20 + $0x3] ss:$0 sm:$0xff] }
 0x80b   :  { %v1711_v34 = vpop.f32.mrf.mxu3 }
 0x80c   :  { %v2033_v36 = vpop.f32.mrf.mxu2  ;;  %v1712_v58 = vadd.f32 %v4487_v48, %v1711_v34 }
 0x80d   :  { %v1767_v35 = vpop.f32.mrf.mxu0  ;;  %v2034_v40 = vadd.f32 %v4488_v38, %v2033_v36 }
 0x80e   :  { %v5304_v37 = vpop.f32.mrf.mxu1  ;;  %v1716_v2 = vpack.c.bf16 %v1712_v58, %v1712_v58  ;;  %v1768_v11 = vadd.f32 %v4485_v51, %v1767_v35  ;;  %v4491_v35 = vld [vmem:[%s5514_s6 + $0x3] ss:$0 sm:$0xff] }
 0x80f   :  { %v2038_v46 = vpack.c.bf16 %v2034_v40, %v2034_v40  ;;  %v1822_v51 = vadd.f32 %v4486_v21, %v5304_v37 }
 0x810   :  { %v1771_v25 = vpack.c.bf16 %v1768_v11, %v1768_v11 }
 0x811   :  { %v2388_v54 = vsel %vm903_vm1, %v2038_v46, 0 }
 0x813   :  { %v1713_v41 = vpop.f32.mrf.mxu3 }
 0x814   :  { %v2035_v49 = vpop.f32.mrf.mxu2  ;;  %v1714_v10 = vadd.f32 %v4487_v48, %v1713_v41 }
 0x815   :  { %v1925_v43 = vpop.f32.mrf.mxu0  ;;  %v2036_v55 = vadd.f32 %v4488_v38, %v2035_v49 }
 0x816   :  { %v1926_v44 = vadd.f32 %v4489_v39, %v1925_v43  ;;  %v1979_v45 = vpop.f32.mrf.mxu1  ;;  %v1717_v22 = vpack.c.bf16 %v1714_v10, %v1714_v10 }
 0x817   :  { %v1980_v47 = vadd.f32 %v4490_v42, %v1979_v45  ;;  %v2039_v63 = vpack.c.bf16 %v2036_v55, %v2036_v55 }
 0x818   :  { %v1930_v50 = vpack.c.bf16 %v1926_v44, %v1926_v44 }
 0x819   :  { %v1984_v52 = vpack.c.bf16 %v1980_v47, %v1980_v47  ;;  %v2407_v6 = vsel %vm903_vm1, %v2039_v63, 0 }
 0x81a   :  { %v2312_v53 = vsel %vm903_vm1, %v1930_v50, 0 }
 0x81b   :  { %v2350_v56 = vsel %vm903_vm1, %v1984_v52, 0  ;;  %v1873_v57 = vpop.f32.mrf.mxu3  ;;  %2321 = vmatpush.bf16.xpose.msrb.mxu0 %v2312_v53 }
 0x81c   :  { %2359 = vmatpush.bf16.xpose.msra.mxu2 %v2350_v56  ;;  %v2247_v15 = vpop.f32.mrf.mxu2  ;;  %v1874_v47 = vadd.f32 %v4491_v35, %v1873_v57  ;;  %v1825_v57 = vpack.c.bf16 %v1822_v51, %v1822_v51 }
 0x81d   :  { %v1927_v60 = vpop.f32.mrf.mxu0  ;;  %v2248_v27 = vadd.f32 %v4492_v19, %v2247_v15 }
 0x81e   :  { %v1928_v61 = vadd.f32 %v4489_v39, %v1927_v60  ;;  %v1981_v62 = vpop.f32.mrf.mxu1 }
 0x81f   :  { %v1982_v1 = vadd.f32 %v4490_v42, %v1981_v62  ;;  %v2252_v36 = vpack.c.bf16 %v2248_v27, %v2248_v27  ;;  %v1824_v42 = vpack.c.bf16 %v1820_v30, %v1820_v30 }
 0x820   :  { %v1931_v3 = vpack.c.bf16 %v1928_v61, %v1928_v61 }
 0x821   :  { %v1985_v18 = vpack.c.bf16 %v1982_v1, %v1982_v1  ;;  %v2644_v33 = vsel %vm1164_vm2, %v2252_v36, 0 }
 0x822   :  { %v2331_v0 = vsel %vm903_vm1, %v1931_v3, 0  ;;  %4086 = vmatmul.msk.bf16.vlgmr.msrb.gmra.mxu0 %vm903_vm1, %v1716_v2 }
 0x823   :  { %2397 = vmatpush.bf16.xpose.msra.mxu0 %v2388_v54  ;;  %v2369_v7 = vsel %vm903_vm1, %v1985_v18, 0  ;;  %4088 = vmatmul.msk.bf16.vlgmr.msra.gmra.mxu2 %vm903_vm1, %v1770_v4  ;;  %v1875_v9 = vpop.f32.mrf.mxu3  ;;  %v1878_v54 = vpack.c.bf16 %v1874_v47, %v1874_v47 }
 0x824   :  { %2340 = vmatpush.bf16.xpose.msrb.mxu1 %v2331_v0  ;;  %2378 = vmatpush.bf16.xpose.msrb.mxu3 %v2369_v7  ;;  %v2249_v41 = vpop.f32.mrf.mxu2  ;;  %v1876_v61 = vadd.f32 %v4491_v35, %v1875_v9 }
 0x825   :  { %v2139_v8 = vpop.f32.mrf.mxu0  ;;  %v2250_v48 = vadd.f32 %v4492_v19, %v2249_v41 }
 0x826   :  { %v2140_v13 = vadd.f32 %v4493_v5, %v2139_v8  ;;  %v2193_v20 = vpop.f32.mrf.mxu1  ;;  %v1879_v1 = vpack.c.bf16 %v1876_v61, %v1876_v61 }
 0x827   :  { %v2194_v26 = vadd.f32 %v4494_v16, %v2193_v20  ;;  %v2253_v55 = vpack.c.bf16 %v2250_v48, %v2250_v48 }
 0x828   :  { %v2144_v23 = vpack.c.bf16 %v2140_v13, %v2140_v13 }
 0x829   :  { %v2198_v32 = vpack.c.bf16 %v2194_v26, %v2194_v26  ;;  %v2663_v62 = vsel %vm1164_vm2, %v2253_v55, 0 }
 0x82a   :  { %v2568_v28 = vsel %vm1164_vm2, %v2144_v23, 0 }
 0x82b   :  { %4087 = vmatmul.msk.bf16.vlgmr.msrb.gmra.mxu1 %vm903_vm1, %v1717_v22  ;;  %4089 = vmatmul.msk.bf16.vlgmr.msrb.gmra.mxu3 %vm903_vm1, %v1771_v25  ;;  %v2087_v29 = vpop.f32.mrf.mxu3  ;;  %v2606_v45 = vsel %vm1164_vm2, %v2198_v32, 0 }
 0x82c   :  { %2416 = vmatpush.bf16.xpose.msra.mxu1 %v2407_v6  ;;  %2577 = vmatpush.bf16.msrb.mxu0 %v2568_v28  ;;  %v2088_v31 = vadd.f32 %v4495_v24, %v2087_v29 }
 0x82d   :  { %v2141_v34 = vpop.f32.mrf.mxu0 }
 0x82e   :  { %v2092_v38 = vpack.c.bf16 %v2088_v31, %v2088_v31  ;;  %v2142_v39 = vadd.f32 %v4493_v5, %v2141_v34  ;;  %v2195_v40 = vpop.f32.mrf.mxu1 }
 0x82f   :  { %v2196_v46 = vadd.f32 %v4494_v16, %v2195_v40 }
 0x830   :  { %v2426_v43 = vsel %vm903_vm1, %v2092_v38, 0  ;;  %v2145_v44 = vpack.c.bf16 %v2142_v39, %v2142_v39 }
 0x831   :  { %2435 = vmatpush.bf16.xpose.msrb.mxu2 %v2426_v43  ;;  %v2199_v53 = vpack.c.bf16 %v2196_v46, %v2196_v46 }
 0x832   :  { %v2587_v49 = vsel %vm1164_vm2, %v2145_v44, 0  ;;  %4090 = vmatmul.msk.bf16.vlgmr.msra.gmra.mxu0 %vm903_vm1, %v1824_v42 }
 0x833   :  { %2653 = vmatpush.bf16.msra.mxu0 %v2644_v33  ;;  %v2089_v50 = vpop.f32.mrf.mxu3  ;;  %v2625_v60 = vsel %vm1164_vm2, %v2199_v53, 0 }
 0x834   :  { %2596 = vmatpush.bf16.msrb.mxu1 %v2587_v49  ;;  %v2090_v52 = vadd.f32 %v4495_v24, %v2089_v50 }
 0x836   :  { %v2093_v56 = vpack.c.bf16 %v2090_v52, %v2090_v52 }
 0x838   :  { %v2445_v58 = vsel %vm903_vm1, %v2093_v56, 0  ;;  %4092 = vmatmul.msk.bf16.vlgmr.msrb.gmra.mxu2 %vm903_vm1, %v1878_v54 }
 0x839   :  { %2615 = vmatpush.bf16.msra.mxu2 %v2606_v45  ;;  %2454 = vmatpush.bf16.xpose.msra.mxu3 %v2445_v58 }
 0x83b   :  { %4091 = vmatmul.msk.bf16.vlgmr.msra.gmra.mxu1 %vm903_vm1, %v1825_v57  ;;  %v2301_v37 = vpop.f32.mrf.mxu3 }
 0x83c   :  { %2672 = vmatpush.bf16.msra.mxu1 %v2663_v62  ;;  %v2302_v63 = vadd.f32 %v4496_v59, %v2301_v37 }
 0x83e   :  { %v2306_v2 = vpack.c.bf16 %v2302_v63, %v2302_v63 }
 0x840   :  { %v2682_v3 = vsel %vm1164_vm2, %v2306_v2, 0  ;;  %4093 = vmatmul.msk.bf16.vlgmr.msra.gmra.mxu3 %vm903_vm1, %v1879_v1 }
 0x841   :  { %2634 = vmatpush.bf16.msrb.mxu3 %v2625_v60  ;;  %2691 = vmatpush.bf16.msrb.mxu2 %v2682_v3 }
 0x843   :  { %v2303_v4 = vpop.f32.mrf.mxu3 }
 0x844   :  { %v2304_v18 = vadd.f32 %v4496_v59, %v2303_v4 }
 0x846   :  { %v2307_v0 = vpack.c.bf16 %v2304_v18, %v2304_v18 }
 0x848   :  { %v2701_v5 = vsel %vm1164_vm2, %v2307_v0, 0 }
 0x849   :  { %2710 = vmatpush.bf16.msra.mxu3 %v2701_v5 }
 0x89f   :  { %v2323_v6 = vpop.f32.mrf.mxu0 }
 0x8a0   :  { %v2460_v7 = vmul.f32 0.25, %v2323_v6 }
 0x8a2   :  { %v2468_v9 = vsel %vm1064_vm3, %v2460_v7, -inf }
 0x8a3   :  { %2469 = vmax.xlane.f32.xlu1 %v2468_v9 }
 0x8a6   :  { %v2361_v10 = vpop.f32.mrf.mxu2 }
 0x8a7   :  { %v2462_v11 = vmul.f32 0.25, %v2361_v10  ;;  %v2325_v15 = vpop.f32.mrf.mxu0 }
 0x8a8   :  { %v2342_v8 = vpop.f32.mrf.mxu1 }
 0x8a9   :  { %v2474_v16 = vsel %vm1064_vm3, %v2462_v11, -inf  ;;  %v2461_v19 = vmul.f32 0.25, %v2342_v8 }
 0x8aa   :  { %2475 = vmax.xlane.f32.xlu0 %v2474_v16 }
 0x8ab   :  { %v2471_v25 = vsel %vm1064_vm3, %v2461_v19, -inf }
 0x8ae   :  { %v2363_v13 = vpop.f32.mrf.mxu2  ;;  %v2380_v20 = vpop.f32.mrf.mxu3 }
 0x8af   :  { %v2463_v21 = vmul.f32 0.25, %v2380_v20  ;;  %v2399_v23 = vpop.f32.mrf.mxu0 }
 0x8b0   :  { %v2344_v22 = vpop.f32.mrf.mxu1  ;;  %v2464_v26 = vmul.f32 0.25, %v2399_v23 }
 0x8b1   :  { %v2477_v24 = vsel %vm1064_vm3, %v2463_v21, -inf }
 0x8b2   :  { %2478 = vmax.xlane.f32.xlu2 %v2477_v24  ;;  %2472 = vmax.xlane.f32.xlu0 %v2471_v25  ;;  %v2480_v30 = vsel %vm1064_vm3, %v2464_v26, -inf }
 0x8b6   :  { %v2382_v27 = vpop.f32.mrf.mxu3 }
 0x8b7   :  { %v2401_v28 = vpop.f32.mrf.mxu0 }
 0x8b8   :  { %v2418_v29 = vpop.f32.mrf.mxu1 }
 0x8b9   :  { %v2465_v36 = vmul.f32 0.25, %v2418_v29 }
 0x8ba   :  { %2481 = vmax.xlane.f32.xlu0 %v2480_v30 }
 0x8bb   :  { %v2437_v31 = vpop.f32.mrf.mxu2  ;;  %v2483_v41 = vsel %vm1064_vm3, %v2465_v36, -inf }
 0x8bc   :  { %v2466_v32 = vmul.f32 0.25, %v2437_v31 }
 0x8be   :  { %v2486_v34 = vsel %vm1064_vm3, %v2466_v32, -inf }
 0x8bf   :  { %2487 = vmax.xlane.f32.xlu2 %v2486_v34 }
 0x8c0   :  { %v2420_v35 = vpop.f32.mrf.mxu1 }
 0x8c3   :  { %v2439_v38 = vpop.f32.mrf.mxu2  ;;  %v2456_v39 = vpop.f32.mrf.mxu3 }
 0x8c4   :  { %v2467_v40 = vmul.f32 0.25, %v2456_v39 }
 0x8c6   :  { %v2489_v42 = vsel %vm1064_vm3, %v2467_v40, -inf }
 0x8c7   :  { %2484 = vmax.xlane.f32.xlu2 %v2483_v41  ;;  %2490 = vmax.xlane.f32.xlu1 %v2489_v42 }
 0x8cb   :  { %v2458_v43 = vpop.f32.mrf.mxu3 }
 0x916   :  { %v2470_v44 = vpop.xlane.xlu1 %2469 }
 0x917   :  { %v2492_v45 = vsub.f32 %v2460_v7, %v2470_v44 }
 0x919   :  { %v2500_v46 = vmul.f32 1.442695, %v2492_v45 }
 0x91b   :  { %4554 = vpow2.f32 %v2500_v46 }
 0x91d   :  { %v2476_v47 = vpop.xlane.xlu0 %2475 }
 0x91e   :  { %v2494_v33 = vsub.f32 %v2462_v11, %v2476_v47 }
 0x920   :  { %v2504_v48 = vmul.f32 1.442695, %v2494_v33 }
 0x921   :  { %v4555_v49 = vpop.eup %4554 }
 0x922   :  { %4556 = vpow2.f32 %v2504_v48  ;;  %v2516_v50 = vsel %vm1064_vm3, %v4555_v49, 0.0 }
 0x923   :  { %2517 = vadd.xlane.f32.xlu2 %v2516_v50 }
 0x925   :  { %v2479_v51 = vpop.xlane.xlu2 %2478  ;;  %v2473_v52 = vpop.xlane.xlu0 %2472 }
 0x926   :  { %v2495_v53 = vsub.f32 %v2463_v21, %v2479_v51  ;;  %v2493_v54 = vsub.f32 %v2461_v19, %v2473_v52 }
 0x928   :  { %v4557_v55 = vpop.eup %4556  ;;  %v2506_v56 = vmul.f32 1.442695, %v2495_v53  ;;  %v2502_v57 = vmul.f32 1.442695, %v2493_v54 }
 0x929   :  { %v2522_v58 = vsel %vm1064_vm3, %v4557_v55, 0.0 }
 0x92a   :  { %4558 = vpow2.f32 %v2506_v56  ;;  %2523 = vadd.xlane.f32.xlu1 %v2522_v58 }
 0x92b   :  { %4560 = vpow2.f32 %v2502_v57 }
 0x92d   :  { %v2482_v59 = vpop.xlane.xlu0 %2481 }
 0x92e   :  { %v2496_v60 = vsub.f32 %v2464_v26, %v2482_v59 }
 0x930   :  { %v4559_v61 = vpop.eup %4558  ;;  %v2508_v62 = vmul.f32 1.442695, %v2496_v60 }
 0x931   :  { %v4561_v37 = vpop.eup %4560  ;;  %v2525_v63 = vsel %vm1064_vm3, %v4559_v61, 0.0 }
 0x932   :  { %4562 = vpow2.f32 %v2508_v62  ;;  %v2519_v1 = vsel %vm1064_vm3, %v4561_v37, 0.0  ;;  %2526 = vadd.xlane.f32.xlu0 %v2525_v63  ;;  %v2488_v2 = vpop.xlane.xlu2 %2487 }
 0x933   :  { %2520 = vadd.xlane.f32.xlu1 %v2519_v1  ;;  %v2498_v3 = vsub.f32 %v2466_v32, %v2488_v2 }
 0x935   :  { %v2512_v4 = vmul.f32 1.442695, %v2498_v3 }
 0x937   :  { %4564 = vpow2.f32 %v2512_v4 }
 0x938   :  { %v4563_v18 = vpop.eup %4562 }
 0x939   :  { %v2528_v0 = vsel %vm1064_vm3, %v4563_v18, 0.0 }
 0x93a   :  { %v2485_v5 = vpop.xlane.xlu2 %2484  ;;  %v2491_v6 = vpop.xlane.xlu1 %2490 }
 0x93b   :  { %2529 = vadd.xlane.f32.xlu1 %v2528_v0  ;;  %v2497_v7 = vsub.f32 %v2465_v36, %v2485_v5  ;;  %v2499_v9 = vsub.f32 %v2467_v40, %v2491_v6 }
 0x93d   :  { %v4565_v10 = vpop.eup %4564  ;;  %v2510_v11 = vmul.f32 1.442695, %v2497_v7  ;;  %v2514_v15 = vmul.f32 1.442695, %v2499_v9  ;;  %v4349_v7 = vld [vmem:[%s5516_s4 + $0x18] sm:$0xff]  ;;  %v4348_v9 = vld [vmem:[%s5516_s4 + $0x10] sm:$0xff] }
 0x93e   :  { %v2534_v8 = vsel %vm1064_vm3, %v4565_v10, 0.0 }
 0x93f   :  { %4566 = vpow2.f32 %v2510_v11  ;;  %2535 = vadd.xlane.f32.xlu0 %v2534_v8  ;;  %v4346_v11 = vld [vmem:[%s5516_s4] sm:$0xff] }
 0x940   :  { %4568 = vpow2.f32 %v2514_v15 }
 0x945   :  { %v4567_v16 = vpop.eup %4566 }
 0x946   :  { %v4569_v19 = vpop.eup %4568  ;;  %v2531_v13 = vsel %vm1064_vm3, %v4567_v16, 0.0 }
 0x947   :  { %v2537_v20 = vsel %vm1064_vm3, %v4569_v19, 0.0  ;;  %2532 = vadd.xlane.f32.xlu0 %v2531_v13 }
 0x948   :  { %2538 = vadd.xlane.f32.xlu2 %v2537_v20 }
 0x996   :  { %v2518_v21 = vpop.xlane.xlu2 %2517 }
 0x997   :  { %4570 = vrcp.f32 %v2518_v21 }
 0x99d   :  { %v4571_v22 = vpop.eup %4570  ;;  %v2524_v23 = vpop.xlane.xlu1 %2523 }
 0x99e   :  { %v2548_v24 = vmul.f32 %v4571_v22, %v4555_v49  ;;  %4572 = vrcp.f32 %v2524_v23 }
 0x9a0   :  { %v2556_v25 = vpack.c.bf16 %v2548_v24, %v2548_v24 }
 0x9a2   :  { %4094 = vmatmul.msk.bf16.vlgmr.msrb.gmra.mxu0 %vm1064_vm3, %v2556_v25 }
 0x9a3   :  { %2790 = vmatpush.bf16.msrb.mxu0 %v4349_v7 }
 0x9a4   :  { %v4573_v26 = vpop.eup %4572 }
 0x9a5   :  { %v2550_v27 = vmul.f32 %v4573_v26, %v4557_v55  ;;  %v2527_v28 = vpop.xlane.xlu0 %2526 }
 0x9a6   :  { %v2521_v29 = vpop.xlane.xlu1 %2520  ;;  %4574 = vrcp.f32 %v2527_v28 }
 0x9a7   :  { %v2558_v30 = vpack.c.bf16 %v2550_v27, %v2550_v27  ;;  %4576 = vrcp.f32 %v2521_v29  ;;  %2791 = vmatpush.bf16.msrb.mxu0 %v4348_v9 }
 0x9a9   :  { %4096 = vmatmul.msk.bf16.vlgmr.msra.gmra.mxu2 %vm1064_vm3, %v2558_v30 }
 0x9ac   :  { %v4575_v31 = vpop.eup %4574 }
 0x9ad   :  { %v4577_v32 = vpop.eup %4576  ;;  %v2551_v34 = vmul.f32 %v4575_v31, %v4559_v61  ;;  %v4497_v31 = vld [vmem:[%s5517_s23] ss:$0 sm:$0xff] }
 0x9ae   :  { %v2549_v35 = vmul.f32 %v4577_v32, %v4561_v37  ;;  %v2530_v36 = vpop.xlane.xlu1 %2529 }
 0x9af   :  { %v2559_v38 = vpack.c.bf16 %v2551_v34, %v2551_v34  ;;  %4578 = vrcp.f32 %v2530_v36 }
 0x9b0   :  { %v2557_v39 = vpack.c.bf16 %v2549_v35, %v2549_v35 }
 0x9b1   :  { %4097 = vmatmul.msk.bf16.vlgmr.msrb.gmra.mxu3 %vm1064_vm3, %v2559_v38 }
 0x9b2   :  { %4095 = vmatmul.msk.bf16.vlgmr.msrb.gmra.mxu1 %vm1064_vm3, %v2557_v39  ;;  %v2536_v40 = vpop.xlane.xlu0 %2535 }
 0x9b3   :  { %4580 = vrcp.f32 %v2536_v40 }
 0x9b5   :  { %v4579_v41 = vpop.eup %4578 }
 0x9b6   :  { %v2552_v42 = vmul.f32 %v4579_v41, %v4563_v18 }
 0x9b8   :  { %v2560_v43 = vpack.c.bf16 %v2552_v42, %v2552_v42 }
 0x9b9   :  { %v4581_v44 = vpop.eup %4580 }
 0x9ba   :  { %v2554_v45 = vmul.f32 %v4581_v44, %v4565_v10  ;;  %4098 = vmatmul.msk.bf16.vlgmr.msra.gmra.mxu0 %vm1064_vm3, %v2560_v43  ;;  %v2533_v46 = vpop.xlane.xlu0 %2532  ;;  %v4347_v10 = vld [vmem:[%s5516_s4 + $0x8] sm:$0xff] }
 0x9bb   :  { %v2539_v47 = vpop.xlane.xlu2 %2538  ;;  %4582 = vrcp.f32 %v2533_v46  ;;  %2792 = vmatpush.bf16.msrb.mxu0 %v4347_v10  ;;  %v4498_v10 = vld [vmem:[%s5520_s0] ss:$0 sm:$0xff] }
 0x9bc   :  { %v2562_v33 = vpack.c.bf16 %v2554_v45, %v2554_v45  ;;  %4584 = vrcp.f32 %v2539_v47 }
 0x9be   :  { %4100 = vmatmul.msk.bf16.vlgmr.msrb.gmra.mxu2 %vm1064_vm3, %v2562_v33 }
 0x9bf   :  { %2793 = vmatpush.bf16.msrb.mxu0 %v4346_v11 }
 0x9c1   :  { %v4583_v48 = vpop.eup %4582 }
 0x9c2   :  { %v4585_v49 = vpop.eup %4584  ;;  %v2553_v50 = vmul.f32 %v4583_v48, %v4567_v16 }
 0x9c3   :  { %v2555_v51 = vmul.f32 %v4585_v49, %v4569_v19  ;;  %v4353_v49 = vld [vmem:[%s5518_s26 + $0x18] sm:$0xff] }
 0x9c4   :  { %v2561_v52 = vpack.c.bf16 %v2553_v50, %v2553_v50  ;;  %2902 = vmatpush.bf16.msrb.mxu1 %v4353_v49  ;;  %v4352_v50 = vld [vmem:[%s5518_s26 + $0x10] sm:$0xff]  ;;  %v4364_v49 = vld [vmem:[%s5527_s15 + $0x8] sm:$0xff] }
 0x9c5   :  { %v2563_v53 = vpack.c.bf16 %v2555_v51, %v2555_v51  ;;  %v4351_v51 = vld [vmem:[%s5518_s26 + $0x8] sm:$0xff]  ;;  %3170 = vmatpush.bf16.msra.mxu0 %v4364_v49 }
 0x9c6   :  { %4099 = vmatmul.msk.bf16.vlgmr.msra.gmra.mxu1 %vm1064_vm3, %v2561_v52 }
 0x9c7   :  { %4101 = vmatmul.msk.bf16.vlgmr.msra.gmra.mxu3 %vm1064_vm3, %v2563_v53 }
 0x9c8   :  { %2903 = vmatpush.bf16.msrb.mxu1 %v4352_v50  ;;  %v4363_v50 = vld [vmem:[%s5527_s15] sm:$0xff] }
 0x9c9   :  { %3171 = vmatpush.bf16.msra.mxu0 %v4363_v50 }
 0x9cc   :  { %2904 = vmatpush.bf16.msrb.mxu1 %v4351_v51 }
 0xa1f   :  { %v2579_v54 = vpop.f32.mrf.mxu0 }
 0xa27   :  { %v2581_v55 = vpop.f32.mrf.mxu0 }
 0xa28   :  { %v4350_v55 = vld [vmem:[%s5518_s26] sm:$0xff] }
 0xa29   :  { %2905 = vmatpush.bf16.msrb.mxu1 %v4350_v55 }
 0xa2c   :  { %v2617_v56 = vpop.f32.mrf.mxu2 }
 0xa2f   :  { %v2598_v57 = vpop.f32.mrf.mxu1 }
 0xa34   :  { %v2619_v58 = vpop.f32.mrf.mxu2  ;;  %v2636_v59 = vpop.f32.mrf.mxu3 }
 0xa35   :  { %v4451_v60 = vpack.i.bf16 %v2636_v59, %v2617_v56  ;;  %v4361_v56 = vld [vmem:[%s5519_s1 + $0x38] sm:$0xff]  ;;  %v4360_v59 = vld [vmem:[%s5519_s1 + $0x30] sm:$0xff] }
 0xa36   :  { %2983 = vmatpush.bf16.msra.mxu2 %v4361_v56 }
 0xa37   :  { %v2600_v61 = vpop.f32.mrf.mxu1  ;;  %v2655_v62 = vpop.f32.mrf.mxu0  ;;  %4452 = vrot.lane.b32.xlu2 %v4451_v60, %s4753_s5  ;;  %s5531_s5 = sld [smem:[#allocation37_spill]] }
 0xa3a   :  { %2984 = vmatpush.bf16.msra.mxu2 %v4360_v59 }
 0xa3c   :  { %v2638_v37 = vpop.f32.mrf.mxu3 }
 0xa3d   :  { %v4359_v37 = vld [vmem:[%s5519_s1 + $0x28] sm:$0xff] }
 0xa3e   :  { %2985 = vmatpush.bf16.msra.mxu2 %v4359_v37 }
 0xa3f   :  { %v2657_v63 = vpop.f32.mrf.mxu0 }
 0xa41   :  { %v2693_v1 = vpop.f32.mrf.mxu2 }
 0xa43   :  { %v2674_v2 = vpop.f32.mrf.mxu1 }
 0xa44   :  { %v4456_v3 = vpack.i.bf16 %v2674_v2, %v2655_v62  ;;  %v4358_v2 = vld [vmem:[%s5519_s1 + $0x20] sm:$0xff] }
 0xa45   :  { %2986 = vmatpush.bf16.msra.mxu2 %v4358_v2 }
 0xa46   :  { %4457 = vrot.lane.b32.xlu1 %v4456_v3, %s4754_s9  ;;  %s5532_s9 = sld [smem:[#allocation42_spill]] }
 0xa49   :  { %v2695_v4 = vpop.f32.mrf.mxu2 }
 0xa4a   :  { %v2712_v18 = vpop.f32.mrf.mxu3 }
 0xa4b   :  { %v4461_v0 = vpack.i.bf16 %v2712_v18, %v2693_v1  ;;  %v2676_v5 = vpop.f32.mrf.mxu1 }
 0xa4d   :  { %4462 = vrot.lane.b32.xlu0 %v4461_v0, %s4755_s17  ;;  %s5533_s17 = sld [smem:[#allocation43_spill]] }
 0xa52   :  { %v2714_v6 = vpop.f32.mrf.mxu3 }
 0xa91   :  { %v4453_v15 = vpop.permute.xlu2 %4452 }
 0xa92   :  { %v4455_v16 = vunpack.i.h.bf16 %v4453_v15  ;;  %v4454_v19 = vunpack.i.l.bf16 %v4453_v15 }
 0xa94   :  { %v2741_v22 = vsel %vm903_vm1, %v2598_v57, %v4455_v16  ;;  %v2740_v23 = vsel %vm903_vm1, %v2579_v54, %v4454_v19  ;;  %v4499_v16 = vld [vmem:[%s5521_s28] ss:$0 sm:$0xff] }
 0xab8   :  { %v4458_v8 = vpop.permute.xlu1 %4457 }
 0xab9   :  { %v4460_v13 = vunpack.i.h.bf16 %v4458_v8  ;;  %v4459_v20 = vunpack.i.l.bf16 %v4458_v8 }
 0xabb   :  { %v2743_v26 = vsel %vm1340_vm4, %v2741_v22, %v4460_v13  ;;  %v2742_v27 = vsel %vm1340_vm4, %v2740_v23, %v4459_v20 }
 0xabf   :  { %v4463_v21 = vpop.permute.xlu0 %4462 }
 0xac0   :  { %v4465_v24 = vunpack.i.h.bf16 %v4463_v21  ;;  %v4464_v25 = vunpack.i.l.bf16 %v4463_v21 }
 0xac2   :  { %v2744_v28 = vsel %vm1343_vm5, %v2742_v27, %v4464_v25  ;;  %v2745_v29 = vsel %vm1343_vm5, %v2743_v26, %v4465_v24  ;;  %v4357_v24 = vld [vmem:[%s5519_s1 + $0x18] sm:$0xff]  ;;  %v4356_v25 = vld [vmem:[%s5519_s1 + $0x10] sm:$0xff]  ;;  %v4355_v26 = vld [vmem:[%s5519_s1 + $0x8] sm:$0xff] }
 0xac3   :  { %v2746_v30 = vpack.c.bf16 %v2745_v29, %v2744_v28  ;;  %2987 = vmatpush.bf16.msra.mxu2 %v4357_v24  ;;  %v4354_v27 = vld [vmem:[%s5519_s1] sm:$0xff] }
 0xac4   :  { %v4500_v29 = vld [vmem:[%s5522_s2] ss:$0 sm:$0xff] }
 0xac5   :  { %4118 = vmatmul.msk.bf16.vlgmr.msrb.gmra.mxu0 %vm293_vm0, %v2746_v30 }
 0xac7   :  { %2988 = vmatpush.bf16.msra.mxu2 %v4356_v25 }
 0xacb   :  { %2989 = vmatpush.bf16.msra.mxu2 %v4355_v26 }
 0xacf   :  { %2990 = vmatpush.bf16.msra.mxu2 %v4354_v27  ;;  %v4368_v27 = vld [vmem:[%s5532_s9 + $0x18] sm:$0xff] }
 0xb42   :  { %v2795_v32 = vpop.f32.mrf.mxu0 }
 0xb43   :  { %v2796_v34 = vadd.f32 %v4497_v31, %v2795_v32 }
 0xb45   :  { %v2800_v35 = vadd.f32 %v2796_v34, %v5268_v12 }
 0xb47   :  { %v2804_v36 = vsel %vm293_vm0, %v2800_v35, 0.0 }
 0xb48   :  { %2805 = vadd.xlane.f32.xlu2 %v2804_v36 }
 0xb4a   :  { %v2797_v38 = vpop.f32.mrf.mxu0 }
 0xb4b   :  { %v2798_v39 = vadd.f32 %v4497_v31, %v2797_v38  ;;  %v4362_v38 = vld [vmem:[%s5523_s10] sm:$0xff] }
 0xb4c   :  { %3102 = vmatpush.bf16.msrb.mxu3 %v4362_v38  ;;  %v4506_v38 = vld [vmem:[%s5534_s21] ss:$0 sm:$0xff] }
 0xb4d   :  { %v2801_v40 = vadd.f32 %v2798_v39, %v5270_v14  ;;  %v3078_v39 = vld [vmem:[%s5524_s7] sm:$0x3] }
 0xb4f   :  { %v2807_v41 = vsel %vm293_vm0, %v2801_v40, 0.0 }
 0xb50   :  { %2808 = vadd.xlane.f32.xlu0 %v2807_v41  ;;  %v4501_v41 = vld [vmem:[%s5525_s11] ss:$0 sm:$0xff]  ;;  %3258 = vmatpush.bf16.msra.mxu3 %v4368_v27  ;;  %v4372_v27 = vld [vmem:[%s5537_s3 + $0x8] sm:$0xff] }
 0xbbb   :  { %v2806_v42 = vpop.xlane.xlu2 %2805 }
 0xbbc   :  { %v2810_v43 = vmul.f32 %v2806_v42, %v5191_v17 }
 0xbbe   :  { %v2812_v44 = vsub.f32 %v2800_v35, %v2810_v43 }
 0xbc0   :  { %v2814_v45 = vmul.f32 %v2812_v44, %v2812_v44 }
 0xbc2   :  { %v2816_v12 = vsel %vm293_vm0, %v2814_v45, 0.0 }
 0xbc3   :  { %v2809_v46 = vpop.xlane.xlu0 %2808  ;;  %2817 = vadd.xlane.f32.xlu1 %v2816_v12 }
 0xbc4   :  { %v2811_v47 = vmul.f32 %v2809_v46, %v5191_v17 }
 0xbc6   :  { %v2813_v33 = vsub.f32 %v2801_v40, %v2811_v47  ;;  %v3079_v40 = vpack.c.bf16 %v3078_v39, %v3078_v39 }
 0xbc8   :  { %v2815_v14 = vmul.f32 %v2813_v33, %v2813_v33  ;;  %4172 = vmatmul.msk.bf16.vlgmr.msrb.gmra.mxu3 %vm903_vm1, %v3079_v40 }
 0xbca   :  { %v2819_v48 = vsel %vm293_vm0, %v2815_v14, 0.0  ;;  %v3113_v14 = vld [vmem:[%s5526_s12] sm:$0x1] }
 0xbcb   :  { %2820 = vadd.xlane.f32.xlu2 %v2819_v48  ;;  %v3114_v48 = vadd.f32 1e-05, %v3113_v14 }
 0xbcd   :  { %vm3121_vm1 = vweird.f32 %v3114_v48 }
 0xc36   :  { %v2818_v52 = vpop.xlane.xlu1 %2817 }
 0xc37   :  { %v2822_v53 = vmul.f32 %v2818_v52, %v5191_v17 }
 0xc39   :  { %v2824_v54 = vadd.f32 1e-05, %v2822_v53  ;;  %v4502_v53 = vld [vmem:[%s5528_s16] ss:$0 sm:$0xff] }
 0xc3b   :  { %4586 = vrsqrt.f32 %v2824_v54  ;;  %vm2832_vm3 = vweird.f32 %v2824_v54 }
 0xc3e   :  { %v2821_v57 = vpop.xlane.xlu2 %2820 }
 0xc3f   :  { %v2823_v58 = vmul.f32 %v2821_v57, %v5191_v17 }
 0xc41   :  { %v4587_v60 = vpop.eup %4586  ;;  %v2825_v61 = vadd.f32 1e-05, %v2823_v58  ;;  %v4503_v58 = vld [vmem:[%s5529_s18] ss:$0 sm:$0xff] }
 0xc42   :  { %v2827_v62 = vmul.f32 %v4587_v60, %v2824_v54  ;;  %vm2833_vm2 = vweird.f32 %v4587_v60 }
 0xc43   :  { %4588 = vrsqrt.f32 %v2825_v61  ;;  %vm2834_vm5 = vmor %vm2832_vm3, %vm2833_vm2  ;;  %vm2842_vm10 = vweird.f32 %v2825_v61 }
 0xc44   :  { %v2828_v63 = vmul.f32 %v4587_v60, %v2827_v62  ;;  %4590 = vrsqrt.f32 %v3114_v48 }
 0xc46   :  { %v2829_v1 = vmul.f32 0.5, %v2828_v63 }
 0xc48   :  { %v2830_v3 = vsub.f32 1.5, %v2829_v1 }
 0xc49   :  { %v4589_v4 = vpop.eup %4588 }
 0xc4a   :  { %v2831_v18 = vmul.f32 %v4587_v60, %v2830_v3  ;;  %v2837_v0 = vmul.f32 %v4589_v4, %v2825_v61  ;;  %vm2843_vm9 = vweird.f32 %v4589_v4  ;;  %v4591_v51 = vpop.eup %4590 }
 0xc4b   :  { %vm2844_vm11 = vmor %vm2842_vm10, %vm2843_vm9  ;;  %v3116_v52 = vmul.f32 %v4591_v51, %v3114_v48  ;;  %v3104_v55 = vpop.f32.mrf.mxu3  ;;  %vm3122_vm12 = vweird.f32 %v4591_v51 }
 0xc4c   :  { %v2838_v5 = vmul.f32 %v4589_v4, %v2837_v0  ;;  %v2835_v6 = vsel %vm2834_vm5, %v4587_v60, %v2831_v18  ;;  %v3105_v57 = vadd.f32 %v4502_v53, %v3104_v55  ;;  %vm3123_vm13 = vmor %vm3121_vm1, %vm3122_vm12  ;;  %vm3224_vm5 = vcmask 1041409  }
 0xc4d   :  { %v2846_v11 = vmul.f32 %v2835_v6, %v2812_v44  ;;  %v3117_v54 = vmul.f32 %v4591_v51, %v3116_v52  ;;  %v4505_v6 = vld [vmem:[%s5531_s5] ss:$0 sm:$0xff] }
 0xc4e   :  { %v2839_v7 = vmul.f32 0.5, %v2838_v5  ;;  %v3112_v63 = vsub.f32 %v3105_v57, %v4503_v58  ;;  %v4373_v58 = vld [vmem:[%s5537_s3 + $0x10] sm:$0xff] }
 0xc4f   :  { %v2851_v19 = vmul.f32 %v4498_v10, %v2846_v11  ;;  %v3118_v56 = vmul.f32 0.5, %v3117_v54  ;;  %v4374_v54 = vld [vmem:[%s5537_s3 + $0x18] sm:$0xff] }
 0xc50   :  { %v2840_v9 = vsub.f32 1.5, %v2839_v7  ;;  %3317 = vmatpush.bf16.msrb.mxu0 %v4374_v54 }
 0xc51   :  { %v2856_v21 = vadd.f32 %v4499_v16, %v2851_v19  ;;  %v3119_v60 = vsub.f32 1.5, %v3118_v56 }
 0xc52   :  { %v2841_v15 = vmul.f32 %v4589_v4, %v2840_v9 }
 0xc53   :  { %v3120_v62 = vmul.f32 %v4591_v51, %v3119_v60  ;;  %v3106_v18 = vpop.f32.mrf.mxu3 }
 0xc54   :  { %v2845_v8 = vsel %vm2844_vm11, %v4589_v4, %v2841_v15  ;;  %v4504_v4 = vld [vmem:[%s5530_s22] ss:$0 sm:$0xff]  ;;  %3318 = vmatpush.bf16.msrb.mxu0 %v4373_v58 }
 0xc55   :  { %v2847_v13 = vmul.f32 %v2845_v8, %v2813_v33  ;;  %v3124_v1 = vsel %vm3123_vm13, %v4591_v51, %v3120_v62 }
 0xc56   :  { %v3126_v3 = vperm.slane %v3124_v1, 0 }
 0xc57   :  { %v2852_v20 = vmul.f32 %v4498_v10, %v2847_v13 }
 0xc58   :  { %v3128_v5 = vmul.f32 %v3126_v3, %v3112_v63  ;;  %3319 = vmatpush.bf16.msrb.mxu0 %v4372_v27 }
 0xc59   :  { %v2857_v22 = vadd.f32 %v4499_v16, %v2852_v20 }
 0xc5a   :  { %v3133_v10 = vmul.f32 %v4504_v4, %v3128_v5 }
 0xc5b   :  { %v2858_v23 = vpack.c.bf16 %v2857_v22, %v2856_v21 }
 0xc5c   :  { %v3138_v15 = vadd.f32 %v4505_v6, %v3133_v10 }
 0xc5d   :  { %4135 = vmatmul.msk.bf16.vlgmr.msrb.gmra.mxu1 %vm293_vm0, %v2858_v23 }
 0xc5e   :  { %v3139_v16 = vmax.f32 %v3138_v15, 0.0 }
 0xc60   :  { %v3140_v13 = vpack.c.bf16 %v3139_v16, %v3139_v16 }
 0xc62   :  { %4181 = vmatmul.msk.bf16.vlgmr.msra.gmra.mxu0 %vm1340_vm4, %v3140_v13 }
 0xcda   :  { %v2907_v28 = vpop.f32.mrf.mxu1 }
 0xcdb   :  { %v2908_v30 = vadd.f32 %v4500_v29, %v2907_v28 }
 0xcdd   :  { %v2912_v34 = vmax.f32 %v2908_v30, 0.0  ;;  %v4367_v30 = vld [vmem:[%s5532_s9 + $0x10] sm:$0xff] }
 0xcde   :  { %3259 = vmatpush.bf16.msra.mxu3 %v4367_v30  ;;  %v4509_v30 = vld [vmem:[#allocation2] ss:$0 sm:$0xff] }
 0xce2   :  { %v2909_v31 = vpop.f32.mrf.mxu1 }
 0xce3   :  { %v2910_v32 = vadd.f32 %v4500_v29, %v2909_v31 }
 0xce5   :  { %v2913_v35 = vmax.f32 %v2910_v32, 0.0  ;;  %v4370_v32 = vld [vmem:[%s5533_s17 + $0x8] sm:$0xff] }
 0xce6   :  { %3213 = vmatpush.bf16.msra.mxu1 %v4370_v32 }
 0xce7   :  { %v2914_v36 = vpack.c.bf16 %v2913_v35, %v2912_v34  ;;  %v4757_v34 = vmov 8.0  }
 0xce9   :  { %2991 = vmatmul.bf16.vlgmr.msra.gmra.mxu2 %v2914_v36 }
 0xd6c   :  { %v2992_v42 = vpop.f32.mrf.mxu2 }
 0xd6d   :  { %v2993_v43 = vadd.f32 %v4501_v41, %v2992_v42  ;;  %v4365_v42 = vld [vmem:[%s5532_s9] sm:$0xff] }
 0xd6f   :  { %v2997_v44 = vadd.f32 %v2993_v43, %v2856_v21  ;;  %v3173_v43 = vpop.f32.mrf.mxu0 }
 0xd71   :  { %v3001_v45 = vsel %vm293_vm0, %v2997_v44, 0.0 }
 0xd72   :  { %3002 = vadd.xlane.f32.xlu0 %v3001_v45 }
 0xd74   :  { %v2994_v12 = vpop.f32.mrf.mxu2 }
 0xd75   :  { %v2995_v46 = vadd.f32 %v4501_v41, %v2994_v12  ;;  %v4508_v41 = vld [vmem:[%s5535_s25] ss:$0 sm:$0xff] }
 0xd77   :  { %v2998_v47 = vadd.f32 %v2995_v46, %v2857_v22  ;;  %v3174_v46 = vadd.f32 %v4508_v41, %v3173_v43  ;;  %v3175_v57 = vpop.f32.mrf.mxu0 }
 0xd79   :  { %v3004_v33 = vsel %vm293_vm0, %v2998_v47, 0.0  ;;  %v3187_v49 = vpack.c.bf16 %v3174_v46, %v3174_v46 }
 0xd7a   :  { %3005 = vadd.xlane.f32.xlu1 %v3004_v33 }
 0xde5   :  { %v3003_v59 = vpop.xlane.xlu0 %3002 }
 0xde6   :  { %v3007_v61 = vmul.f32 %v3003_v59, %v5191_v17 }
 0xde8   :  { %v3009_v37 = vsub.f32 %v2997_v44, %v3007_v61  ;;  %v4369_v44 = vld [vmem:[%s5533_s17] sm:$0xff] }
 0xde9   :  { %3214 = vmatpush.bf16.msra.mxu1 %v4369_v44 }
 0xdea   :  { %v3011_v2 = vmul.f32 %v3009_v37, %v3009_v37 }
 0xdec   :  { %v3013_v0 = vsel %vm293_vm0, %v3011_v2, 0.0  ;;  %4190 = vmatmul.msk.bf16.vlgmr.msra.gmra.mxu1 %vm1340_vm4, %v3187_v49 }
 0xded   :  { %v3006_v7 = vpop.xlane.xlu1 %3005  ;;  %3014 = vadd.xlane.f32.xlu2 %v3013_v0 }
 0xdee   :  { %v3008_v9 = vmul.f32 %v3006_v7, %v5191_v17 }
 0xdf0   :  { %v5425_v11 = vsub.f32 %v2998_v47, %v3008_v9  ;;  %v4507_v47 = vld [vmem:[%s5536_s29] ss:$0 sm:$0xff] }
 0xdf2   :  { %v3012_v8 = vmul.f32 %v5425_v11, %v5425_v11 }
 0xdf4   :  { %v3016_v19 = vsel %vm293_vm0, %v3012_v8, 0.0 }
 0xdf5   :  { %3017 = vadd.xlane.f32.xlu0 %v3016_v19 }
 0xe60   :  { %v3015_v20 = vpop.xlane.xlu2 %3014 }
 0xe61   :  { %v3019_v21 = vmul.f32 %v3015_v20, %v5191_v17 }
 0xe63   :  { %v3021_v22 = vadd.f32 1e-05, %v3019_v21 }
 0xe65   :  { %4592 = vrsqrt.f32 %v3021_v22  ;;  %vm3029_vm15 = vweird.f32 %v3021_v22 }
 0xe68   :  { %v3018_v23 = vpop.xlane.xlu0 %3017 }
 0xe69   :  { %v3020_v24 = vmul.f32 %v3018_v23, %v5191_v17  ;;  %v4366_v17 = vld [vmem:[%s5532_s9 + $0x8] sm:$0xff] }
 0xe6a   :  { %3260 = vmatpush.bf16.msra.mxu3 %v4366_v17 }
 0xe6b   :  { %v4593_v25 = vpop.eup %4592  ;;  %v3022_v26 = vadd.f32 1e-05, %v3020_v24 }
 0xe6c   :  { %v3024_v28 = vmul.f32 %v4593_v25, %v3021_v22  ;;  %vm3030_vm14 = vweird.f32 %v4593_v25 }
 0xe6d   :  { %4594 = vrsqrt.f32 %v3022_v26  ;;  %vm3031_vm6 = vmor %vm3029_vm15, %vm3030_vm14  ;;  %vm3039_vm8 = vweird.f32 %v3022_v26 }
 0xe6e   :  { %v3025_v29 = vmul.f32 %v4593_v25, %v3024_v28  ;;  %4596 = vrcp.f32 %v4757_v34  ;;  %3261 = vmatpush.bf16.msra.mxu3 %v4365_v42 }
 0xe70   :  { %v3026_v31 = vmul.f32 0.5, %v3025_v29  ;;  %v4371_v29 = vld [vmem:[%s5537_s3] sm:$0xff] }
 0xe71   :  { %3320 = vmatpush.bf16.msrb.mxu0 %v4371_v29 }
 0xe72   :  { %v3027_v35 = vsub.f32 1.5, %v3026_v31 }
 0xe73   :  { %v4595_v36 = vpop.eup %4594 }
 0xe74   :  { %v3028_v39 = vmul.f32 %v4593_v25, %v3027_v35  ;;  %v3034_v40 = vmul.f32 %v4595_v36, %v3022_v26  ;;  %v4597_v14 = vpop.eup %4596  ;;  %vm3040_vm7 = vweird.f32 %v4595_v36  ;;  %v3216_v26 = vpop.f32.mrf.mxu1 }
 0xe75   :  { %v3070_v52 = vmul.f32 8.0, %v4597_v14  ;;  %vm3041_vm2 = vmor %vm3039_vm8, %vm3040_vm7  ;;  %vm3074_vm3 = vweird.f32 %v4597_v14 }
 0xe76   :  { %v3032_v45 = vsel %vm3031_vm6, %v4593_v25, %v3028_v39  ;;  %v3035_v12 = vmul.f32 %v4595_v36, %v3034_v40  ;;  %v4375_v39 = vld [vmem:[%s5005_s27] sm:$0xff] }
 0xe77   :  { %v3043_v33 = vmul.f32 %v3032_v45, %v3009_v37  ;;  %v3071_v61 = vsub.f32 1.0, %v3070_v52  ;;  %v4510_v40 = vld [vmem:[#allocation5] ss:$0 sm:$0xff] }
 0xe78   :  { %v3036_v48 = vmul.f32 0.5, %v3035_v12  ;;  %v4511_v12 = vld [vmem:[#allocation7] ss:$0 sm:$0xff] }
 0xe79   :  { %v3048_v50 = vmul.f32 %v4506_v38, %v3043_v33  ;;  %v3072_v2 = vmul.f32 %v4597_v14, %v3071_v61 }
 0xe7a   :  { %v3037_v51 = vsub.f32 1.5, %v3036_v48 }
 0xe7b   :  { %v3053_v53 = vadd.f32 %v4507_v47, %v3048_v50  ;;  %v3073_v6 = vadd.f32 %v4597_v14, %v3072_v2 }
 0xe7c   :  { %v3038_v55 = vmul.f32 %v4595_v36, %v3037_v51  ;;  %v3218_v28 = vpop.f32.mrf.mxu1 }
 0xe7d   :  { %v3055_v56 = vsel %vm293_vm0, %v3053_v53, 0.0  ;;  %v3075_v15 = vsel %vm3074_vm3, %v4597_v14, %v3073_v6 }
 0xe7e   :  { %v3056_v59 = vrot.slane %v3055_v56, 4  ;;  %v3042_v60 = vsel %vm3041_vm2, %v4595_v36, %v3038_v55 }
 0xe7f   :  { %v3044_v62 = vmul.f32 %v3042_v60, %v5425_v11 }
 0xe80   :  { %v3057_v37 = vadd.f32 %v3056_v59, %v3055_v56 }
 0xe81   :  { %v3049_v63 = vmul.f32 %v4506_v38, %v3044_v62  ;;  %v4376_v38 = vld [vmem:[%s5005_s27 + $0x8] sm:$0xff]  ;;  %s4682_s27 = sshra.s32 %s3374_s19, 4  ;;  %s4683_s27 = int_to_ptr.hbm [resolvable:$true] %s4682_s27 }
 0xe82   :  { %v3058_v1 = vrot.slane %v3057_v37, 2  ;;  %3357 = vmatpush.bf16.msrb.mxu1 %v4376_v38  ;;  %s4684_s24 = scalar_lea.hbm %s4683_s27, 2  ;;  %p4687_p2 = scmp.lt.s32.totalorder %s4683_s27, %s5015_s13 }
 0xe83   :  { %v3054_v3 = vadd.f32 %v4507_v47, %v3049_v63  ;;  %p4685_p1 = scmp.ne.s32.totalorder %s4683_s27, %s4684_s24  ;;  %p4688_p3 = scmp.lt.s32.totalorder %s4686_s30, %s4684_s24 }
 0xe84   :  { %v3059_v4 = vadd.f32 %v3058_v1, %v3057_v37 }
 0xe85   :  { %v3062_v18 = vsel %vm293_vm0, %v3054_v3, 0.0  ;;  %p4689_p4 = por %p4688_p3, %p4687_p2 }
 0xe86   :  { %v3060_v0 = vrot.slane %v3059_v4, 1  ;;  %v3063_v5 = vrot.slane %v3062_v18, 4  ;;  %3358 = vmatpush.bf16.msrb.mxu1 %v4375_v39 }
 0xe87   :  { %p4690_p5 = pnand %p4689_p4, %p4685_p1 }
 0xe88   :  { %v3064_v7 = vadd.f32 %v3063_v5, %v3062_v18  ;;  %v3061_v9 = vadd.f32 %v3060_v0, %v3059_v4 }
 0xe8a   :  { %v3065_v10 = vrot.slane %v3064_v7, 2  ;;  %v3076_v11 = vmul.f32 %v3075_v15, %v3061_v9 }
 0xe8c   :  { %v3066_v8 = vadd.f32 %v3065_v10, %v3064_v7  ;;  %v3177_v20 = vpack.c.bf16 %v3076_v11, %v3076_v11 }
 0xe8e   :  { %v3067_v16 = vrot.slane %v3066_v8, 1  ;;  %v3222_v22 = vunpack.c.l.b16 %v3177_v20 }
 0xe90   :  { %v3068_v19 = vadd.f32 %v3067_v16, %v3066_v8 }
 0xe92   :  { %v3077_v13 = vmul.f32 %v3075_v15, %v3068_v19 }
 0xe94   :  { %v3178_v21 = vpack.c.bf16 %v3077_v13, %v3077_v13 }
 0xe96   :  { %v3223_v23 = vunpack.c.l.b16 %v3178_v21 }
 0xe98   :  { %v3225_v24 = vsel %vm3224_vm5, %v3223_v23, %v3222_v22 }
 0xe99   :  { %v3226_v25 = vpack.c.b16 %v3225_v24, %v3225_v24 }
 0xe9b   :  { %4207 = vmatmul.msk.bf16.vlgmr.msra.gmra.mxu3 %vm293_vm0, %v3226_v25 }
 0xf1e   :  { %v3263_v31 = vpop.f32.mrf.mxu3 }
 0xf1f   :  { %v3264_v32 = vadd.f32 %v3263_v31, %v3216_v26 }
 0xf21   :  { %v3271_v34 = vadd.f32 %v4509_v30, %v3264_v32 }
 0xf23   :  { %v3272_v35 = vmax.f32 %v3271_v34, 0.0 }
 0xf25   :  { %v3273_v17 = vpack.c.bf16 %v3272_v35, %v3272_v35 }
 0xf26   :  { %v3265_v36 = vpop.f32.mrf.mxu3 }
 0xf27   :  { %4224 = vmatmul.msk.bf16.vlgmr.msrb.gmra.mxu0 %vm293_vm0, %v3273_v17  ;;  %vm3364_vm0 = vcmask 58368  }
 0xfa4   :  { %v3322_v41 = vpop.f32.mrf.mxu0 }
 0xfa5   :  { %v3323_v42 = vadd.f32 %v4510_v40, %v3322_v41 }
 0xfa7   :  { %v3326_v43 = vmax.f32 %v3323_v42, 0.0 }
 0xfa9   :  { %v3327_v44 = vpack.c.bf16 %v3326_v43, %v3326_v43 }
 0xfab   :  { %4233 = vmatmul.msk.bf16.vlgmr.msrb.gmra.mxu1 %vm1340_vm4, %v3327_v44 }
 0xfac   :  { %v3324_v45 = vpop.f32.mrf.mxu0 }
0x1028   :  { %v3360_v46 = vpop.f32.mrf.mxu1 }
0x1029   :  { %v3361_v47 = vadd.f32 %v4511_v12, %v3360_v46 }
0x102b   :  { %3365 = vst.msk [vmem:[#allocation8] sm:$0x3] %vm3364_vm0, %v3361_v47 }
0x102c   :  { %4693 = shalt.err (!%p4690_p5)
}
0x102d   :  { %3376 = dma.vmem_to_hbm [thread:$0]  %s3372_s14, 32, %s3374_s19, [#allocation4]  }
0x1030   :  { %v3362_v33 = vpop.f32.mrf.mxu1 }
0x1031   :  { %4698 = dma.done.wait [#allocation4], 32  }
0x1032   :  { %4699 = vsyncadd [#allocation4], 4294967264 }
0x1033   :  { %3381 = vsyncpa [#allocation3], 1 }
0x1034   :  { %3382 = vsyncpa [#allocation6], 1 }
0x1035   :  { %3383 = vsyncpa [#allocation4], 1 }

</bundles_post_ra>
